<compile_context>
chip_gen: v7x
topology: tpu7x:2x2x1
jax: 0.10.0
libtpu: 0.0.40
codegen_flags: <defaults>
</compile_context>

<pallas_src>
import numpy as np
import jax
import jax.numpy as jnp
from jax.experimental import pallas as pl
from jax.experimental.pallas import tpu as pltpu


# ----------------------------------------------------------------------------
# Kernel: one block of SB sessions, slot-major layout [L, SB, 2H].
# ----------------------------------------------------------------------------
def _e2s_kernel(xg_ref, cnt_ref, sf_ref,
                w2xg_ref, wsess_ref, w5g_ref,
                b2_ref, w1_ref, b1_ref, b5_ref, out_ref):
    L, SB, H2 = xg_ref.shape          # L = padded slots / session, SB = sessions
    H = H2 // 2
    R = L * SB

    # Fused (node | global) stream; leading-dim merge is layout-free.
    xg = xg_ref[...].reshape(R, H2)                                   # [R, 2H] bf16

    # --- node-stream part of W_2: ONE bf16 MXU matmul, f32 accumulation ----
    z = jnp.dot(xg, w2xg_ref[...], preferred_element_type=jnp.float32)   # [R, H]
    z = z.reshape(L, SB, H)                                               # free split

    # --- per-session part, fused: [ (v_n|u)@W2_vu^T  |  v_n@W5_v^T ] -------
    # Feature order of W_2 is (v_n_repeat, node, global, u_n_repeat) exactly as
    # in Embedding2ScoreWithU.forward; the wrapper slices W_2 accordingly.
    sess = sf_ref[...]                                                    # [SB, 2H] f32
    so = jnp.dot(sess, wsess_ref[...], preferred_element_type=jnp.float32)  # [SB, 2H]
    sess_pre = so[:, :H] + b2_ref[...]                                    # [SB, H]
    vn_w5 = so[:, H:]                                                     # [SB, H]

    # Session term broadcasts over the leading slot axis (free), then sigmoid.
    h = jax.nn.sigmoid(z + sess_pre[None, :, :])                          # [L, SB, H]

    # alpha = W_1(h) + b_1 on the VPU (lane multiply + reduce, no tiny matmul).
    alpha = jnp.sum(h * w1_ref[...], axis=-1, keepdims=True) + b1_ref[...]  # [L, SB, 1]

    # s_g = sum over slots of num_count * alpha * node_embedding.
    # Padded slots carry num_count == 0 and therefore drop out of the sum.
    cnt = cnt_ref[...][:, :, None]                                        # [L, SB, 1]
    x_f32 = xg[:, :H].astype(jnp.float32).reshape(L, SB, H)               # node part
    s_g = jnp.sum(cnt * alpha * x_f32, axis=0)                            # [SB, H]

    # s_h = W_5(cat(v_n, s_g)); the v_n half is already folded into vn_w5.
    out_ref[...] = (vn_w5
                    + jnp.dot(s_g, w5g_ref[...], preferred_element_type=jnp.float32)
                    + b5_ref[...])


def _round_up(x, m):
    return (x + m - 1) // m * m


# ----------------------------------------------------------------------------
# Host-side padded slot-major gather indices (cached per (sections, SB, L)).
# ----------------------------------------------------------------------------
_IDX_CACHE = {}


def _build_layout(sections, SB, L):
    key = (sections.tobytes(), int(SB), int(L))
    hit = _IDX_CACHE.get(key)
    if hit is not None:
        return hit
    S = sections.shape[0]
    S_pad = _round_up(S, SB)
    starts = np.concatenate([[0], np.cumsum(sections)[:-1]]).astype(np.int64)
    slot = np.arange(L, dtype=np.int64)

    idx = np.zeros((L, S_pad), dtype=np.int64)            # slot-major [L, S_pad]
    idx[:, :S] = starts[None, :] + slot[:, None]
    valid = np.zeros((L, S_pad), dtype=bool)
    valid[:, :S] = slot[:, None] < sections[None, :]
    idx = np.where(valid, idx, 0)                         # clamp; masked via cnt==0
    last_idx = (starts + sections - 1).astype(np.int32)

    out = (idx.astype(np.int32), valid, last_idx, int(S_pad))
    _IDX_CACHE[key] = out
    return out


# ----------------------------------------------------------------------------
# Wrapper.
#   node_embedding        [N, H]   (N = sum(sections))
#   global_node_embedding [N, H]
#   num_count             [N]
#   user_emb              [S, H]   per-session user embedding (GNNModel's `u`)
#   sections              concrete numpy int array of per-session lengths
# Returns s_h [S, H].
# ----------------------------------------------------------------------------
def embedding2score_with_u_pallas(node_embedding, global_node_embedding, sections,
                                  num_count, user_emb, params,
                                  *, session_block=64, max_len_bucket=16):
    sections = np.asarray(sections, dtype=np.int64)
    N, H = node_embedding.shape
    S = sections.shape[0]
    assert int(sections.sum()) == N and (sections > 0).all()
    assert session_block % 16 == 0 and max_len_bucket % 8 == 0

    SB = int(session_block)
    L = _round_up(int(sections.max()), max_len_bucket)    # bucketed session length
    idx, valid, last_idx, S_pad = _build_layout(sections, SB, L)
    nblk = S_pad // SB
    # Compiled kernel depends only on (S_pad, L, SB, H): batches in the same
    # bucket reuse the same executable (no per-`sections` recompiles).

    idx_d = jnp.asarray(idx)                              # [L, S_pad] int32
    valid_d = jnp.asarray(valid)                          # [L, S_pad] bool
    last_d = jnp.asarray(last_idx)                        # [S] int32

    # ---- fused (node | global) bf16 stream, gathered slot-major ----------
    xg_src = jnp.concatenate(
        [node_embedding.astype(jnp.float32),
         global_node_embedding.astype(jnp.float32)], axis=-1).astype(jnp.bfloat16)
    xg_pad = xg_src[idx_d.reshape(-1)].reshape(L, S_pad, 2 * H)          # [L,S_pad,2H]

    # ---- num_count, zeroed on padding, grouped per session block ---------
    cnt = jnp.where(valid_d,
                    num_count.reshape(-1).astype(jnp.float32)[idx_d], 0.0)   # [L,S_pad]
    cnt_pad = cnt.reshape(L, nblk, SB).transpose(1, 0, 2).reshape(nblk * L, SB)

    # ---- per-session features (v_n | u), zero-padded to S_pad ------------
    v_n = node_embedding.astype(jnp.float32)[last_d]                      # [S, H]
    sess = jnp.concatenate([v_n, user_emb.astype(jnp.float32)], axis=-1)  # [S, 2H]
    sess_feat = jnp.zeros((S_pad, 2 * H), jnp.float32).at[:S].set(sess)

    # ---- parameters, pre-sliced / transposed / fused ----------------------
    # W_2 : Linear(4H -> H); input order = [v_n_repeat, node, global, u_n_repeat]
    W2 = params["W2"].astype(jnp.float32)                 # [H, 4H]
    w2xg_T = W2[:, H:3 * H].T.astype(jnp.bfloat16)        # [2H, H] acts on (node|global)
    w2vu_T = jnp.concatenate([W2[:, 0:H].T, W2[:, 3 * H:4 * H].T], axis=0)  # [2H, H]
    W5 = params["W5"].astype(jnp.float32)                 # [H, 2H]
    w5v_T = W5[:, :H].T                                   # [H, H] (acts on v_n)
    w5g_T = W5[:, H:].T                                   # [H, H] (acts on s_g)
    wsess = jnp.concatenate(
        [w2vu_T, jnp.concatenate([w5v_T, jnp.zeros((H, H), jnp.float32)], axis=0)],
        axis=1)                                           # [2H, 2H] : [W2_vu^T | W5_v^T;0]
    b2 = params["b2"].reshape(1, H).astype(jnp.float32)
    w1 = params["W1"].reshape(1, H).astype(jnp.float32)   # W_1 : Linear(H -> 1)
    b1 = params["b1"].reshape(1, 1).astype(jnp.float32)
    b5 = params["b5"].reshape(1, H).astype(jnp.float32)
    # NOTE: W_3, W_4, user_linear, user_out of Embedding2ScoreWithU are never
    # used in its forward; stack_u_n is computed but unused -> omitted.

    grid = (nblk,)

    flops = int(2 * L * S_pad * (2 * H) * H               # node-stream matmul
                + 2 * S_pad * (2 * H) * (2 * H)           # fused session matmul
                + 2 * S_pad * H * H                       # s_g @ W5_g
                + 10 * L * S_pad * H)                     # elementwise
    bytes_accessed = int(xg_pad.size * 2 + cnt_pad.size * 4 + sess_feat.size * 4
                         + S_pad * H * 4
                         + (2 * H * H * 2 + 4 * H * H + H * H + 4 * H + 1) * 4)
    cost = pl.CostEstimate(flops=flops, transcendentals=int(L * S_pad * H),
                           bytes_accessed=bytes_accessed)

    out = pl.pallas_call(
        _e2s_kernel,
        out_shape=jax.ShapeDtypeStruct((S_pad, H), jnp.float32),
        grid=grid,
        in_specs=[
            pl.BlockSpec((L, SB, 2 * H), lambda i: (0, i, 0)),   # xg_pad (bf16 stream)
            pl.BlockSpec((L, SB), lambda i: (i, 0)),             # cnt_pad (lane-dense)
            pl.BlockSpec((SB, 2 * H), lambda i: (i, 0)),         # sess_feat (v_n | u)
            pl.BlockSpec((2 * H, H), lambda i: (0, 0)),          # w2xg_T (bf16)
            pl.BlockSpec((2 * H, 2 * H), lambda i: (0, 0)),      # wsess
            pl.BlockSpec((H, H), lambda i: (0, 0)),              # w5g_T
            pl.BlockSpec((1, H), lambda i: (0, 0)),              # b2
            pl.BlockSpec((1, H), lambda i: (0, 0)),              # w1
            pl.BlockSpec((1, 1), lambda i: (0, 0)),              # b1
            pl.BlockSpec((1, H), lambda i: (0, 0)),              # b5
        ],
        out_specs=pl.BlockSpec((SB, H), lambda i: (i, 0)),
        compiler_params=pltpu.CompilerParams(
            dimension_semantics=("parallel",),           # independent session blocks
            vmem_limit_bytes=32 * 1024 * 1024),          # conservative for v7x's 64 MiB
        cost_estimate=cost,
    )(xg_pad, cnt_pad, sess_feat, w2xg_T, wsess, w5g_T, b2, w1, b1, b5)

    # Rows [S:S_pad] are garbage from padded sessions -> keep this slice.
    return out[:S]


# ----------------------------------------------------------------------------
# Pure-JAX f32 reference (mirrors Embedding2ScoreWithU's multi-session branch;
# for S == 1 the single-session branch produces the identical result).
# ----------------------------------------------------------------------------
def embedding2score_with_u_ref(node_embedding, global_node_embedding, sections,
                               num_count, user_emb, params):
    sections = np.asarray(sections)
    S = sections.shape[0]
    seg_ids = np.repeat(np.arange(S), sections)
    last_idx = np.cumsum(sections) - 1

    v_n = node_embedding[last_idx]                         # [S, H]
    v_n_repeat = v_n[seg_ids]                              # [N, H]
    u_n_repeat = user_emb[seg_ids]                         # [N, H]

    feat = jnp.concatenate(
        [v_n_repeat, node_embedding, global_node_embedding, u_n_repeat], axis=-1)
    z = feat @ params["W2"].T + params["b2"]
    alpha = jax.nn.sigmoid(z) @ params["W1"].T + params["b1"]
    s_g_whole = num_count.reshape(-1, 1) * alpha * node_embedding
    s_g = jax.ops.segment_sum(s_g_whole, jnp.asarray(seg_ids), num_segments=S)
    s_h = jnp.concatenate([v_n, s_g], axis=-1) @ params["W5"].T + params["b5"]
    return s_h


# ----------------------------------------------------------------------------
if __name__ == "__main__":
    H = 32                                                  # hidden_size
    sections = np.array([3, 5, 6, 2, 7, 1, 4, 9, 2, 3, 5, 6, 8], dtype=np.int32)
    N = int(sections.sum())                                 # 61 nodes
    S = sections.shape[0]                                   # 13 sessions

    key = jax.random.PRNGKey(0)
    keys = jax.random.split(key, 12)

    node_embedding = jax.random.normal(keys[0], (N, H), dtype=jnp.float32)
    global_node_embedding = jax.random.normal(keys[1], (N, H), dtype=jnp.float32)
    num_count = jax.random.uniform(keys[2], (N,), dtype=jnp.float32,
                                   minval=1.0, maxval=5.0)
    user_emb = jax.random.normal(keys[3], (S, H), dtype=jnp.float32)

    # GNNModel.reset_parameters: every weight ~ U(-1/sqrt(H), 1/sqrt(H))
    def lin_init(kw, kb, out_f, in_f):
        bound = 1.0 / np.sqrt(H)
        W = jax.random.uniform(kw, (out_f, in_f), minval=-bound, maxval=bound,
                               dtype=jnp.float32)
        b = jax.random.uniform(kb, (out_f,), minval=-bound, maxval=bound,
                               dtype=jnp.float32)
        return W, b

    W1, b1 = lin_init(keys[4], keys[5], 1, H)               # W_1 : H  -> 1
    W2, b2 = lin_init(keys[6], keys[7], H, 4 * H)           # W_2 : 4H -> H
    W5, b5 = lin_init(keys[8], keys[9], H, 2 * H)           # W_5 : 2H -> H
    params = {"W1": W1, "b1": b1, "W2": W2, "b2": b2, "W5": W5, "b5": b5}

    out = embedding2score_with_u_pallas(node_embedding, global_node_embedding,
                                        sections, num_count, user_emb, params)
    out = jax.block_until_ready(out)

    ref = embedding2score_with_u_ref(node_embedding, global_node_embedding,
                                     sections, num_count, user_emb, params)

    # bf16 node streams / W_2 node block with f32 accumulation -> loosened
    # tolerance vs. the pure-f32 reference.
    np.testing.assert_allclose(np.asarray(out), np.asarray(ref),
                               rtol=4e-2, atol=4e-2)
    assert out.shape == (S, H)
    print("KERNEL_OK")
</pallas_src>

<mosaic_0001>
module attributes {stable_mosaic.version = 11 : i64} {
  func.func @_e2s_kernel(%arg0: i32, %arg1: memref<16x64x64xbf16, #tpu.memory_space<vmem>>, %arg2: memref<16x64xf32, #tpu.memory_space<vmem>>, %arg3: memref<64x64xf32, #tpu.memory_space<vmem>>, %arg4: memref<64x32xbf16, #tpu.memory_space<vmem>>, %arg5: memref<64x64xf32, #tpu.memory_space<vmem>>, %arg6: memref<32x32xf32, #tpu.memory_space<vmem>>, %arg7: memref<1x32xf32, #tpu.memory_space<vmem>>, %arg8: memref<1x32xf32, #tpu.memory_space<vmem>>, %arg9: memref<1x1xf32, #tpu.memory_space<vmem>>, %arg10: memref<1x32xf32, #tpu.memory_space<vmem>>, %arg11: memref<64x32xf32, #tpu.memory_space<vmem>>) attributes {dimension_semantics = [#tpu.dimension_semantics<parallel>], iteration_bounds = array<i64: 1>, scalar_prefetch = 0 : i64, scratch_operands = 0 : i64, tpu.core_type = #tpu.core_type<tc>, window_params = [{transform_indices = @transform_0, window_bounds = array<i64: 16, 64, 64>}, {transform_indices = @transform_1, window_bounds = array<i64: 16, 64>}, {transform_indices = @transform_2, window_bounds = array<i64: 64, 64>}, {pipeline_mode = #tpu.pipeline_mode<synchronous>, transform_indices = @transform_3, window_bounds = array<i64: 64, 32>}, {pipeline_mode = #tpu.pipeline_mode<synchronous>, transform_indices = @transform_4, window_bounds = array<i64: 64, 64>}, {pipeline_mode = #tpu.pipeline_mode<synchronous>, transform_indices = @transform_5, window_bounds = array<i64: 32, 32>}, {pipeline_mode = #tpu.pipeline_mode<synchronous>, transform_indices = @transform_6, window_bounds = array<i64: 1, 32>}, {pipeline_mode = #tpu.pipeline_mode<synchronous>, transform_indices = @transform_7, window_bounds = array<i64: 1, 32>}, {pipeline_mode = #tpu.pipeline_mode<synchronous>, transform_indices = @transform_8, window_bounds = array<i64: 1, 1>}, {pipeline_mode = #tpu.pipeline_mode<synchronous>, transform_indices = @transform_9, window_bounds = array<i64: 1, 32>}, {transform_indices = @transform_10, window_bounds = array<i64: 64, 32>}]} {
    %c0 = arith.constant 0 : index
    %c0_0 = arith.constant 0 : index
    %c0_1 = arith.constant 0 : index
    %0 = vector.load %arg1[%c0, %c0_0, %c0_1] : memref<16x64x64xbf16, #tpu.memory_space<vmem>>, vector<16x64x64xbf16>
    %1 = vector.shape_cast %0 : vector<16x64x64xbf16> to vector<1024x64xbf16>
    %c0_2 = arith.constant 0 : index
    %c0_3 = arith.constant 0 : index
    %2 = vector.load %arg4[%c0_2, %c0_3] : memref<64x32xbf16, #tpu.memory_space<vmem>>, vector<64x32xbf16>
    %cst = arith.constant dense<0.000000e+00> : vector<1024x32xf32>
    %3 = tpu.matmul %1, %2, %cst {dimension_numbers = #tpu.dot_dimension_numbers<[1], [0], [0], [1], [0, 0, 1, 1], [], []>} : vector<1024x64xbf16>, vector<64x32xbf16>, vector<1024x32xf32> -> vector<1024x32xf32>
    %4 = vector.shape_cast %3 : vector<1024x32xf32> to vector<16x64x32xf32>
    %c0_4 = arith.constant 0 : index
    %c0_5 = arith.constant 0 : index
    %5 = vector.load %arg3[%c0_4, %c0_5] : memref<64x64xf32, #tpu.memory_space<vmem>>, vector<64x64xf32>
    %c0_6 = arith.constant 0 : index
    %c0_7 = arith.constant 0 : index
    %6 = vector.load %arg5[%c0_6, %c0_7] : memref<64x64xf32, #tpu.memory_space<vmem>>, vector<64x64xf32>
    %cst_8 = arith.constant dense<0.000000e+00> : vector<64x64xf32>
    %7 = tpu.matmul %5, %6, %cst_8 {dimension_numbers = #tpu.dot_dimension_numbers<[1], [0], [0], [1], [0, 0, 1, 1], [], []>} : vector<64x64xf32>, vector<64x64xf32>, vector<64x64xf32> -> vector<64x64xf32>
    %8 = vector.extract_strided_slice %7 {offsets = [0, 0], sizes = [64, 32], strides = [1, 1]} : vector<64x64xf32> to vector<64x32xf32>
    %c0_9 = arith.constant 0 : index
    %c0_10 = arith.constant 0 : index
    %9 = vector.load %arg7[%c0_9, %c0_10] : memref<1x32xf32, #tpu.memory_space<vmem>>, vector<1x32xf32>
    %10 = vector.broadcast %9 : vector<1x32xf32> to vector<64x32xf32>
    %11 = arith.addf %8, %10 : vector<64x32xf32>
    %12 = vector.extract_strided_slice %7 {offsets = [0, 32], sizes = [64, 32], strides = [1, 1]} : vector<64x64xf32> to vector<64x32xf32>
    %13 = vector.shape_cast %11 : vector<64x32xf32> to vector<1x64x32xf32>
    %14 = vector.broadcast %13 : vector<1x64x32xf32> to vector<16x64x32xf32>
    %15 = arith.addf %4, %14 : vector<16x64x32xf32>
    %16 = arith.negf %15 : vector<16x64x32xf32>
    %17 = math.exp %16 : vector<16x64x32xf32>
    %cst_11 = arith.constant 1.000000e+00 : f32
    %18 = vector.broadcast %cst_11 : f32 to vector<16x64x32xf32>
    %19 = arith.addf %18, %17 : vector<16x64x32xf32>
    %20 = arith.divf %18, %19 : vector<16x64x32xf32>
    %c0_12 = arith.constant 0 : index
    %c0_13 = arith.constant 0 : index
    %21 = vector.load %arg8[%c0_12, %c0_13] : memref<1x32xf32, #tpu.memory_space<vmem>>, vector<1x32xf32>
    %22 = vector.shape_cast %21 : vector<1x32xf32> to vector<1x1x32xf32>
    %23 = vector.broadcast %22 : vector<1x1x32xf32> to vector<16x64x32xf32>
    %24 = arith.mulf %20, %23 : vector<16x64x32xf32>
    %cst_14 = arith.constant dense<0.000000e+00> : vector<16x64xf32>
    %25 = vector.multi_reduction <add>, %24, %cst_14 [2] : vector<16x64x32xf32> to vector<16x64xf32>
    %26 = vector.shape_cast %25 : vector<16x64xf32> to vector<16x64x1xf32>
    %c0_15 = arith.constant 0 : index
    %c0_16 = arith.constant 0 : index
    %27 = vector.load %arg9[%c0_15, %c0_16] : memref<1x1xf32, #tpu.memory_space<vmem>>, vector<1x1xf32>
    %28 = vector.shape_cast %27 : vector<1x1xf32> to vector<1x1x1xf32>
    %29 = vector.broadcast %28 : vector<1x1x1xf32> to vector<16x64x1xf32>
    %30 = arith.addf %26, %29 : vector<16x64x1xf32>
    %c0_17 = arith.constant 0 : index
    %c0_18 = arith.constant 0 : index
    %31 = vector.load %arg2[%c0_17, %c0_18] : memref<16x64xf32, #tpu.memory_space<vmem>>, vector<16x64xf32>
    %32 = vector.shape_cast %31 : vector<16x64xf32> to vector<16x64x1xf32>
    %33 = vector.extract_strided_slice %1 {offsets = [0, 0], sizes = [1024, 32], strides = [1, 1]} : vector<1024x64xbf16> to vector<1024x32xbf16>
    %34 = arith.extf %33 : vector<1024x32xbf16> to vector<1024x32xf32>
    %35 = vector.shape_cast %34 : vector<1024x32xf32> to vector<16x64x32xf32>
    %36 = arith.mulf %32, %30 : vector<16x64x1xf32>
    %37 = vector.broadcast %36 : vector<16x64x1xf32> to vector<16x64x32xf32>
    %38 = arith.mulf %37, %35 : vector<16x64x32xf32>
    %cst_19 = arith.constant dense<0.000000e+00> : vector<64x32xf32>
    %39 = vector.multi_reduction <add>, %38, %cst_19 [0] : vector<16x64x32xf32> to vector<64x32xf32>
    %c0_20 = arith.constant 0 : index
    %c0_21 = arith.constant 0 : index
    %40 = vector.load %arg6[%c0_20, %c0_21] : memref<32x32xf32, #tpu.memory_space<vmem>>, vector<32x32xf32>
    %cst_22 = arith.constant dense<0.000000e+00> : vector<64x32xf32>
    %41 = tpu.matmul %39, %40, %cst_22 {dimension_numbers = #tpu.dot_dimension_numbers<[1], [0], [0], [1], [0, 0, 1, 1], [], []>} : vector<64x32xf32>, vector<32x32xf32>, vector<64x32xf32> -> vector<64x32xf32>
    %42 = arith.addf %12, %41 : vector<64x32xf32>
    %c0_23 = arith.constant 0 : index
    %c0_24 = arith.constant 0 : index
    %43 = vector.load %arg10[%c0_23, %c0_24] : memref<1x32xf32, #tpu.memory_space<vmem>>, vector<1x32xf32>
    %44 = vector.broadcast %43 : vector<1x32xf32> to vector<64x32xf32>
    %45 = arith.addf %42, %44 : vector<64x32xf32>
    %c0_25 = arith.constant 0 : index
    %c0_26 = arith.constant 0 : index
    %46 = vector.load %arg11[%c0_25, %c0_26] : memref<64x32xf32, #tpu.memory_space<vmem>>, vector<64x32xf32>
    tpu.vector_store %arg11[%c0_25, %c0_26], %45 {strides = array<i32>} : memref<64x32xf32, #tpu.memory_space<vmem>>, vector<64x32xf32>,
    return
  }
  func.func @transform_0(%arg0: i32) -> (i32, i32, i32) {
    %c0_i32 = arith.constant 0 : i32
    %c0_i32_0 = arith.constant 0 : i32
    %c0_i32_1 = arith.constant 0 : i32
    return %c0_i32, %arg0, %c0_i32_0 : i32, i32, i32
  }
  func.func @transform_1(%arg0: i32) -> (i32, i32) {
    %c0_i32 = arith.constant 0 : i32
    %c0_i32_0 = arith.constant 0 : i32
    return %arg0, %c0_i32 : i32, i32
  }
  func.func @transform_2(%arg0: i32) -> (i32, i32) {
    %c0_i32 = arith.constant 0 : i32
    %c0_i32_0 = arith.constant 0 : i32
    return %arg0, %c0_i32 : i32, i32
  }
  func.func @transform_3(%arg0: i32) -> (i32, i32) {
    %c0_i32 = arith.constant 0 : i32
    %c0_i32_0 = arith.constant 0 : i32
    %c0_i32_1 = arith.constant 0 : i32
    return %c0_i32, %c0_i32_0 : i32, i32
  }
  func.func @transform_4(%arg0: i32) -> (i32, i32) {
    %c0_i32 = arith.constant 0 : i32
    %c0_i32_0 = arith.constant 0 : i32
    %c0_i32_1 = arith.constant 0 : i32
    return %c0_i32, %c0_i32_0 : i32, i32
  }
  func.func @transform_5(%arg0: i32) -> (i32, i32) {
    %c0_i32 = arith.constant 0 : i32
    %c0_i32_0 = arith.constant 0 : i32
    %c0_i32_1 = arith.constant 0 : i32
    return %c0_i32, %c0_i32_0 : i32, i32
  }
  func.func @transform_6(%arg0: i32) -> (i32, i32) {
    %c0_i32 = arith.constant 0 : i32
    %c0_i32_0 = arith.constant 0 : i32
    %c0_i32_1 = arith.constant 0 : i32
    return %c0_i32, %c0_i32_0 : i32, i32
  }
  func.func @transform_7(%arg0: i32) -> (i32, i32) {
    %c0_i32 = arith.constant 0 : i32
    %c0_i32_0 = arith.constant 0 : i32
    %c0_i32_1 = arith.constant 0 : i32
    return %c0_i32, %c0_i32_0 : i32, i32
  }
  func.func @transform_8(%arg0: i32) -> (i32, i32) {
    %c0_i32 = arith.constant 0 : i32
    %c0_i32_0 = arith.constant 0 : i32
    %c0_i32_1 = arith.constant 0 : i32
    return %c0_i32, %c0_i32_0 : i32, i32
  }
  func.func @transform_9(%arg0: i32) -> (i32, i32) {
    %c0_i32 = arith.constant 0 : i32
    %c0_i32_0 = arith.constant 0 : i32
    %c0_i32_1 = arith.constant 0 : i32
    return %c0_i32, %c0_i32_0 : i32, i32
  }
  func.func @transform_10(%arg0: i32) -> (i32, i32) {
    %c0_i32 = arith.constant 0 : i32
    %c0_i32_0 = arith.constant 0 : i32
    return %arg0, %c0_i32 : i32, i32
  }
}

</mosaic_0001>

<bundles_post_ra>
// kernel: tpu_custom_call.1
= control target key start
LH: loop header
LB: loop body
LE: loop exit
PB: predicated region body
PF: predicated region fallthrough
CT: control target
= control target key end

     0   :  { %s9600_s0 = inlined_call_operand.hbm [shape: bf16[16,64,64], index: 0, kind: input, shape index: {}]   ;;  %s9601_s1 = inlined_call_operand.hbm [shape: f32[16,64], index: 1, kind: input, shape index: {}]   ;;  %s9602_s2 = inlined_call_operand.hbm [shape: f32[64,64], index: 2, kind: input, shape index: {}]   ;;  %s9603_s3 = inlined_call_operand.vmem [shape: bf16[64,32], index: 3, kind: input, shape index: {}]   ;;  %s9604_s4 = inlined_call_operand.vmem [shape: f32[64,64], index: 4, kind: input, shape index: {}]   ;;  %s9605_s5 = inlined_call_operand.hbm [shape: f32[32,32], index: 5, kind: input, shape index: {}]   ;;  %s9606_s6 = inlined_call_operand.vmem [shape: f32[1,32], index: 6, kind: input, shape index: {}]   ;;  %s9607_s7 = inlined_call_operand.vmem [shape: f32[1,32], index: 7, kind: input, shape index: {}]   ;;  %s9608_s8 = inlined_call_operand.<no memory space> [shape: f32[1,1], index: 8, kind: input, shape index: {}]   ;;  %s9609_s9 = inlined_call_operand.vmem [shape: f32[1,32], index: 9, kind: input, shape index: {}]   ;;  %s9610_s10 = inlined_call_operand.vmem [shape: f32[64,32], index: 10, kind: output, shape index: {}]  }
   0x1   :  { %v15_v0 = vstv %s9608_s8 }
   0x2   :  { %16 = vst [vmem:[#allocation2] sm:$0x1] %v15_v0 }
   0x3   :  { %17 = vsyncpa [#allocation4], 0 }
   0x4   :  { %18 = vsyncpa [#allocation6], 0 }
   0x5   :  { %19 = vsyncpa [#allocation9], 0  ;;  %s6503_s15 = smov [#allocation5]   ;;  %s6409_s19 = scalar_lea.hbm %s9601_s1, 256 }
   0x6   :  { %s37_s16 = sshll.u32 %s6503_s15, 4  ;;  %p6410_p0 = scmp.ne.s32.totalorder %s9601_s1, %s6409_s19  ;;  %s38_s16 = int_to_ptr.vmem [resolvable:$true] %s37_s16 }
   0x7   :  { %p6413_p1 = scmp.lt.u32.totalorder %s6409_s19, %s9601_s1 }
   0x9   :  { %p6415_p2 = pnand %p6413_p1, %p6410_p0 }
   0xb   :  { %6418 = shalt.err (!%p6415_p2)
}
   0xc   :  { %s6419_s8 = scalar_lea.vmem %s38_s16, 256  ;;  %p6424_p4 = scmp.lt.s32.totalorder %s38_s16, %s38_s16 }
   0xd   :  { %p6420_p3 = scmp.ne.s32.totalorder %s38_s16, %s6419_s8  ;;  %p6425_p5 = scmp.lt.s32.totalorder %s6419_s8, %s6419_s8 }
   0xf   :  { %p6426_p6 = por %p6425_p5, %p6424_p4 }
  0x11   :  { %p6427_p7 = pnand %p6426_p6, %p6420_p3 }
  0x13   :  { %6430 = shalt.err (!%p6427_p7)
}
  0x14   :  { %s6504_s24 = smov 128   ;;  %s6505_s25 = smov 8  }
  0x15   :  { %43 = dma.hbm_to_vmem [thread:$0]  %s9601_s1, 256, %s38_s16, [#allocation6], %s6504_s24, %s6504_s24, %s6505_s25  }
  0x16   :  { %s6506_s28 = smov [#allocation3]   ;;  %s6431_s12 = scalar_lea.hbm %s9600_s0, 8192 }
  0x17   :  { %s25_s29 = sshll.u32 %s6506_s28, 4  ;;  %p6432_p8 = scmp.ne.s32.totalorder %s9600_s0, %s6431_s12  ;;  %s26_s29 = int_to_ptr.vmem [resolvable:$true] %s25_s29 }
  0x18   :  { %p6435_p9 = scmp.lt.u32.totalorder %s6431_s12, %s9600_s0 }
  0x1a   :  { %p6437_p10 = pnand %p6435_p9, %p6432_p8 }
  0x1c   :  { %6440 = shalt.err (!%p6437_p10)
}
  0x1d   :  { %s6441_s18 = scalar_lea.vmem %s26_s29, 8192  ;;  %p6446_p12 = scmp.lt.s32.totalorder %s26_s29, %s26_s29 }
  0x1e   :  { %p6442_p11 = scmp.ne.s32.totalorder %s26_s29, %s6441_s18  ;;  %p6447_p13 = scmp.lt.s32.totalorder %s6441_s18, %s6441_s18 }
  0x20   :  { %p6448_p0 = por %p6447_p13, %p6446_p12 }
  0x22   :  { %p6449_p1 = pnand %p6448_p0, %p6442_p11 }
  0x24   :  { %6452 = shalt.err (!%p6449_p1)
}
  0x25   :  { %s6507_s1 = smov 64   ;;  %s6508_s16 = smov 4  }
  0x26   :  { %31 = dma.hbm_to_vmem [thread:$0]  %s9600_s0, 8192, %s26_s29, [#allocation4], %s6507_s1, %s6507_s1, %s6508_s16  }
  0x27   :  { %s6509_s21 = smov [#allocation7]   ;;  %s6510_s23 = smov [#allocation8]  }
  0x28   :  { %s49_s22 = sshll.u32 %s6509_s21, 4  ;;  %s65_s8 = sshll.u32 %s6510_s23, 4  ;;  %s50_s22 = int_to_ptr.vmem [resolvable:$true] %s49_s22  ;;  %s6599_s8 = int_to_ptr.vmem [resolvable:$true] %s65_s8 }
  0x29   :  { %s6453_s28 = scalar_lea.hbm %s9602_s2, 1024 }
  0x2a   :  { %p6454_p2 = scmp.ne.s32.totalorder %s9602_s2, %s6453_s28  ;;  %p6457_p3 = scmp.lt.u32.totalorder %s6453_s28, %s9602_s2 }
  0x2c   :  { %p6459_p4 = pnand %p6457_p3, %p6454_p2 }
  0x2e   :  { %6462 = shalt.err (!%p6459_p4)
}
  0x2f   :  { %s6463_s0 = scalar_lea.vmem %s50_s22, 1024  ;;  %p6468_p6 = scmp.lt.s32.totalorder %s50_s22, %s50_s22 }
  0x30   :  { %p6464_p5 = scmp.ne.s32.totalorder %s50_s22, %s6463_s0  ;;  %p6469_p7 = scmp.lt.s32.totalorder %s6463_s0, %s6463_s0 }
  0x32   :  { %p6470_p8 = por %p6469_p7, %p6468_p6 }
  0x34   :  { %p6471_p9 = pnand %p6470_p8, %p6464_p5 }
  0x36   :  { %6474 = shalt.err (!%p6471_p9)
}
  0x37   :  { %55 = dma.hbm_to_vmem [thread:$0]  %s9602_s2, 1024, %s50_s22, [#allocation6], %s6504_s24, %s6504_s24, %s6505_s25  }
  0x38   :  { %s6475_s18 = scalar_lea.hbm %s9605_s5, 512 }
  0x39   :  { %p6476_p10 = scmp.ne.s32.totalorder %s9605_s5, %s6475_s18  ;;  %p6479_p11 = scmp.lt.u32.totalorder %s6475_s18, %s9605_s5 }
  0x3b   :  { %p6481_p12 = pnand %p6479_p11, %p6476_p10 }
  0x3d   :  { %6484 = shalt.err (!%p6481_p12)
}
  0x3e   :  { %s6485_s21 = scalar_lea.vmem %s6599_s8, 512  ;;  %p6490_p0 = scmp.lt.s32.totalorder %s6599_s8, %s6599_s8 }
  0x3f   :  { %p6486_p13 = scmp.ne.s32.totalorder %s6599_s8, %s6485_s21  ;;  %p6491_p1 = scmp.lt.s32.totalorder %s6485_s21, %s6485_s21 }
  0x41   :  { %p6492_p2 = por %p6491_p1, %p6490_p0 }
  0x43   :  { %p6493_p3 = pnand %p6492_p2, %p6486_p13 }
  0x45   :  { %6496 = shalt.err (!%p6493_p3)
}
  0x46   :  { %71 = dma.hbm_to_vmem [thread:$0]  %s9605_s5, 512, %s6599_s8, [#allocation9], %s6504_s24, %s6504_s24, %s6505_s25  }
  0x47   :  { %6497 = dma.done.wait [#allocation4], 8192  }
  0x48   :  { %6498 = vsyncadd [#allocation4], 4294959104 }
  0x49   :  { %6499 = dma.done.wait [#allocation6], 1280  }
  0x4a   :  { %6500 = vsyncadd [#allocation6], 4294966016 }
  0x4b   :  { %6501 = dma.done.wait [#allocation9], 512  }
  0x4c   :  { %6502 = vsyncadd [#allocation9], 4294966784  ;;  %v5698_v1 = vld [vmem:[%s9603_s3] sm:$0xff]   ;;  %v5699_v2 = vld [vmem:[%s9603_s3 + $0x8] sm:$0xff]   ;;  %vm573_vm0 = vcmask 523264   ;;  %v3024_v21 = vlaneseq  ;;  %vm2502_vm1 = vcmask 261120  }
  0x4d   :  { %5469 = vmatprep.subr.bf16.mxu0 %v5698_v1  ;;  %5677 = vmatprep.subr.bf16.mxu1 %v5698_v1  ;;  %v5700_v3 = vld [vmem:[%s9603_s3 + $0x10] sm:$0xff]   ;;  %v93_v4 = vld [vmem:[#allocation3] sm:$0xff]   ;;  %v5701_v6 = vld [vmem:[%s9603_s3 + $0x18] sm:$0xff]   ;;  %s6513_s25 = smov 96  }
  0x4e   :  { %5470 = vmatpush3.bf16.msra.mxu0 %v5698_v1  ;;  %5681 = vmatpush3.bf16.msra.mxu1 %v5698_v1  ;;  %v165_v5 = vld [vmem:[#allocation3 + $0x120] sm:$0xff]   ;;  %v95_v9 = vld [vmem:[#allocation3 + $0x8] sm:$0xff]   ;;  %v97_v12 = vld [vmem:[#allocation3 + $0x10] sm:$0xff]   ;;  %v6678_v27 = vshrl.u32 %v3024_v21, 7 }
  0x4f   :  { %5471 = vmatprep.subr.bf16.mxu0 %v5699_v2  ;;  %5678 = vmatprep.subr.bf16.mxu1 %v5699_v2  ;;  %v1319_v7 = vld [vmem:[%s9604_s4] sm:$0xff]  ;;  %v1320_v8 = vld [vmem:[%s9604_s4 + $0x8] sm:$0xff]  ;;  %v169_v13 = vld [vmem:[#allocation3 + $0x130] sm:$0xff]  }
  0x50   :  { %5477 = vmatprep.mubr.msk.bf16.mxu0 %vm573_vm0, %v93_v4  ;;  %5549 = vmatprep.mubr.msk.bf16.mxu1 %vm573_vm0, %v165_v5  ;;  %v167_v10 = vld [vmem:[#allocation3 + $0x128] sm:$0xff]   ;;  %v5653_v11 = vpack.c.bf16 %v1320_v8, %v1319_v7  ;;  %v1322_v15 = vld [vmem:[%s9604_s4 + $0x18] sm:$0xff]  ;;  %v1323_v17 = vld [vmem:[%s9604_s4 + $0x20] sm:$0xff]  ;;  %9646 = vst [vmem:[#allocation13_spill] sm:$0xff] %v6678_v27  ;;  %v3026_v31 = vsub.s32 0, %v6678_v27  ;;  %v9617_v40 = vsub.s32 1, %v6678_v27 }
  0x51   :  { %v1321_v14 = vld [vmem:[%s9604_s4 + $0x10] sm:$0xff]  ;;  %v1324_v18 = vld [vmem:[%s9604_s4 + $0x28] sm:$0xff]  ;;  %v99_v19 = vld [vmem:[#allocation3 + $0x18] sm:$0xff]   ;;  %v9615_v21 = vsub.s32 3, %v6678_v27 }
  0x52   :  { %5472 = vmatpush3.bf16.msra.mxu0 %v5699_v2  ;;  %5682 = vmatpush3.bf16.msra.mxu1 %v5699_v2  ;;  %v5657_v16 = vpack.c.bf16 %v1322_v15, %v1321_v14  ;;  %v171_v20 = vld [vmem:[#allocation3 + $0x138] sm:$0xff]   ;;  %v101_v22 = vld [vmem:[#allocation3 + $0x20] sm:$0xff]   ;;  %v5661_v24 = vpack.c.bf16 %v1324_v18, %v1323_v17  ;;  %v1325_v25 = vld [vmem:[%s9604_s4 + $0x30] sm:$0xff] }
  0x53   :  { %5473 = vmatprep.subr.bf16.mxu0 %v5700_v3  ;;  %5679 = vmatprep.subr.bf16.mxu1 %v5700_v3  ;;  %v173_v23 = vld [vmem:[#allocation3 + $0x140] sm:$0xff]   ;;  %v1326_v26 = vld [vmem:[%s9604_s4 + $0x38] sm:$0xff]  ;;  %v103_v29 = vld [vmem:[#allocation3 + $0x28] sm:$0xff]  }
  0x54   :  { %v5665_v28 = vpack.c.bf16 %v1326_v26, %v1325_v25  ;;  %v175_v30 = vld [vmem:[#allocation3 + $0x148] sm:$0xff]   ;;  %v105_v32 = vld [vmem:[#allocation3 + $0x30] sm:$0xff]   ;;  %v6685_v34 = vld [vmem:[#allocation5] sm:$0xff] }
  0x55   :  { %v177_v33 = vld [vmem:[#allocation3 + $0x150] sm:$0xff]   ;;  %v3027_v35 = vrot.slane %v6685_v34, %v3026_v31  ;;  %v107_v36 = vld [vmem:[#allocation3 + $0x38] sm:$0xff]   ;;  %v109_v38 = vld [vmem:[#allocation3 + $0x40] sm:$0xff]   ;;  %v3062_v41 = vrot.slane %v6685_v34, %v9617_v40 }
  0x56   :  { %5474 = vmatpush3.bf16.msra.mxu0 %v5700_v3  ;;  %5683 = vmatpush3.bf16.msra.mxu1 %v5700_v3  ;;  %v179_v37 = vld [vmem:[#allocation3 + $0x158] sm:$0xff]   ;;  %v181_v39 = vld [vmem:[#allocation3 + $0x160] sm:$0xff]   ;;  %v111_v42 = vld [vmem:[#allocation3 + $0x48] sm:$0xff]  }
  0x57   :  { %5475 = vmatprep.subr.bf16.mxu0 %v5701_v6  ;;  %5680 = vmatprep.subr.bf16.mxu1 %v5701_v6  ;;  %v183_v43 = vld [vmem:[#allocation3 + $0x168] sm:$0xff]   ;;  %v113_v44 = vld [vmem:[#allocation3 + $0x50] sm:$0xff]   ;;  %v115_v46 = vld [vmem:[#allocation3 + $0x58] sm:$0xff]  }
  0x58   :  { %3033 = vbcast.lane.b32.xlu1 %v3027_v35, 264  ;;  %3029 = vbcast.lane.b32.xlu0 %v3027_v35, 256  ;;  %v185_v45 = vld [vmem:[#allocation3 + $0x170] sm:$0xff]   ;;  %v187_v47 = vld [vmem:[#allocation3 + $0x178] sm:$0xff]   ;;  %v117_v48 = vld [vmem:[#allocation3 + $0x60] sm:$0xff]  }
  0x59   :  { %v189_v49 = vld [vmem:[#allocation3 + $0x180] sm:$0xff]   ;;  %v119_v50 = vld [vmem:[#allocation3 + $0x68] sm:$0xff]   ;;  %v121_v52 = vld [vmem:[#allocation3 + $0x70] sm:$0xff]  }
  0x5a   :  { %5476 = vmatpush3.bf16.msra.mxu0 %v5701_v6  ;;  %5684 = vmatpush3.bf16.msra.mxu1 %v5701_v6  ;;  %v191_v51 = vld [vmem:[#allocation3 + $0x188] sm:$0xff]   ;;  %v193_v53 = vld [vmem:[#allocation3 + $0x190] sm:$0xff]   ;;  %v123_v54 = vld [vmem:[#allocation3 + $0x78] sm:$0xff]  }
  0x5b   :  { %5654 = vmatprep.subr.bf16.mxu1 %v5653_v11  ;;  %v195_v55 = vld [vmem:[#allocation3 + $0x198] sm:$0xff]   ;;  %v125_v56 = vld [vmem:[#allocation3 + $0x80] sm:$0xff]   ;;  %v127_v58 = vld [vmem:[#allocation3 + $0x88] sm:$0xff]  }
  0x5c   :  { %3037 = vbcast.lane.b32.xlu1 %v3027_v35, 272  ;;  %3045 = vbcast.lane.b32.xlu0 %v3027_v35, 288  ;;  %v197_v57 = vld [vmem:[#allocation3 + $0x1a0] sm:$0xff]   ;;  %v199_v59 = vld [vmem:[#allocation3 + $0x1a8] sm:$0xff]   ;;  %v129_v60 = vld [vmem:[#allocation3 + $0x90] sm:$0xff]  }
  0x5d   :  { %5478 = vmatmul.mubr.msk.bf16.vlgmr.msra.gmra.mrb[0].mxu0 %vm573_vm0, %v95_v9  ;;  %5550 = vmatmul.mubr.msk.bf16.vlgmr.msra.gmra.mrb[0].mxu1 %vm573_vm0, %v167_v10  ;;  %v201_v61 = vld [vmem:[#allocation3 + $0x1b0] sm:$0xff]   ;;  %v131_v62 = vld [vmem:[#allocation3 + $0x98] sm:$0xff]   ;;  %v133_v0 = vld [vmem:[#allocation3 + $0xa0] sm:$0xff]  }
  0x5e   :  { %5656 = vmatpush3.bf16.msra.mxu1 %v5653_v11  ;;  %5481 = vmatprep.mubr.msk.bf16.mxu0 %vm573_vm0, %v97_v12  ;;  %v203_v63 = vld [vmem:[#allocation3 + $0x1b8] sm:$0xff]   ;;  %v205_v1 = vld [vmem:[#allocation3 + $0x1c0] sm:$0xff]   ;;  %v135_v2 = vld [vmem:[#allocation3 + $0xa8] sm:$0xff]   ;;  %v9616_v12 = vsub.s32 2, %v6678_v27 }
  0x5f   :  { %5553 = vmatprep.mubr.msk.bf16.mxu1 %vm573_vm0, %v169_v13  ;;  %5658 = vmatprep.subr.bf16.mxu1 %v5657_v16  ;;  %v207_v3 = vld [vmem:[#allocation3 + $0x1c8] sm:$0xff]   ;;  %v137_v4 = vld [vmem:[#allocation3 + $0xb0] sm:$0xff]   ;;  %v139_v6 = vld [vmem:[#allocation3 + $0xb8] sm:$0xff]  }
  0x60   :  { %3041 = vbcast.lane.b32.xlu1 %v3027_v35, 280  ;;  %3053 = vbcast.lane.b32.xlu0 %v3027_v35, 304  ;;  %v209_v5 = vld [vmem:[#allocation3 + $0x1d0] sm:$0xff]   ;;  %v211_v7 = vld [vmem:[#allocation3 + $0x1d8] sm:$0xff]   ;;  %v141_v8 = vld [vmem:[#allocation3 + $0xc0] sm:$0xff]   ;;  %v3097_v15 = vrot.slane %v6685_v34, %v9616_v12 }
  0x61   :  { %v213_v9 = vld [vmem:[#allocation3 + $0x1e0] sm:$0xff]   ;;  %v143_v10 = vld [vmem:[#allocation3 + $0xc8] sm:$0xff]   ;;  %v145_v13 = vld [vmem:[#allocation3 + $0xd0] sm:$0xff]  }
  0x62   :  { %5660 = vmatpush3.bf16.msra.mxu1 %v5657_v16  ;;  %v215_v11 = vld [vmem:[#allocation3 + $0x1e8] sm:$0xff]   ;;  %v217_v14 = vld [vmem:[#allocation3 + $0x1f0] sm:$0xff]   ;;  %v147_v16 = vld [vmem:[#allocation3 + $0xd8] sm:$0xff]  }
  0x63   :  { %5662 = vmatprep.subr.bf16.mxu1 %v5661_v24  ;;  %v219_v17 = vld [vmem:[#allocation3 + $0x1f8] sm:$0xff]   ;;  %v149_v18 = vld [vmem:[#allocation3 + $0xe0] sm:$0xff]   ;;  %v1314_v26 = vld [vmem:[#allocation7 + $0x18] sm:$0xff] }
  0x64   :  { %3049 = vbcast.lane.b32.xlu1 %v3027_v35, 296  ;;  %3064 = vbcast.lane.b32.xlu0 %v3062_v41, 256  ;;  %v1313_v25 = vld [vmem:[#allocation7 + $0x10] sm:$0xff] }
  0x65   :  { %5482 = vmatmul.mubr.msk.bf16.gmra.mrb[4].mxu0 %vm573_vm0, %v99_v19  ;;  %5554 = vmatmul.mubr.msk.bf16.gmra.mrb[4].mxu1 %vm573_vm0, %v171_v20  ;;  %v1311_v19 = vld [vmem:[#allocation7] sm:$0xff]  ;;  %v151_v20 = vld [vmem:[#allocation3 + $0xe8] sm:$0xff]  }
  0x66   :  { %5485 = vmatprep.mubr.msk.bf16.mxu0 %vm573_vm0, %v101_v22  ;;  %5557 = vmatprep.mubr.msk.bf16.mxu1 %vm573_vm0, %v173_v23  ;;  %v153_v22 = vld [vmem:[#allocation3 + $0xf0] sm:$0xff]   ;;  %v3132_v23 = vrot.slane %v6685_v34, %v9615_v21 }
  0x67   :  { %5664 = vmatpush3.bf16.msra.mxu1 %v5661_v24  ;;  %v1312_v24 = vld [vmem:[#allocation7 + $0x8] sm:$0xff] }
  0x68   :  { %5666 = vmatprep.subr.bf16.mxu1 %v5665_v28  ;;  %3057 = vbcast.lane.b32.xlu1 %v3027_v35, 312  ;;  %v1318_v35 = vld [vmem:[#allocation7 + $0x38] sm:$0xff] }
  0x69   :  { %3072 = vbcast.lane.b32.xlu0 %v3062_v41, 272 }
  0x6b   :  { %5668 = vmatpush3.bf16.msra.mxu1 %v5665_v28  ;;  %v155_v28 = vld [vmem:[#allocation3 + $0xf8] sm:$0xff]  }
  0x6c   :  { %3068 = vbcast.lane.b32.xlu1 %v3062_v41, 264 }
  0x6d   :  { %5486 = vmatmul.mubr.msk.bf16.gmra.mrb[8].mxu0 %vm573_vm0, %v103_v29  ;;  %5558 = vmatmul.mubr.msk.bf16.gmra.mrb[8].mxu1 %vm573_vm0, %v175_v30  ;;  %v1315_v29 = vld [vmem:[#allocation7 + $0x20] sm:$0xff]  ;;  %v157_v30 = vld [vmem:[#allocation3 + $0x100] sm:$0xff]  }
  0x6e   :  { %5489 = vmatprep.mubr.msk.bf16.mxu0 %vm573_vm0, %v105_v32  ;;  %5561 = vmatprep.mubr.msk.bf16.mxu1 %vm573_vm0, %v177_v33  ;;  %v1316_v32 = vld [vmem:[#allocation7 + $0x28] sm:$0xff]  ;;  %v1317_v33 = vld [vmem:[#allocation7 + $0x30] sm:$0xff] }
  0x6f   :  { %3080 = vbcast.lane.b32.xlu0 %v3062_v41, 288 }
  0x70   :  { %3076 = vbcast.lane.b32.xlu1 %v3062_v41, 280 }
  0x73   :  { %3088 = vbcast.lane.b32.xlu0 %v3062_v41, 304 }
  0x74   :  { %3084 = vbcast.lane.b32.xlu1 %v3062_v41, 296 }
  0x75   :  { %5490 = vmatmul.mubr.msk.bf16.gmra.mrb[12].mxu0 %vm573_vm0, %v107_v36  ;;  %5562 = vmatmul.mubr.msk.bf16.gmra.mrb[12].mxu1 %vm573_vm0, %v179_v37  ;;  %v159_v36 = vld [vmem:[#allocation3 + $0x108] sm:$0xff]   ;;  %v9614_v37 = vsub.s32 4, %v6678_v27 }
  0x76   :  { %5493 = vmatprep.mubr.msk.bf16.mxu0 %vm573_vm0, %v109_v38  ;;  %5565 = vmatprep.mubr.msk.bf16.mxu1 %vm573_vm0, %v181_v39  ;;  %v161_v38 = vld [vmem:[#allocation3 + $0x110] sm:$0xff]  }
  0x77   :  { %3099 = vbcast.lane.b32.xlu0 %v3097_v15, 256  ;;  %v3167_v39 = vrot.slane %v6685_v34, %v9614_v37 }
  0x78   :  { %3092 = vbcast.lane.b32.xlu1 %v3062_v41, 312  ;;  %v163_v41 = vld [vmem:[#allocation3 + $0x118] sm:$0xff]  }
  0x7b   :  { %3107 = vbcast.lane.b32.xlu0 %v3097_v15, 272 }
  0x7c   :  { %3103 = vbcast.lane.b32.xlu1 %v3097_v15, 264 }
  0x7d   :  { %5494 = vmatmul.mubr.msk.bf16.gmra.mrb[16].mxu0 %vm573_vm0, %v111_v42  ;;  %5566 = vmatmul.mubr.msk.bf16.gmra.mrb[16].mxu1 %vm573_vm0, %v183_v43  ;;  %v9613_v42 = vsub.s32 5, %v6678_v27 }
  0x7e   :  { %5497 = vmatprep.mubr.msk.bf16.mxu0 %vm573_vm0, %v113_v44  ;;  %5569 = vmatprep.mubr.msk.bf16.mxu1 %vm573_vm0, %v185_v45  ;;  %v9612_v44 = vsub.s32 6, %v6678_v27 }
  0x7f   :  { %3115 = vbcast.lane.b32.xlu0 %v3097_v15, 288  ;;  %v3202_v43 = vrot.slane %v6685_v34, %v9613_v42 }
  0x80   :  { %3111 = vbcast.lane.b32.xlu1 %v3097_v15, 280  ;;  %v3237_v45 = vrot.slane %v6685_v34, %v9612_v44 }
  0x83   :  { %3123 = vbcast.lane.b32.xlu0 %v3097_v15, 304 }
  0x84   :  { %3119 = vbcast.lane.b32.xlu1 %v3097_v15, 296 }
  0x85   :  { %5498 = vmatmul.mubr.msk.bf16.gmra.mrb[20].mxu0 %vm573_vm0, %v115_v46  ;;  %5570 = vmatmul.mubr.msk.bf16.gmra.mrb[20].mxu1 %vm573_vm0, %v187_v47  ;;  %v9611_v46 = vsub.s32 7, %v6678_v27 }
  0x86   :  { %5501 = vmatprep.mubr.msk.bf16.mxu0 %vm573_vm0, %v117_v48  ;;  %5573 = vmatprep.mubr.msk.bf16.mxu1 %vm573_vm0, %v189_v49  ;;  %v3023_v48 = vld [vmem:[#allocation5 + $0x8] sm:$0xff] }
  0x87   :  { %3134 = vbcast.lane.b32.xlu0 %v3132_v23, 256  ;;  %v3272_v47 = vrot.slane %v6685_v34, %v9611_v46  ;;  %v6782_v49 = vrot.slane %v3023_v48, %v3026_v31 }
  0x88   :  { %3127 = vbcast.lane.b32.xlu1 %v3097_v15, 312 }
  0x89   :  { %9647 = vst [vmem:[#allocation14_spill] sm:$0xff] %v6782_v49 }
  0x8b   :  { %3142 = vbcast.lane.b32.xlu0 %v3132_v23, 272 }
  0x8c   :  { %3138 = vbcast.lane.b32.xlu1 %v3132_v23, 264 }
  0x8d   :  { %5502 = vmatmul.mubr.msk.bf16.gmra.mrb[24].mxu0 %vm573_vm0, %v119_v50  ;;  %5574 = vmatmul.mubr.msk.bf16.gmra.mrb[24].mxu1 %vm573_vm0, %v191_v51 }
  0x8e   :  { %5505 = vmatprep.mubr.msk.bf16.mxu0 %vm573_vm0, %v121_v52  ;;  %5577 = vmatprep.mubr.msk.bf16.mxu1 %vm573_vm0, %v193_v53 }
  0x8f   :  { %3150 = vbcast.lane.b32.xlu0 %v3132_v23, 288 }
  0x90   :  { %3146 = vbcast.lane.b32.xlu1 %v3132_v23, 280 }
  0x93   :  { %3158 = vbcast.lane.b32.xlu0 %v3132_v23, 304 }
  0x94   :  { %3154 = vbcast.lane.b32.xlu1 %v3132_v23, 296 }
  0x95   :  { %5506 = vmatmul.mubr.msk.bf16.gmra.mrb[28].mxu0 %vm573_vm0, %v123_v54  ;;  %5578 = vmatmul.mubr.msk.bf16.gmra.mrb[28].mxu1 %vm573_vm0, %v195_v55 }
  0x96   :  { %5509 = vmatprep.mubr.msk.bf16.mxu0 %vm573_vm0, %v125_v56  ;;  %5581 = vmatprep.mubr.msk.bf16.mxu1 %vm573_vm0, %v197_v57 }
  0x97   :  { %3169 = vbcast.lane.b32.xlu0 %v3167_v39, 256 }
  0x98   :  { %3162 = vbcast.lane.b32.xlu1 %v3132_v23, 312 }
  0x9b   :  { %3177 = vbcast.lane.b32.xlu0 %v3167_v39, 272 }
  0x9c   :  { %3173 = vbcast.lane.b32.xlu1 %v3167_v39, 264 }
  0x9d   :  { %5510 = vmatmul.mubr.msk.bf16.gmra.mrb[32].mxu0 %vm573_vm0, %v127_v58  ;;  %5582 = vmatmul.mubr.msk.bf16.gmra.mrb[32].mxu1 %vm573_vm0, %v199_v59 }
  0x9e   :  { %5513 = vmatprep.mubr.msk.bf16.mxu0 %vm573_vm0, %v129_v60  ;;  %5585 = vmatprep.mubr.msk.bf16.mxu1 %vm573_vm0, %v201_v61 }
  0x9f   :  { %3185 = vbcast.lane.b32.xlu0 %v3167_v39, 288 }
  0xa0   :  { %3181 = vbcast.lane.b32.xlu1 %v3167_v39, 280 }
  0xa3   :  { %3193 = vbcast.lane.b32.xlu0 %v3167_v39, 304 }
  0xa4   :  { %3189 = vbcast.lane.b32.xlu1 %v3167_v39, 296 }
  0xa5   :  { %5514 = vmatmul.mubr.msk.bf16.gmra.mrb[36].mxu0 %vm573_vm0, %v131_v62  ;;  %5586 = vmatmul.mubr.msk.bf16.gmra.mrb[36].mxu1 %vm573_vm0, %v203_v63 }
  0xa6   :  { %5517 = vmatprep.mubr.msk.bf16.mxu0 %vm573_vm0, %v133_v0  ;;  %5589 = vmatprep.mubr.msk.bf16.mxu1 %vm573_vm0, %v205_v1 }
  0xa7   :  { %3204 = vbcast.lane.b32.xlu0 %v3202_v43, 256 }
  0xa8   :  { %3197 = vbcast.lane.b32.xlu1 %v3167_v39, 312 }
  0xab   :  { %3212 = vbcast.lane.b32.xlu0 %v3202_v43, 272 }
  0xac   :  { %3208 = vbcast.lane.b32.xlu1 %v3202_v43, 264 }
  0xad   :  { %5518 = vmatmul.mubr.msk.bf16.gmra.mrb[40].mxu0 %vm573_vm0, %v135_v2  ;;  %5590 = vmatmul.mubr.msk.bf16.gmra.mrb[40].mxu1 %vm573_vm0, %v207_v3 }
  0xae   :  { %5521 = vmatprep.mubr.msk.bf16.mxu0 %vm573_vm0, %v137_v4  ;;  %5593 = vmatprep.mubr.msk.bf16.mxu1 %vm573_vm0, %v209_v5 }
  0xaf   :  { %3220 = vbcast.lane.b32.xlu0 %v3202_v43, 288 }
  0xb0   :  { %3216 = vbcast.lane.b32.xlu1 %v3202_v43, 280 }
  0xb3   :  { %3228 = vbcast.lane.b32.xlu0 %v3202_v43, 304 }
  0xb4   :  { %3224 = vbcast.lane.b32.xlu1 %v3202_v43, 296 }
  0xb5   :  { %5522 = vmatmul.mubr.msk.bf16.gmra.mrb[44].mxu0 %vm573_vm0, %v139_v6  ;;  %5594 = vmatmul.mubr.msk.bf16.gmra.mrb[44].mxu1 %vm573_vm0, %v211_v7 }
  0xb6   :  { %5525 = vmatprep.mubr.msk.bf16.mxu0 %vm573_vm0, %v141_v8  ;;  %5597 = vmatprep.mubr.msk.bf16.mxu1 %vm573_vm0, %v213_v9 }
  0xb7   :  { %3239 = vbcast.lane.b32.xlu0 %v3237_v45, 256 }
  0xb8   :  { %3232 = vbcast.lane.b32.xlu1 %v3202_v43, 312 }
  0xbb   :  { %3247 = vbcast.lane.b32.xlu0 %v3237_v45, 272 }
  0xbc   :  { %3243 = vbcast.lane.b32.xlu1 %v3237_v45, 264 }
  0xbd   :  { %5526 = vmatmul.mubr.msk.bf16.gmra.mrb[48].mxu0 %vm573_vm0, %v143_v10  ;;  %5598 = vmatmul.mubr.msk.bf16.gmra.mrb[48].mxu1 %vm573_vm0, %v215_v11 }
  0xbe   :  { %5529 = vmatprep.mubr.msk.bf16.mxu0 %vm573_vm0, %v145_v13  ;;  %5601 = vmatprep.mubr.msk.bf16.mxu1 %vm573_vm0, %v217_v14 }
  0xbf   :  { %3255 = vbcast.lane.b32.xlu0 %v3237_v45, 288 }
  0xc0   :  { %3251 = vbcast.lane.b32.xlu1 %v3237_v45, 280 }
  0xc3   :  { %3263 = vbcast.lane.b32.xlu0 %v3237_v45, 304 }
  0xc4   :  { %3259 = vbcast.lane.b32.xlu1 %v3237_v45, 296 }
  0xc5   :  { %5530 = vmatmul.mubr.msk.bf16.gmra.mrb[52].mxu0 %vm573_vm0, %v147_v16  ;;  %5602 = vmatmul.mubr.msk.bf16.gmra.mrb[52].mxu1 %vm573_vm0, %v219_v17 }
  0xc6   :  { %5533 = vmatprep.mubr.msk.bf16.mxu0 %vm573_vm0, %v149_v18  ;;  %5621 = vmatprep.mubr.msk.f32.mxu1 %vm573_vm0, %v1311_v19 }
  0xc7   :  { %3274 = vbcast.lane.b32.xlu0 %v3272_v47, 256 }
  0xc8   :  { %3267 = vbcast.lane.b32.xlu1 %v3237_v45, 312 }
  0xcb   :  { %3282 = vbcast.lane.b32.xlu0 %v3272_v47, 272 }
  0xcc   :  { %3278 = vbcast.lane.b32.xlu1 %v3272_v47, 264 }
  0xcd   :  { %5534 = vmatmul.mubr.msk.bf16.gmra.mrb[56].mxu0 %vm573_vm0, %v151_v20  ;;  %5622 = vmatmul.mubr.msk.f32.vlgmr.msra.gmra.mrb[56].mxu1 %vm573_vm0, %v1312_v24 }
  0xce   :  { %5624 = vmatprep.mubr.msk.f32.mxu1 %vm573_vm0, %v1313_v25  ;;  %5537 = vmatprep.mubr.msk.bf16.mxu0 %vm573_vm0, %v153_v22 }
  0xcf   :  { %3290 = vbcast.lane.b32.xlu0 %v3272_v47, 288 }
  0xd0   :  { %3286 = vbcast.lane.b32.xlu1 %v3272_v47, 280 }
  0xd1   :  { %5625 = vmatmul.mubr.msk.f32.gmra.mrb[58].mxu1 %vm573_vm0, %v1314_v26 }
  0xd2   :  { %5627 = vmatprep.mubr.msk.f32.mxu1 %vm573_vm0, %v1315_v29 }
  0xd3   :  { %3298 = vbcast.lane.b32.xlu0 %v3272_v47, 304 }
  0xd4   :  { %3294 = vbcast.lane.b32.xlu1 %v3272_v47, 296 }
  0xd5   :  { %5538 = vmatmul.mubr.msk.bf16.gmra.mrb[60].mxu0 %vm573_vm0, %v155_v28  ;;  %5628 = vmatmul.mubr.msk.f32.gmra.mrb[60].mxu1 %vm573_vm0, %v1316_v32 }
  0xd6   :  { %5630 = vmatprep.mubr.msk.f32.mxu1 %vm573_vm0, %v1317_v33  ;;  %5541 = vmatprep.mubr.msk.bf16.mxu0 %vm573_vm0, %v157_v30 }
  0xd7   :  { %3309 = vbcast.lane.b32.xlu0 %v6782_v49, 256 }
  0xd8   :  { %3302 = vbcast.lane.b32.xlu1 %v3272_v47, 312 }
  0xd9   :  { %5631 = vmatmul.mubr.msk.f32.gmra.mrb[62].mxu1 %vm573_vm0, %v1318_v35 }
  0xdb   :  { %3317 = vbcast.lane.b32.xlu0 %v6782_v49, 272 }
  0xdc   :  { %3313 = vbcast.lane.b32.xlu1 %v6782_v49, 264 }
  0xdd   :  { %5542 = vmatmul.mubr.msk.bf16.gmra.mrb[64].mxu0 %vm573_vm0, %v159_v36 }
  0xde   :  { %5545 = vmatprep.mubr.msk.bf16.mxu0 %vm573_vm0, %v161_v38 }
  0xdf   :  { %3325 = vbcast.lane.b32.xlu0 %v6782_v49, 288 }
  0xe0   :  { %3321 = vbcast.lane.b32.xlu1 %v6782_v49, 280 }
  0xe5   :  { %5546 = vmatmul.mubr.msk.bf16.gmra.mrb[68].mxu0 %vm573_vm0, %v163_v41 }
 0x130   :  { %v6789_v34 = vpop.f32.mrb[0].mxu1  ;;  %v6791_v50 = vpop.f32.mrb[0].mxu0 }
 0x131   :  { %9648 = vst [vmem:[#allocation15_spill] sm:$0xff] %v6791_v50  ;;  %v6793_v51 = vpop.f32.mrb[1].mxu1  ;;  %v6795_v52 = vpop.f32.mrb[1].mxu0 }
 0x132   :  { %v6797_v31 = vpop.f32.mrb[2].mxu1  ;;  %v6799_v53 = vpop.f32.mrb[2].mxu0 }
 0x133   :  { %v6801_v54 = vpop.f32.mrb[3].mxu1  ;;  %v6803_v55 = vpop.f32.mrb[3].mxu0 }
 0x138   :  { %v6805_v56 = vpop.f32.mrb[4].mxu1  ;;  %v6807_v57 = vpop.f32.mrb[4].mxu0 }
 0x139   :  { %9649 = vst [vmem:[#allocation16_spill] sm:$0xff] %v6805_v56  ;;  %9650 = vst [vmem:[#allocation17_spill] sm:$0xff] %v6807_v57  ;;  %v6809_v58 = vpop.f32.mrb[5].mxu1  ;;  %v6811_v59 = vpop.f32.mrb[5].mxu0 }
 0x13a   :  { %9651 = vst [vmem:[#allocation18_spill] sm:$0xff] %v6809_v58  ;;  %9652 = vst [vmem:[#allocation19_spill] sm:$0xff] %v6811_v59  ;;  %v6813_v60 = vpop.f32.mrb[6].mxu1  ;;  %v6815_v61 = vpop.f32.mrb[6].mxu0 }
 0x13b   :  { %9653 = vst [vmem:[#allocation20_spill] sm:$0xff] %v6813_v60  ;;  %9654 = vst [vmem:[#allocation21_spill] sm:$0xff] %v6815_v61  ;;  %v6817_v62 = vpop.f32.mrb[7].mxu1  ;;  %v6819_v63 = vpop.f32.mrb[7].mxu0 }
 0x13c   :  { %9655 = vst [vmem:[#allocation22_spill] sm:$0xff] %v6817_v62  ;;  %9656 = vst [vmem:[#allocation23_spill] sm:$0xff] %v6819_v63 }
 0x140   :  { %v6821_v0 = vpop.f32.mrb[8].mxu1  ;;  %v6823_v1 = vpop.f32.mrb[8].mxu0 }
 0x141   :  { %v6825_v2 = vpop.f32.mrb[9].mxu1  ;;  %v6827_v3 = vpop.f32.mrb[9].mxu0 }
 0x142   :  { %v6829_v4 = vpop.f32.mrb[10].mxu1  ;;  %v6831_v5 = vpop.f32.mrb[10].mxu0 }
 0x143   :  { %v6833_v6 = vpop.f32.mrb[11].mxu1  ;;  %v6835_v7 = vpop.f32.mrb[11].mxu0 }
 0x148   :  { %v6837_v8 = vpop.f32.mrb[12].mxu1  ;;  %v6839_v9 = vpop.f32.mrb[12].mxu0 }
 0x149   :  { %9657 = vst [vmem:[#allocation24_spill] sm:$0xff] %v6837_v8  ;;  %9658 = vst [vmem:[#allocation25_spill] sm:$0xff] %v6839_v9  ;;  %v6841_v10 = vpop.f32.mrb[13].mxu1  ;;  %v6843_v11 = vpop.f32.mrb[13].mxu0 }
 0x14a   :  { %9659 = vst [vmem:[#allocation26_spill] sm:$0xff] %v6841_v10  ;;  %9660 = vst [vmem:[#allocation27_spill] sm:$0xff] %v6843_v11  ;;  %v6845_v13 = vpop.f32.mrb[14].mxu1  ;;  %v6847_v14 = vpop.f32.mrb[14].mxu0 }
 0x14b   :  { %9661 = vst [vmem:[#allocation28_spill] sm:$0xff] %v6845_v13  ;;  %9662 = vst [vmem:[#allocation29_spill] sm:$0xff] %v6847_v14  ;;  %v6849_v15 = vpop.f32.mrb[15].mxu1  ;;  %v6851_v16 = vpop.f32.mrb[15].mxu0 }
 0x14c   :  { %9663 = vst [vmem:[#allocation30_spill] sm:$0xff] %v6849_v15  ;;  %9664 = vst [vmem:[#allocation31_spill] sm:$0xff] %v6851_v16 }
 0x150   :  { %v6853_v17 = vpop.f32.mrb[16].mxu1  ;;  %v6855_v18 = vpop.f32.mrb[16].mxu0 }
 0x151   :  { %9665 = vst [vmem:[#allocation32_spill] sm:$0xff] %v6853_v17  ;;  %v6857_v19 = vpop.f32.mrb[17].mxu1  ;;  %v6859_v20 = vpop.f32.mrb[17].mxu0 }
 0x152   :  { %v6861_v22 = vpop.f32.mrb[18].mxu1  ;;  %v6863_v23 = vpop.f32.mrb[18].mxu0 }
 0x153   :  { %9666 = vst [vmem:[#allocation33_spill] sm:$0xff] %v6861_v22  ;;  %v6865_v24 = vpop.f32.mrb[19].mxu1  ;;  %v6867_v25 = vpop.f32.mrb[19].mxu0 }
 0x158   :  { %v6869_v26 = vpop.f32.mrb[20].mxu1  ;;  %v6871_v28 = vpop.f32.mrb[20].mxu0 }
 0x159   :  { %9667 = vst [vmem:[#allocation34_spill] sm:$0xff] %v6869_v26  ;;  %9668 = vst [vmem:[#allocation35_spill] sm:$0xff] %v6871_v28  ;;  %v6873_v29 = vpop.f32.mrb[21].mxu1  ;;  %v6875_v30 = vpop.f32.mrb[21].mxu0 }
 0x15a   :  { %9669 = vst [vmem:[#allocation36_spill] sm:$0xff] %v6873_v29  ;;  %9670 = vst [vmem:[#allocation37_spill] sm:$0xff] %v6875_v30  ;;  %v6877_v32 = vpop.f32.mrb[22].mxu1  ;;  %v6879_v33 = vpop.f32.mrb[22].mxu0 }
 0x15b   :  { %9671 = vst [vmem:[#allocation38_spill] sm:$0xff] %v6877_v32  ;;  %9672 = vst [vmem:[#allocation39_spill] sm:$0xff] %v6879_v33  ;;  %v6881_v35 = vpop.f32.mrb[23].mxu1  ;;  %v6883_v36 = vpop.f32.mrb[23].mxu0 }
 0x15c   :  { %9673 = vst [vmem:[#allocation40_spill] sm:$0xff] %v6881_v35  ;;  %9674 = vst [vmem:[#allocation41_spill] sm:$0xff] %v6883_v36  ;;  %v6951_v29 = vpop.permute.xlu0 %3029 }
 0x15d   :  { %9696 = vst [vmem:[#allocation63_spill] sm:$0xff] %v6951_v29 }
 0x160   :  { %v6885_v38 = vpop.f32.mrb[24].mxu1  ;;  %v6887_v39 = vpop.f32.mrb[24].mxu0 }
 0x161   :  { %9675 = vst [vmem:[#allocation42_spill] sm:$0xff] %v6885_v38  ;;  %v6889_v41 = vpop.f32.mrb[25].mxu1  ;;  %v6891_v43 = vpop.f32.mrb[25].mxu0 }
 0x162   :  { %v6893_v45 = vpop.f32.mrb[26].mxu1  ;;  %v6895_v47 = vpop.f32.mrb[26].mxu0 }
 0x163   :  { %9676 = vst [vmem:[#allocation43_spill] sm:$0xff] %v6893_v45  ;;  %v6897_v48 = vpop.f32.mrb[27].mxu1  ;;  %v6899_v46 = vpop.f32.mrb[27].mxu0 }
 0x168   :  { %v6901_v44 = vpop.f32.mrb[28].mxu1  ;;  %v6903_v42 = vpop.f32.mrb[28].mxu0 }
 0x169   :  { %9677 = vst [vmem:[#allocation44_spill] sm:$0xff] %v6901_v44  ;;  %9678 = vst [vmem:[#allocation45_spill] sm:$0xff] %v6903_v42  ;;  %v6905_v37 = vpop.f32.mrb[29].mxu1  ;;  %v6907_v21 = vpop.f32.mrb[29].mxu0 }
 0x16a   :  { %9679 = vst [vmem:[#allocation46_spill] sm:$0xff] %v6905_v37  ;;  %9680 = vst [vmem:[#allocation47_spill] sm:$0xff] %v6907_v21  ;;  %v6909_v12 = vpop.f32.mrb[30].mxu1  ;;  %v6911_v40 = vpop.f32.mrb[30].mxu0 }
 0x16b   :  { %9681 = vst [vmem:[#allocation48_spill] sm:$0xff] %v6909_v12  ;;  %9682 = vst [vmem:[#allocation49_spill] sm:$0xff] %v6911_v40  ;;  %v6913_v27 = vpop.f32.mrb[31].mxu1  ;;  %v6915_v49 = vpop.f32.mrb[31].mxu0 }
 0x16c   :  { %9683 = vst [vmem:[#allocation50_spill] sm:$0xff] %v6913_v27  ;;  %9684 = vst [vmem:[#allocation51_spill] sm:$0xff] %v6915_v49  ;;  %v6949_v37 = vpop.permute.xlu1 %3033 }
 0x16d   :  { %9695 = vst [vmem:[#allocation62_spill] sm:$0xff] %v6949_v37  ;;  %v6971_v37 = vpop.permute.xlu0 %3045 }
 0x16e   :  { %9700 = vst [vmem:[#allocation67_spill] sm:$0xff] %v6971_v37 }
 0x170   :  { %v6917_v32 = vpop.f32.mrb[32].mxu1  ;;  %v6919_v26 = vpop.f32.mrb[32].mxu0 }
 0x171   :  { %9685 = vst [vmem:[#allocation52_spill] sm:$0xff] %v6917_v32  ;;  %v6921_v13 = vpop.f32.mrb[33].mxu1  ;;  %v6923_v44 = vpop.f32.mrb[33].mxu0 }
 0x172   :  { %v6925_v8 = vpop.f32.mrb[34].mxu1  ;;  %v6927_v60 = vpop.f32.mrb[34].mxu0 }
 0x173   :  { %9686 = vst [vmem:[#allocation53_spill] sm:$0xff] %v6925_v8  ;;  %v6929_v56 = vpop.f32.mrb[35].mxu1  ;;  %v6931_v12 = vpop.f32.mrb[35].mxu0 }
 0x174   :  { %v6969_v35 = vpop.permute.xlu1 %3037 }
 0x175   :  { %9699 = vst [vmem:[#allocation66_spill] sm:$0xff] %v6969_v35  ;;  %v6991_v35 = vpop.permute.xlu0 %3053 }
 0x176   :  { %9710 = vst [vmem:[#allocation77_spill] sm:$0xff] %v6991_v35 }
 0x178   :  { %v6933_v40 = vpop.f32.mrb[36].mxu1  ;;  %v6935_v42 = vpop.f32.mrb[36].mxu0 }
 0x179   :  { %9687 = vst [vmem:[#allocation54_spill] sm:$0xff] %v6933_v40  ;;  %9688 = vst [vmem:[#allocation55_spill] sm:$0xff] %v6935_v42  ;;  %v6937_v33 = vpop.f32.mrb[37].mxu1  ;;  %v6939_v28 = vpop.f32.mrb[37].mxu0 }
 0x17a   :  { %9689 = vst [vmem:[#allocation56_spill] sm:$0xff] %v6937_v33  ;;  %9690 = vst [vmem:[#allocation57_spill] sm:$0xff] %v6939_v28  ;;  %v6941_v14 = vpop.f32.mrb[38].mxu1  ;;  %v6943_v9 = vpop.f32.mrb[38].mxu0 }
 0x17b   :  { %9691 = vst [vmem:[#allocation58_spill] sm:$0xff] %v6941_v14  ;;  %9692 = vst [vmem:[#allocation59_spill] sm:$0xff] %v6943_v9  ;;  %v6945_v61 = vpop.f32.mrb[39].mxu1  ;;  %v6947_v57 = vpop.f32.mrb[39].mxu0 }
 0x17c   :  { %9693 = vst [vmem:[#allocation60_spill] sm:$0xff] %v6945_v61  ;;  %9694 = vst [vmem:[#allocation61_spill] sm:$0xff] %v6947_v57  ;;  %v6989_v36 = vpop.permute.xlu1 %3041 }
 0x17d   :  { %9709 = vst [vmem:[#allocation76_spill] sm:$0xff] %v6989_v36  ;;  %v7009_v36 = vpop.permute.xlu0 %3064 }
 0x17e   :  { %9714 = vst [vmem:[#allocation81_spill] sm:$0xff] %v7009_v36  ;;  %v5233_v36 = vld [vmem:[%s9606_s6] ss:$0 sm:$0xff] }
 0x180   :  { %v6953_v27 = vpop.f32.mrb[40].mxu1  ;;  %v6955_v40 = vpop.f32.mrb[40].mxu0 }
 0x181   :  { %9697 = vst [vmem:[#allocation64_spill] sm:$0xff] %v6953_v27  ;;  %v6957_v42 = vpop.f32.mrb[41].mxu1  ;;  %v6959_v33 = vpop.f32.mrb[41].mxu0 }
 0x182   :  { %v6961_v10 = vpop.f32.mrb[42].mxu1  ;;  %v6963_v14 = vpop.f32.mrb[42].mxu0 }
 0x183   :  { %9698 = vst [vmem:[#allocation65_spill] sm:$0xff] %v6961_v10  ;;  %v6965_v9 = vpop.f32.mrb[43].mxu1  ;;  %v6967_v61 = vpop.f32.mrb[43].mxu0 }
 0x188   :  { %v6973_v29 = vpop.f32.mrb[44].mxu1  ;;  %v6975_v58 = vpop.f32.mrb[44].mxu0 }
 0x189   :  { %9701 = vst [vmem:[#allocation68_spill] sm:$0xff] %v6973_v29  ;;  %9702 = vst [vmem:[#allocation69_spill] sm:$0xff] %v6975_v58  ;;  %v6977_v15 = vpop.f32.mrb[45].mxu1  ;;  %v6979_v62 = vpop.f32.mrb[45].mxu0 }
 0x18a   :  { %9703 = vst [vmem:[#allocation70_spill] sm:$0xff] %v6977_v15  ;;  %9704 = vst [vmem:[#allocation71_spill] sm:$0xff] %v6979_v62  ;;  %v6981_v57 = vpop.f32.mrb[46].mxu1  ;;  %v6983_v28 = vpop.f32.mrb[46].mxu0 }
 0x18b   :  { %9705 = vst [vmem:[#allocation72_spill] sm:$0xff] %v6981_v57  ;;  %9706 = vst [vmem:[#allocation73_spill] sm:$0xff] %v6983_v28  ;;  %v6985_v49 = vpop.f32.mrb[47].mxu1  ;;  %v6987_v21 = vpop.f32.mrb[47].mxu0 }
 0x18c   :  { %9707 = vst [vmem:[#allocation74_spill] sm:$0xff] %v6985_v49  ;;  %9708 = vst [vmem:[#allocation75_spill] sm:$0xff] %v6987_v21  ;;  %v7007_v21 = vpop.permute.xlu1 %3049 }
 0x18d   :  { %9713 = vst [vmem:[#allocation80_spill] sm:$0xff] %v7007_v21 }
 0x190   :  { %v6993_v37 = vpop.f32.mrb[48].mxu1  ;;  %v6995_v29 = vpop.f32.mrb[48].mxu0 }
 0x191   :  { %9711 = vst [vmem:[#allocation78_spill] sm:$0xff] %v6993_v37  ;;  %v6997_v58 = vpop.f32.mrb[49].mxu1  ;;  %v6999_v15 = vpop.f32.mrb[49].mxu0 }
 0x192   :  { %v7001_v62 = vpop.f32.mrb[50].mxu1  ;;  %v7003_v57 = vpop.f32.mrb[50].mxu0 }
 0x193   :  { %9712 = vst [vmem:[#allocation79_spill] sm:$0xff] %v7001_v62  ;;  %v7005_v28 = vpop.f32.mrb[51].mxu1  ;;  %v995_v49 = vpop.f32.mrb[51].mxu0 }
 0x194   :  { %v7030_v21 = vpop.permute.xlu1 %3057 }
 0x195   :  { %9723 = vst [vmem:[#allocation90_spill] sm:$0xff] %v7030_v21 }
 0x198   :  { %v7011_v35 = vpop.f32.mrb[52].mxu1  ;;  %v7013_v30 = vpop.f32.mrb[52].mxu0 }
 0x199   :  { %9715 = vst [vmem:[#allocation82_spill] sm:$0xff] %v7011_v35  ;;  %9716 = vst [vmem:[#allocation83_spill] sm:$0xff] %v7013_v30  ;;  %v7015_v16 = vpop.f32.mrb[53].mxu1  ;;  %v7017_v11 = vpop.f32.mrb[53].mxu0 }
 0x19a   :  { %9717 = vst [vmem:[#allocation84_spill] sm:$0xff] %v7015_v16  ;;  %9718 = vst [vmem:[#allocation85_spill] sm:$0xff] %v7017_v11  ;;  %v7019_v63 = vpop.f32.mrb[54].mxu1  ;;  %v7021_v59 = vpop.f32.mrb[54].mxu0 }
 0x19b   :  { %9719 = vst [vmem:[#allocation86_spill] sm:$0xff] %v7019_v63  ;;  %9720 = vst [vmem:[#allocation87_spill] sm:$0xff] %v7021_v59  ;;  %v7023_v50 = vpop.f32.mrb[55].mxu1  ;;  %v7025_v37 = vpop.f32.mrb[55].mxu0 }
 0x19c   :  { %9721 = vst [vmem:[#allocation88_spill] sm:$0xff] %v7023_v50  ;;  %9722 = vst [vmem:[#allocation89_spill] sm:$0xff] %v7025_v37  ;;  %v7032_v35 = vpop.permute.xlu0 %3072  ;;  %v7077_v17 = vpop.permute.xlu1 %3068 }
 0x19d   :  { %9724 = vst [vmem:[#allocation91_spill] sm:$0xff] %v7032_v35  ;;  %9729 = vst [vmem:[#allocation96_spill] sm:$0xff] %v7077_v17 }
 0x1a0   :  { %v7034_v30 = vpop.f32.mrb[56].mxu0  ;;  %v7036_v16 = vpop.f32.mrb[56].mxu1 }
 0x1a1   :  { %9725 = vst [vmem:[#allocation92_spill] sm:$0xff] %v7036_v16  ;;  %v7039_v63 = vadd.f32 %v7036_v16, %v5233_v36  ;;  %v1024_v59 = vpop.f32.mrb[57].mxu0  ;;  %v7041_v11 = vpop.f32.mrb[57].mxu1 }
 0x1a2   :  { %9726 = vst [vmem:[#allocation93_spill] sm:$0xff] %v7041_v11  ;;  %v7044_v50 = vadd.f32 %v5233_v36, %v7041_v11  ;;  %v7046_v37 = vpop.f32.mrb[58].mxu0 }
 0x1a3   :  { %v1027_v62 = vpop.f32.mrb[59].mxu0  ;;  %v1472_v21 = vadd.f32 %v7039_v63, %v6803_v55  ;;  %v1480_v35 = vadd.f32 %v7039_v63, %v6835_v7  ;;  %v1488_v27 = vadd.f32 %v7039_v63, %v6867_v25  ;;  %v1496_v16 = vadd.f32 %v7039_v63, %v6899_v46 }
 0x1a4   :  { %v7057_v10 = vadd.f32 %v7039_v63, %v1027_v62  ;;  %v7059_v11 = vpop.f32.mrb[58].mxu1  ;;  %v1471_v32 = vadd.f32 %v7044_v50, %v6795_v52  ;;  %v1479_v55 = vadd.f32 %v7044_v50, %v6827_v3  ;;  %v1487_v7 = vadd.f32 %v7044_v50, %v6859_v20  ;;  %v7079_v3 = vpop.permute.xlu0 %3080 }
 0x1a5   :  { %9727 = vst [vmem:[#allocation94_spill] sm:$0xff] %v7059_v11  ;;  %v7068_v8 = vadd.f32 %v7059_v11, %v5233_v36  ;;  %v7070_v25 = vpop.f32.mrb[59].mxu1  ;;  %v5235_v46 = vmul.f32 -1.442695, %v1472_v21  ;;  %v5243_v38 = vmul.f32 -1.442695, %v1480_v35  ;;  %v1504_v62 = vadd.f32 %v7039_v63, %v6931_v12 }
 0x1a6   :  { %9728 = vst [vmem:[#allocation95_spill] sm:$0xff] %v7070_v25  ;;  %v7075_v45 = vadd.f32 %v5233_v36, %v7070_v25  ;;  %v5234_v52 = vmul.f32 -1.442695, %v1471_v32  ;;  %9730 = vst [vmem:[#allocation97_spill] sm:$0xff] %v7079_v3  ;;  %v5251_v20 = vmul.f32 -1.442695, %v1488_v27  ;;  %v1495_v21 = vadd.f32 %v7044_v50, %v6891_v43 }
 0x1a7   :  { %5830 = vpow2.f32 %v5235_v46  ;;  %v7089_v12 = vadd.f32 %v7039_v63, %v6967_v61  ;;  %v7100_v27 = vadd.f32 %v7044_v50, %v6923_v44  ;;  %v7103_v46 = vadd.f32 %v7039_v63, %v995_v49 }
 0x1a8   :  { %v7081_v22 = vpop.f32.mrb[60].mxu1  ;;  %v7083_v11 = vpop.f32.mrb[60].mxu0  ;;  %5832 = vpow2.f32 %v5243_v38  ;;  %v7114_v38 = vadd.f32 %v7044_v50, %v6959_v33  ;;  %v5259_v44 = vmul.f32 -1.442695, %v1496_v16  ;;  %v7120_v49 = vadd.f32 %v7039_v63, %v6801_v54 }
 0x1a9   :  { %9731 = vst [vmem:[#allocation98_spill] sm:$0xff] %v7081_v22  ;;  %9732 = vst [vmem:[#allocation99_spill] sm:$0xff] %v7083_v11  ;;  %v7092_v35 = vadd.f32 %v7081_v22, %v5233_v36  ;;  %v7094_v32 = vpop.f32.mrb[61].mxu1  ;;  %v7096_v25 = vpop.f32.mrb[61].mxu0  ;;  %5834 = vpow2.f32 %v5234_v52  ;;  %v5242_v22 = vmul.f32 -1.442695, %v1479_v55 }
 0x1aa   :  { %9733 = vst [vmem:[#allocation100_spill] sm:$0xff] %v7094_v32  ;;  %v7106_v43 = vadd.f32 %v5233_v36, %v7094_v32  ;;  %v7108_v61 = vpop.f32.mrb[62].mxu0  ;;  %5836 = vpow2.f32 %v5251_v20  ;;  %v7122_v32 = vpop.permute.xlu1 %3076  ;;  %v5250_v52 = vmul.f32 -1.442695, %v1487_v7  ;;  %v7131_v20 = vadd.f32 %v7044_v50, %v6999_v15 }
 0x1ab   :  { %9734 = vst [vmem:[#allocation101_spill] sm:$0xff] %v7108_v61  ;;  %v7110_v3 = vpop.f32.mrb[63].mxu0  ;;  %9736 = vst [vmem:[#allocation103_spill] sm:$0xff] %v7122_v32  ;;  %v7133_v33 = vpop.permute.xlu0 %3088  ;;  %5838 = vpow2.f32 %v5242_v22  ;;  %v7140_v32 = vadd.f32 %v7039_v63, %v6833_v6  ;;  %v7147_v7 = vadd.f32 %v7044_v50, %v1024_v59  ;;  %v7154_v22 = vadd.f32 %v7039_v63, %v6897_v48 }
 0x1ac   :  { %v7116_v17 = vpop.f32.mrb[62].mxu1  ;;  %9739 = vst [vmem:[#allocation106_spill] sm:$0xff] %v7133_v33  ;;  %5840 = vpow2.f32 %v5259_v44 }
 0x1ad   :  { %9735 = vst [vmem:[#allocation102_spill] sm:$0xff] %v7116_v17  ;;  %v7125_v11 = vadd.f32 %v7116_v17, %v5233_v36  ;;  %v7127_v55 = vpop.f32.mrb[63].mxu1  ;;  %v7144_v17 = vadd.f32 %v7039_v63, %v6865_v24  ;;  %5842 = vpow2.f32 %v5250_v52  ;;  %v5267_v24 = vmul.f32 -1.442695, %v1504_v62 }
 0x1ae   :  { %9738 = vst [vmem:[#allocation105_spill] sm:$0xff] %v7127_v55  ;;  %v7136_v16 = vadd.f32 %v5233_v36, %v7127_v55  ;;  %v7171_v62 = vadd.f32 %v7044_v50, %v6793_v51 }
 0x1af   :  { %9737 = vst [vmem:[#allocation104_spill] sm:$0xff] %v7125_v11  ;;  %v7159_v11 = vpop.permute.xlu1 %3084  ;;  %v7164_v52 = vpop.permute.xlu0 %3099 }
 0x1b0   :  { %9740 = vst [vmem:[#allocation107_spill] sm:$0xff] %v7136_v16  ;;  %v5543_v54 = vpop.f32.mrb[64].mxu0  ;;  %9743 = vst [vmem:[#allocation110_spill] sm:$0xff] %v7159_v11 }
 0x1b1   :  { %v5831_v15 = vpop.eup %5830  ;;  %v7150_v33 = vadd.f32 %v5543_v54, %v7075_v45  ;;  %v1056_v36 = vpop.f32.mrb[65].mxu0  ;;  %9744 = vst [vmem:[#allocation111_spill] sm:$0xff] %v7164_v52  ;;  %v7197_v52 = vadd.f32 %v7044_v50, %v6857_v19  ;;  %v7216_v19 = vadd.f32 %v7044_v50, %v6921_v13  ;;  %v7233_v13 = vadd.f32 %v7044_v50, %v6997_v58 }
 0x1b2   :  { %v7157_v6 = vadd.f32 %v7044_v50, %v1056_v36  ;;  %v5544_v44 = vpop.f32.mrb[66].mxu0  ;;  %v1984_v55 = vadd.f32 1.0, %v5831_v15  ;;  %v5833_v61 = vpop.eup %5832 }
 0x1b3   :  { %9741 = vst [vmem:[#allocation108_spill] sm:$0xff] %v7150_v33  ;;  %v7162_v59 = vadd.f32 %v5544_v44, %v7068_v8  ;;  %v1059_v54 = vpop.f32.mrb[67].mxu0  ;;  %v5258_v33 = vmul.f32 -1.442695, %v1495_v21  ;;  %v5835_v16 = vpop.eup %5834  ;;  %v7175_v21 = vadd.f32 %v7039_v63, %v6929_v56 }
 0x1b4   :  { %9742 = vst [vmem:[#allocation109_spill] sm:$0xff] %v7157_v6  ;;  %v7167_v48 = vadd.f32 %v7039_v63, %v1059_v54  ;;  %5844 = vrcp.f32 %v1984_v55  ;;  %v5837_v36 = vpop.eup %5836  ;;  %v1992_v6 = vadd.f32 1.0, %v5833_v61  ;;  %v1983_v15 = vadd.f32 1.0, %v5835_v16  ;;  %v7183_v61 = vpop.permute.xlu1 %3092 }
 0x1b5   :  { %5846 = vpow2.f32 %v5267_v24  ;;  %v5839_v44 = vpop.eup %5838  ;;  %v2000_v11 = vadd.f32 1.0, %v5837_v36  ;;  %v7179_v54 = vadd.f32 %v7044_v50, %v6825_v2  ;;  %9745 = vst [vmem:[#allocation112_spill] sm:$0xff] %v7183_v61  ;;  %v7191_v24 = vpop.permute.xlu0 %3107 }
 0x1b6   :  { %5848 = vpow2.f32 %v5258_v33  ;;  %v7187_v33 = vadd.f32 %v7039_v63, %v6965_v9  ;;  %v5841_v16 = vpop.eup %5840  ;;  %9747 = vst [vmem:[#allocation114_spill] sm:$0xff] %v7191_v24  ;;  %v1991_v2 = vadd.f32 1.0, %v5839_v44  ;;  %v7204_v9 = vld [vmem:[%s9607_s7] ss:$0 sm:$0xff] }
 0x1b7   :  { %5850 = vrcp.f32 %v1992_v6  ;;  %v5843_v36 = vpop.eup %5842  ;;  %v7208_v6 = vadd.f32 %v7039_v63, %v7005_v28  ;;  %v2008_v44 = vadd.f32 1.0, %v5841_v16  ;;  %v7223_v63 = vadd.f32 %v7044_v50, %v6957_v42 }
 0x1b8   :  { %v7181_v55 = vpop.f32.mrb[68].mxu0  ;;  %5852 = vrcp.f32 %v1983_v15  ;;  %v7212_v15 = vadd.f32 %v7044_v50, %v6889_v41  ;;  %v7229_v16 = vadd.f32 %v6799_v53, %v7068_v8  ;;  %v7247_v50 = vadd.f32 %v6863_v23, %v7068_v8 }
 0x1b9   :  { %v7189_v51 = vpop.f32.mrb[69].mxu0  ;;  %5854 = vrcp.f32 %v2000_v11  ;;  %v7225_v41 = vpop.permute.xlu0 %3115  ;;  %v5266_v23 = vmul.f32 -1.442695, %v7100_v27  ;;  %v7272_v27 = vadd.f32 %v6887_v39, %v7075_v45  ;;  %v5315_v39 = vmul.f32 -1.442695, %v7140_v32 }
 0x1ba   :  { %9746 = vst [vmem:[#allocation113_spill] sm:$0xff] %v7189_v51  ;;  %v7193_v56 = vpop.f32.mrb[70].mxu0  ;;  %v7218_v51 = vpop.permute.xlu1 %3103  ;;  %5856 = vrcp.f32 %v1991_v2  ;;  %9751 = vst [vmem:[#allocation118_spill] sm:$0xff] %v7225_v41  ;;  %v7239_v2 = vadd.f32 %v6831_v5, %v7068_v8  ;;  %v7255_v5 = vadd.f32 %v6855_v18, %v7075_v45 }
 0x1bb   :  { %9748 = vst [vmem:[#allocation115_spill] sm:$0xff] %v7193_v56  ;;  %v7199_v61 = vpop.f32.mrb[71].mxu0  ;;  %9750 = vst [vmem:[#allocation117_spill] sm:$0xff] %v7218_v51  ;;  %5858 = vrcp.f32 %v2008_v44  ;;  %v7243_v56 = vadd.f32 %v6823_v1, %v7075_v45 }
 0x1bc   :  { %9749 = vst [vmem:[#allocation116_spill] sm:$0xff] %v7199_v61  ;;  %v1999_v61 = vadd.f32 1.0, %v5843_v36 }
 0x1be   :  { %v5845_v24 = vpop.eup %5844  ;;  %5860 = vrcp.f32 %v1999_v61  ;;  %v7249_v44 = vpop.permute.xlu1 %3111  ;;  %v5275_v61 = vmul.f32 -1.442695, %v7089_v12  ;;  %v5274_v12 = vmul.f32 -1.442695, %v7114_v38  ;;  %v7277_v38 = vadd.f32 %v6927_v60, %v7068_v8 }
 0x1bf   :  { %v2375_v11 = vmul.f32 %v5845_v24, %v7204_v9  ;;  %v5847_v28 = vpop.eup %5846  ;;  %v5291_v24 = vmul.f32 -1.442695, %v7057_v10  ;;  %v5323_v60 = vmul.f32 -1.442695, %v7144_v17 }
 0x1c0   :  { %v5849_v36 = vpop.eup %5848  ;;  %v2016_v42 = vadd.f32 1.0, %v5847_v28  ;;  %v5283_v28 = vmul.f32 -1.442695, %v7103_v46 }
 0x1c1   :  { %v2506_v51 = vsel %vm2502_vm1, %v2375_v11, 0.0  ;;  %v5851_v41 = vpop.eup %5850  ;;  %v2007_v53 = vadd.f32 1.0, %v5849_v36  ;;  %5862 = vpow2.f32 %v5291_v24  ;;  %v7257_v11 = vpop.permute.xlu0 %3123  ;;  %v7268_v24 = vadd.f32 %v6895_v47, %v7068_v8 }
 0x1c2   :  { %2507 = vadd.xlane.f32.xlu0 %v2506_v51  ;;  %v5853_v58 = vpop.eup %5852  ;;  %v2383_v10 = vmul.f32 %v5851_v41, %v7204_v9  ;;  %5864 = vrcp.f32 %v2016_v42  ;;  %v7281_v42 = vadd.f32 %v6919_v26, %v7075_v45 }
 0x1c3   :  { %v5855_v51 = vpop.eup %5854  ;;  %v2374_v1 = vmul.f32 %v5853_v58, %v7204_v9  ;;  %5866 = vrcp.f32 %v2007_v53  ;;  %v5307_v58 = vmul.f32 -1.442695, %v7120_v49  ;;  %v5282_v53 = vmul.f32 -1.442695, %v7131_v20 }
 0x1c4   :  { %v2530_v36 = vsel %vm2502_vm1, %v2383_v10, 0.0  ;;  %v2391_v41 = vmul.f32 %v5855_v51, %v7204_v9  ;;  %v5857_v46 = vpop.eup %5856  ;;  %5868 = vpow2.f32 %v5275_v61  ;;  %v7286_v51 = vpop.permute.xlu1 %3119  ;;  %v7292_v61 = vadd.f32 %v6963_v14, %v7068_v8 }
 0x1c5   :  { %2531 = vadd.xlane.f32.xlu1 %v2530_v36  ;;  %v2503_v18 = vsel %vm2502_vm1, %v2374_v1, 0.0  ;;  %v2382_v47 = vmul.f32 %v5857_v46, %v7204_v9  ;;  %5870 = vpow2.f32 %v5266_v23  ;;  %v5859_v10 = vpop.eup %5858  ;;  %v7294_v1 = vpop.permute.xlu0 %3134  ;;  %v7300_v23 = vadd.f32 %v6955_v40, %v7075_v45 }
 0x1c6   :  { %2504 = vadd.xlane.f32.xlu0 %v2503_v18  ;;  %v2554_v49 = vsel %vm2502_vm1, %v2391_v41, 0.0  ;;  %5872 = vpow2.f32 %v5283_v28  ;;  %9752 = vst [vmem:[#allocation119_spill] sm:$0xff] %v7294_v1  ;;  %v2399_v32 = vmul.f32 %v5859_v10, %v7204_v9  ;;  %v5290_v14 = vmul.f32 -1.442695, %v7147_v7 }
 0x1c7   :  { %v2527_v20 = vsel %vm2502_vm1, %v2382_v47, 0.0  ;;  %5874 = vpow2.f32 %v5274_v12  ;;  %v7306_v28 = vadd.f32 %v7003_v57, %v7068_v8  ;;  %v5331_v36 = vmul.f32 -1.442695, %v7154_v22 }
 0x1c8   :  { %v5861_v26 = vpop.eup %5860  ;;  %5876 = vpow2.f32 %v5307_v58  ;;  %v7311_v41 = vadd.f32 %v6995_v29, %v7075_v45  ;;  %v2578_v40 = vsel %vm2502_vm1, %v2399_v32, 0.0  ;;  %v5306_v12 = vmul.f32 -1.442695, %v7171_v62  ;;  %v7323_v29 = vpop.permute.xlu1 %3127 }
 0x1c9   :  { %2555 = vadd.xlane.f32.xlu1 %v2554_v49  ;;  %v2390_v17 = vmul.f32 %v5861_v26, %v7204_v9  ;;  %5878 = vpow2.f32 %v5282_v53  ;;  %v7317_v18 = vadd.f32 %v7046_v37, %v7068_v8  ;;  %v5339_v22 = vmul.f32 -1.442695, %v7175_v21  ;;  %v7334_v53 = vpop.permute.xlu0 %3142 }
 0x1ca   :  { %2528 = vadd.xlane.f32.xlu0 %v2527_v20  ;;  %5880 = vpow2.f32 %v5315_v39  ;;  %v5314_v58 = vmul.f32 -1.442695, %v7179_v54  ;;  %v7328_v62 = vadd.f32 %v7034_v30, %v7075_v45  ;;  %v7332_v37 = vadd.f32 %v6797_v31, %v7068_v8  ;;  %9753 = vst [vmem:[#allocation120_spill] sm:$0xff] %v7334_v53 }
 0x1cb   :  { %v7319_v7 = vpop.eup %5862  ;;  %v2551_v57 = vsel %vm2502_vm1, %v2390_v17, 0.0  ;;  %5882 = vpow2.f32 %v5323_v60  ;;  %v7342_v17 = vadd.f32 %v6789_v34, %v7075_v45 }
 0x1cc   :  { %v5865_v46 = vpop.eup %5864  ;;  %5884 = vpow2.f32 %v5290_v14 }
 0x1cd   :  { %2579 = vadd.xlane.f32.xlu1 %v2578_v40  ;;  %v5867_v47 = vpop.eup %5866  ;;  %v2407_v21 = vmul.f32 %v5865_v46, %v7204_v9  ;;  %5886 = vpow2.f32 %v5331_v36  ;;  %v7344_v36 = vpop.permute.xlu1 %3138 }
 0x1ce   :  { %2552 = vadd.xlane.f32.xlu0 %v2551_v57  ;;  %v5869_v39 = vpop.eup %5868  ;;  %v2398_v10 = vmul.f32 %v5867_v47, %v7204_v9  ;;  %5888 = vpow2.f32 %v5306_v12  ;;  %9754 = vst [vmem:[#allocation121_spill] sm:$0xff] %v7344_v36  ;;  %v7348_v12 = vadd.f32 %v6829_v4, %v7068_v8 }
 0x1cf   :  { %v5871_v49 = vpop.eup %5870  ;;  %v2602_v54 = vsel %vm2502_vm1, %v2407_v21, 0.0  ;;  %v2024_v60 = vadd.f32 1.0, %v5869_v39  ;;  %5890 = vpow2.f32 %v5339_v22  ;;  %v7350_v22 = vpop.permute.xlu0 %3150  ;;  %v9756_v21 = vld [vmem:[#allocation33_spill] sm:$0xff] }
 0x1d0   :  { %v5873_v30 = vpop.eup %5872  ;;  %v2575_v31 = vsel %vm2502_vm1, %v2398_v10, 0.0  ;;  %v2015_v26 = vadd.f32 1.0, %v5871_v49  ;;  %5892 = vpow2.f32 %v5314_v58  ;;  %9755 = vst [vmem:[#allocation122_spill] sm:$0xff] %v7350_v22  ;;  %v7354_v58 = vadd.f32 %v6821_v0, %v7075_v45  ;;  %v9757_v49 = vld [vmem:[#allocation32_spill] sm:$0xff]  ;;  %v9758_v0 = vld [vmem:[#allocation43_spill] sm:$0xff] }
 0x1d1   :  { %2603 = vadd.xlane.f32.xlu1 %v2602_v54  ;;  %v5875_v20 = vpop.eup %5874  ;;  %5894 = vrcp.f32 %v2024_v60  ;;  %v2032_v32 = vadd.f32 1.0, %v5873_v30  ;;  %v7358_v39 = vadd.f32 %v9756_v21, %v7068_v8  ;;  %v7362_v54 = vadd.f32 %v9757_v49, %v7075_v45 }
 0x1d2   :  { %2576 = vadd.xlane.f32.xlu0 %v2575_v31  ;;  %v5877_v14 = vpop.eup %5876  ;;  %5896 = vrcp.f32 %v2015_v26  ;;  %v2023_v40 = vadd.f32 1.0, %v5875_v20  ;;  %v7366_v31 = vadd.f32 %v9758_v0, %v7068_v8  ;;  %v5347_v22 = vmul.f32 -1.442695, %v7187_v33  ;;  %v9766_v33 = vld [vmem:[#allocation79_spill] sm:$0xff] }
 0x1d3   :  { %v5879_v57 = vpop.eup %5878  ;;  %5898 = vrcp.f32 %v2032_v32  ;;  %v2056_v46 = vadd.f32 1.0, %v5877_v14  ;;  %v9759_v32 = vld [vmem:[#allocation42_spill] sm:$0xff] }
 0x1d4   :  { %v5881_v34 = vpop.eup %5880  ;;  %5900 = vrcp.f32 %v2023_v40  ;;  %v2031_v47 = vadd.f32 1.0, %v5879_v57  ;;  %v7370_v14 = vadd.f32 %v9759_v32, %v7075_v45  ;;  %v7372_v57 = vpop.permute.xlu1 %3146 }
 0x1d5   :  { %v5883_v10 = vpop.eup %5882  ;;  %5902 = vrcp.f32 %v2056_v46  ;;  %v2064_v4 = vadd.f32 1.0, %v5881_v34  ;;  %9760 = vst [vmem:[#allocation33_spill] sm:$0xff] %v7372_v57  ;;  %v9761_v34 = vld [vmem:[#allocation53_spill] sm:$0xff] }
 0x1d6   :  { %v5885_v60 = vpop.eup %5884  ;;  %5904 = vrcp.f32 %v2031_v47  ;;  %v2072_v30 = vadd.f32 1.0, %v5883_v10  ;;  %v7376_v47 = vadd.f32 %v9761_v34, %v7068_v8  ;;  %v7378_v10 = vpop.permute.xlu0 %3158 }
 0x1d7   :  { %v5887_v26 = vpop.eup %5886  ;;  %5906 = vrcp.f32 %v2064_v4  ;;  %v2039_v20 = vadd.f32 1.0, %v5885_v60  ;;  %9762 = vst [vmem:[#allocation32_spill] sm:$0xff] %v7378_v10  ;;  %v9763_v4 = vld [vmem:[#allocation52_spill] sm:$0xff]  ;;  %v5322_v10 = vmul.f32 -1.442695, %v7197_v52 }
 0x1d8   :  { %v5889_v40 = vpop.eup %5888  ;;  %5908 = vrcp.f32 %v2072_v30  ;;  %v2080_v46 = vadd.f32 1.0, %v5887_v26  ;;  %v7382_v60 = vadd.f32 %v9763_v4, %v7075_v45  ;;  %v9764_v30 = vld [vmem:[#allocation65_spill] sm:$0xff]  ;;  %v5330_v52 = vmul.f32 -1.442695, %v7212_v15  ;;  %v7406_v36 = vpop.permute.xlu1 %3154 }
 0x1d9   :  { %v5891_v21 = vpop.eup %5890  ;;  %5910 = vrcp.f32 %v2039_v20  ;;  %v2055_v49 = vadd.f32 1.0, %v5889_v40  ;;  %v7387_v26 = vadd.f32 %v9764_v30, %v7068_v8  ;;  %v9765_v20 = vld [vmem:[#allocation64_spill] sm:$0xff]  ;;  %9768 = vst [vmem:[#allocation43_spill] sm:$0xff] %v7406_v36 }
 0x1da   :  { %v5893_v0 = vpop.eup %5892  ;;  %5912 = vrcp.f32 %v2080_v46  ;;  %v2088_v32 = vadd.f32 1.0, %v5891_v21  ;;  %v7392_v40 = vadd.f32 %v9765_v20, %v7075_v45  ;;  %v5355_v46 = vmul.f32 -1.442695, %v7208_v6 }
 0x1db   :  { %v5895_v34 = vpop.eup %5894  ;;  %5914 = vrcp.f32 %v2055_v49  ;;  %v2063_v57 = vadd.f32 1.0, %v5893_v0  ;;  %v7398_v21 = vadd.f32 %v9766_v33, %v7068_v8  ;;  %v9767_v0 = vld [vmem:[#allocation78_spill] sm:$0xff]  ;;  %v5338_v8 = vmul.f32 -1.442695, %v7216_v19  ;;  %v7411_v33 = vpop.permute.xlu0 %3169 }
 0x1dc   :  { %v5897_v4 = vpop.eup %5896  ;;  %v2415_v53 = vmul.f32 %v5895_v34, %v7204_v9  ;;  %5916 = vrcp.f32 %v2088_v32  ;;  %v7404_v20 = vadd.f32 %v9767_v0, %v7075_v45 }
 0x1dd   :  { %v5899_v30 = vpop.eup %5898  ;;  %v2406_v49 = vmul.f32 %v5897_v4, %v7204_v9  ;;  %5918 = vrcp.f32 %v2063_v57  ;;  %v5346_v4 = vmul.f32 -1.442695, %v7223_v63  ;;  %v5245_v63 = vmul.f32 -1.442695, %v7239_v2 }
 0x1de   :  { %v5901_v1 = vpop.eup %5900  ;;  %v2626_v32 = vsel %vm2502_vm1, %v2415_v53, 0.0  ;;  %v2423_v6 = vmul.f32 %v5899_v30, %v7204_v9  ;;  %5920 = vpow2.f32 %v5347_v22  ;;  %v5237_v53 = vmul.f32 -1.442695, %v7229_v16  ;;  %v9769_v22 = vld [vmem:[#allocation15_spill] sm:$0xff] }
 0x1df   :  { %v5903_v34 = vpop.eup %5902  ;;  %2627 = vadd.xlane.f32.xlu1 %v2626_v32  ;;  %v2599_v15 = vsel %vm2502_vm1, %v2406_v49, 0.0  ;;  %v2414_v57 = vmul.f32 %v5901_v1, %v7204_v9  ;;  %5922 = vpow2.f32 %v5322_v10  ;;  %v7419_v30 = vadd.f32 %v9769_v22, %v7075_v45 }
 0x1e0   :  { %v5905_v0 = vpop.eup %5904  ;;  %2600 = vadd.xlane.f32.xlu0 %v2599_v15  ;;  %5924 = vpow2.f32 %v5355_v46  ;;  %v5354_v32 = vmul.f32 -1.442695, %v7233_v13  ;;  %v2650_v49 = vsel %vm2502_vm1, %v2423_v6, 0.0  ;;  %v2447_v1 = vmul.f32 %v5903_v34, %v7204_v9  ;;  %v7428_v15 = vpop.permute.xlu1 %3162 }
 0x1e1   :  { %v5907_v19 = vpop.eup %5906  ;;  %5926 = vpow2.f32 %v5330_v52  ;;  %v2623_v16 = vsel %vm2502_vm1, %v2414_v57, 0.0  ;;  %v2422_v46 = vmul.f32 %v5905_v0, %v7204_v9  ;;  %v5244_v45 = vmul.f32 -1.442695, %v7243_v56  ;;  %9770 = vst [vmem:[#allocation42_spill] sm:$0xff] %v7428_v15 }
 0x1e2   :  { %v5909_v36 = vpop.eup %5908  ;;  %5928 = vpow2.f32 %v5338_v8  ;;  %v5253_v13 = vmul.f32 -1.442695, %v7247_v50  ;;  %v7431_v8 = vpop.permute.xlu0 %3177  ;;  %v2722_v34 = vsel %vm2502_vm1, %v2447_v1, 0.0  ;;  %v2455_v57 = vmul.f32 %v5907_v19, %v7204_v9 }
 0x1e3   :  { %v5911_v10 = vpop.eup %5910  ;;  %2651 = vadd.xlane.f32.xlu1 %v2650_v49  ;;  %5930 = vpow2.f32 %v5346_v4  ;;  %v5252_v4 = vmul.f32 -1.442695, %v7255_v5  ;;  %v2647_v0 = vsel %vm2502_vm1, %v2422_v46, 0.0  ;;  %v5261_v49 = vmul.f32 -1.442695, %v7268_v24 }
 0x1e4   :  { %v5913_v52 = vpop.eup %5912  ;;  %2624 = vadd.xlane.f32.xlu0 %v2623_v16  ;;  %5932 = vpow2.f32 %v5237_v53  ;;  %v2430_v53 = vmul.f32 %v5911_v10, %v7204_v9  ;;  %v7439_v16 = vpop.permute.xlu1 %3173  ;;  %v2746_v19 = vsel %vm2502_vm1, %v2455_v57, 0.0  ;;  %v2463_v5 = vmul.f32 %v5909_v36, %v7204_v9 }
 0x1e5   :  { %v5915_v6 = vpop.eup %5914  ;;  %5934 = vpow2.f32 %v5354_v32  ;;  %v2040_v57 = vadd.f32 1.0, %v7319_v7 }
 0x1e6   :  { %v5917_v2 = vpop.eup %5916  ;;  %5936 = vpow2.f32 %v5245_v63  ;;  %v2671_v10 = vsel %vm2502_vm1, %v2430_v53, 0.0 }
 0x1e7   :  { %v5919_v56 = vpop.eup %5918  ;;  %2723 = vadd.xlane.f32.xlu1 %v2722_v34  ;;  %5938 = vpow2.f32 %v5244_v45  ;;  %v7443_v34 = vpop.permute.xlu0 %3185  ;;  %v2446_v45 = vmul.f32 %v5915_v6, %v7204_v9 }
 0x1e8   :  { %v5921_v50 = vpop.eup %5920  ;;  %2648 = vadd.xlane.f32.xlu0 %v2647_v0  ;;  %5940 = vpow2.f32 %v5253_v13  ;;  %9771 = vst [vmem:[#allocation53_spill] sm:$0xff] %v7443_v34 }
 0x1e9   :  { %v5923_v22 = vpop.eup %5922  ;;  %v2096_v32 = vadd.f32 1.0, %v5921_v50  ;;  %5942 = vpow2.f32 %v5252_v4  ;;  %v2719_v6 = vsel %vm2502_vm1, %v2446_v45, 0.0  ;;  %v2479_v45 = vmul.f32 %v5917_v2, %v7204_v9 }
 0x1ea   :  { %v5925_v1 = vpop.eup %5924  ;;  %v2071_v63 = vadd.f32 1.0, %v5923_v22  ;;  %v2770_v22 = vsel %vm2502_vm1, %v2463_v5, 0.0 }
 0x1eb   :  { %v5927_v46 = vpop.eup %5926  ;;  %2747 = vadd.xlane.f32.xlu1 %v2746_v19  ;;  %5944 = vrcp.f32 %v2096_v32  ;;  %v2104_v13 = vadd.f32 1.0, %v5925_v1  ;;  %v2471_v19 = vmul.f32 %v5913_v52, %v7204_v9  ;;  %v2454_v32 = vmul.f32 %v5919_v56, %v7204_v9  ;;  %v7454_v5 = vpop.permute.xlu0 %3193 }
 0x1ec   :  { %v5929_v24 = vpop.eup %5928  ;;  %2672 = vadd.xlane.f32.xlu0 %v2671_v10  ;;  %5946 = vrcp.f32 %v2071_v63  ;;  %v2079_v0 = vadd.f32 1.0, %v5927_v46  ;;  %v7452_v46 = vpop.permute.xlu1 %3181  ;;  %9772 = vst [vmem:[#allocation52_spill] sm:$0xff] %v7454_v5  ;;  %v2818_v2 = vsel %vm2502_vm1, %v2479_v45, 0.0  ;;  %v9829_v5 = vld [vmem:[#allocation104_spill] sm:$0xff] }
 0x1ed   :  { %v5931_v50 = vpop.eup %5930  ;;  %5948 = vrcp.f32 %v2104_v13  ;;  %v2087_v36 = vadd.f32 1.0, %v5929_v24  ;;  %v2794_v24 = vsel %vm2502_vm1, %v2471_v19, 0.0 }
 0x1ee   :  { %v5933_v4 = vpop.eup %5932  ;;  %5950 = vrcp.f32 %v2079_v0  ;;  %v2095_v53 = vadd.f32 1.0, %v5931_v50 }
 0x1ef   :  { %v5935_v15 = vpop.eup %5934  ;;  %2771 = vadd.xlane.f32.xlu1 %v2770_v22  ;;  %v1986_v1 = vadd.f32 1.0, %v5933_v4  ;;  %5952 = vpow2.f32 %v5261_v49  ;;  %v2743_v49 = vsel %vm2502_vm1, %v2454_v32, 0.0  ;;  %v7466_v32 = vpop.permute.xlu0 %3204 }
 0x1f0   :  { %v5937_v63 = vpop.eup %5936  ;;  %2720 = vadd.xlane.f32.xlu0 %v2719_v6  ;;  %5954 = vrcp.f32 %v2087_v36  ;;  %v2103_v7 = vadd.f32 1.0, %v5935_v15  ;;  %v5260_v15 = vmul.f32 -1.442695, %v7272_v27  ;;  %v5269_v36 = vmul.f32 -1.442695, %v7277_v38  ;;  %v7461_v22 = vpop.permute.xlu1 %3189 }
 0x1f1   :  { %v5939_v10 = vpop.eup %5938  ;;  %5956 = vrcp.f32 %v2040_v57  ;;  %v1994_v52 = vadd.f32 1.0, %v5937_v63  ;;  %9773 = vst [vmem:[#allocation65_spill] sm:$0xff] %v7461_v22  ;;  %v5276_v63 = vmul.f32 -1.442695, %v7300_v23  ;;  %v5293_v23 = vmul.f32 -1.442695, %v7317_v18 }
 0x1f2   :  { %v5941_v13 = vpop.eup %5940  ;;  %5958 = vrcp.f32 %v2095_v53  ;;  %v1993_v56 = vadd.f32 1.0, %v5939_v10  ;;  %v5268_v53 = vmul.f32 -1.442695, %v7281_v42  ;;  %v5285_v42 = vmul.f32 -1.442695, %v7306_v28 }
 0x1f3   :  { %2795 = vadd.xlane.f32.xlu1 %v2794_v24  ;;  %5960 = vrcp.f32 %v1986_v1  ;;  %v2002_v0 = vadd.f32 1.0, %v5941_v13  ;;  %v5943_v50 = vpop.eup %5942  ;;  %v5277_v1 = vmul.f32 -1.442695, %v7292_v61  ;;  %v5284_v61 = vmul.f32 -1.442695, %v7311_v41 }
 0x1f4   :  { %2744 = vadd.xlane.f32.xlu0 %v2743_v49  ;;  %5962 = vrcp.f32 %v2103_v7 }
 0x1f5   :  { %v5945_v57 = vpop.eup %5944  ;;  %5964 = vrcp.f32 %v1994_v52 }
 0x1f6   :  { %v5947_v4 = vpop.eup %5946  ;;  %v2487_v19 = vmul.f32 %v5945_v57, %v7204_v9  ;;  %5966 = vrcp.f32 %v1993_v56  ;;  %v7480_v57 = vpop.permute.xlu0 %3212 }
 0x1f7   :  { %v5949_v6 = vpop.eup %5948  ;;  %2819 = vadd.xlane.f32.xlu1 %v2818_v2  ;;  %v2462_v27 = vmul.f32 %v5947_v4, %v7204_v9  ;;  %5968 = vrcp.f32 %v2002_v0  ;;  %v7478_v0 = vpop.permute.xlu1 %3197 }
 0x1f8   :  { %v5951_v38 = vpop.eup %5950  ;;  %5970 = vpow2.f32 %v5260_v15  ;;  %v2842_v24 = vsel %vm2502_vm1, %v2487_v19, 0.0  ;;  %v2495_v45 = vmul.f32 %v5949_v6, %v7204_v9  ;;  %9774 = vst [vmem:[#allocation64_spill] sm:$0xff] %v7478_v0  ;;  %v2001_v15 = vadd.f32 1.0, %v5943_v50  ;;  %v9828_v0 = vld [vmem:[#allocation17_spill] sm:$0xff] }
 0x1f9   :  { %v5953_v7 = vpop.eup %5952  ;;  %v2767_v10 = vsel %vm2502_vm1, %v2462_v27, 0.0  ;;  %v2470_v52 = vmul.f32 %v5951_v38, %v7204_v9  ;;  %5972 = vpow2.f32 %v5269_v36  ;;  %v5309_v6 = vmul.f32 -1.442695, %v7332_v37 }
 0x1fa   :  { %v5955_v13 = vpop.eup %5954  ;;  %2768 = vadd.xlane.f32.xlu0 %v2767_v10  ;;  %5974 = vpow2.f32 %v5268_v53  ;;  %v2010_v2 = vadd.f32 1.0, %v5953_v7  ;;  %v2866_v19 = vsel %vm2502_vm1, %v2495_v45, 0.0  ;;  %v5292_v53 = vmul.f32 -1.442695, %v7328_v62 }
 0x1fb   :  { %v5957_v56 = vpop.eup %5956  ;;  %2843 = vadd.xlane.f32.xlu1 %v2842_v24  ;;  %5976 = vpow2.f32 %v5277_v1  ;;  %v2791_v36 = vsel %vm2502_vm1, %v2470_v52, 0.0  ;;  %v2478_v4 = vmul.f32 %v5955_v13, %v7204_v9  ;;  %v7490_v10 = vpop.permute.xlu1 %3208  ;;  %v1531_v37 = vadd.f32 %v7106_v43, %v7096_v25 }
 0x1fc   :  { %v5959_v49 = vpop.eup %5958  ;;  %5978 = vpow2.f32 %v5276_v63  ;;  %v2431_v18 = vmul.f32 %v5957_v56, %v7204_v9  ;;  %v7496_v13 = vpop.permute.xlu0 %3220 }
 0x1fd   :  { %v5961_v28 = vpop.eup %5960  ;;  %5980 = vpow2.f32 %v5285_v42  ;;  %v2815_v38 = vsel %vm2502_vm1, %v2478_v4, 0.0  ;;  %v2486_v63 = vmul.f32 %v5959_v49, %v7204_v9  ;;  %9775 = vst [vmem:[#allocation79_spill] sm:$0xff] %v7496_v13 }
 0x1fe   :  { %v5963_v41 = vpop.eup %5962  ;;  %2792 = vadd.xlane.f32.xlu0 %v2791_v36  ;;  %5982 = vpow2.f32 %v5284_v61  ;;  %v2674_v52 = vsel %vm2502_vm1, %v2431_v18, 0.0  ;;  %v2377_v62 = vmul.f32 %v5961_v28, %v7204_v9  ;;  %v1532_v61 = vadd.f32 %v7092_v35, %v7110_v3 }
 0x1ff   :  { %v5965_v50 = vpop.eup %5964  ;;  %2867 = vadd.xlane.f32.xlu1 %v2866_v19  ;;  %5984 = vpow2.f32 %v5293_v23  ;;  %v2839_v49 = vsel %vm2502_vm1, %v2486_v63, 0.0  ;;  %v5294_v18 = vmul.f32 -1.442695, %v1531_v37 }
 0x200   :  { %v5967_v27 = vpop.eup %5966  ;;  %5986 = vrcp.f32 %v2001_v15  ;;  %v2494_v15 = vmul.f32 %v5963_v41, %v7204_v9  ;;  %v2512_v25 = vsel %vm2502_vm1, %v2377_v62, 0.0  ;;  %v2385_v4 = vmul.f32 %v5965_v50, %v7204_v9  ;;  %v7506_v41 = vpop.permute.xlu0 %3228 }
 0x201   :  { %v5969_v1 = vpop.eup %5968  ;;  %5988 = vrcp.f32 %v2010_v2  ;;  %9777 = vst [vmem:[#allocation15_spill] sm:$0xff] %v7506_v41  ;;  %v5295_v62 = vmul.f32 -1.442695, %v1532_v61 }
 0x202   :  { %v5971_v7 = vpop.eup %5970  ;;  %2816 = vadd.xlane.f32.xlu0 %v2815_v38  ;;  %5990 = vpow2.f32 %v5292_v53  ;;  %v7504_v53 = vpop.permute.xlu1 %3216  ;;  %v2863_v63 = vsel %vm2502_vm1, %v2494_v15, 0.0  ;;  %v2393_v37 = vmul.f32 %v5969_v1, %v7204_v9 }
 0x203   :  { %v5973_v42 = vpop.eup %5972  ;;  %2675 = vadd.xlane.f32.xlu1 %v2674_v52  ;;  %v2009_v24 = vadd.f32 1.0, %v5971_v7  ;;  %5992 = vpow2.f32 %v5309_v6  ;;  %9776 = vst [vmem:[#allocation78_spill] sm:$0xff] %v7504_v53  ;;  %v2384_v7 = vmul.f32 %v5967_v27, %v7204_v9 }
 0x204   :  { %v5975_v45 = vpop.eup %5974  ;;  %v2018_v56 = vadd.f32 1.0, %v5973_v42  ;;  %v2536_v42 = vsel %vm2502_vm1, %v2385_v4, 0.0  ;;  %v2560_v1 = vsel %vm2502_vm1, %v2393_v37, 0.0  ;;  %v5333_v37 = vmul.f32 -1.442695, %v7366_v31 }
 0x205   :  { %v5977_v23 = vpop.eup %5976  ;;  %5994 = vrcp.f32 %v2009_v24  ;;  %v2017_v28 = vadd.f32 1.0, %v5975_v45  ;;  %v2533_v15 = vsel %vm2502_vm1, %v2384_v7, 0.0 }
 0x206   :  { %v5979_v36 = vpop.eup %5978  ;;  %2840 = vadd.xlane.f32.xlu0 %v2839_v49  ;;  %5996 = vrcp.f32 %v2018_v56  ;;  %v2026_v2 = vadd.f32 1.0, %v5977_v23  ;;  %v7514_v61 = vpop.permute.xlu1 %3224 }
 0x207   :  { %v5981_v19 = vpop.eup %5980  ;;  %2513 = vadd.xlane.f32.xlu1 %v2512_v25  ;;  %5998 = vrcp.f32 %v2017_v28  ;;  %v2025_v6 = vadd.f32 1.0, %v5979_v36  ;;  %9778 = vst [vmem:[#allocation123_spill] sm:$0xff] %v7514_v61  ;;  %v9835_v61 = vld [vmem:[#allocation39_spill] sm:$0xff] }
 0x208   :  { %v5983_v3 = vpop.eup %5982  ;;  %6000 = vrcp.f32 %v2026_v2  ;;  %v2034_v52 = vadd.f32 1.0, %v5981_v19  ;;  %v7518_v2 = vpop.permute.xlu0 %3239  ;;  %v5308_v19 = vmul.f32 -1.442695, %v7342_v17  ;;  %v5325_v17 = vmul.f32 -1.442695, %v7358_v39 }
 0x209   :  { %v5985_v38 = vpop.eup %5984  ;;  %6002 = vpow2.f32 %v5294_v18  ;;  %v2033_v45 = vadd.f32 1.0, %v5983_v3  ;;  %v5317_v3 = vmul.f32 -1.442695, %v7348_v12  ;;  %v5324_v12 = vmul.f32 -1.442695, %v7362_v54 }
 0x20a   :  { %v5987_v50 = vpop.eup %5986  ;;  %2864 = vadd.xlane.f32.xlu0 %v2863_v63  ;;  %6004 = vrcp.f32 %v2025_v6  ;;  %v2042_v23 = vadd.f32 1.0, %v5985_v38  ;;  %v5316_v63 = vmul.f32 -1.442695, %v7354_v58  ;;  %v5332_v39 = vmul.f32 -1.442695, %v7370_v14 }
 0x20b   :  { %v5989_v24 = vpop.eup %5988  ;;  %2537 = vadd.xlane.f32.xlu1 %v2536_v42  ;;  %v2392_v27 = vmul.f32 %v5987_v50, %v7204_v9  ;;  %6006 = vrcp.f32 %v2034_v52  ;;  %v7529_v42 = vpop.permute.xlu1 %3232 }
 0x20c   :  { %v5991_v56 = vpop.eup %5990  ;;  %6008 = vpow2.f32 %v5295_v62  ;;  %v2401_v36 = vmul.f32 %v5989_v24, %v7204_v9  ;;  %9779 = vst [vmem:[#allocation124_spill] sm:$0xff] %v7529_v42  ;;  %v7532_v24 = vpop.permute.xlu0 %3247 }
 0x20d   :  { %v5993_v49 = vpop.eup %5992  ;;  %v2041_v28 = vadd.f32 1.0, %v5991_v56  ;;  %6010 = vrcp.f32 %v2033_v45  ;;  %v2557_v6 = vsel %vm2502_vm1, %v2392_v27, 0.0  ;;  %9780 = vst [vmem:[#allocation125_spill] sm:$0xff] %v7532_v24  ;;  %v5340_v27 = vmul.f32 -1.442695, %v7382_v60 }
 0x20e   :  { %2534 = vadd.xlane.f32.xlu0 %v2533_v15  ;;  %v2058_v25 = vadd.f32 1.0, %v5993_v49  ;;  %6012 = vrcp.f32 %v2042_v23  ;;  %v2584_v52 = vsel %vm2502_vm1, %v2401_v36, 0.0  ;;  %v5341_v15 = vmul.f32 -1.442695, %v7376_v47 }
 0x20f   :  { %v5995_v4 = vpop.eup %5994  ;;  %2561 = vadd.xlane.f32.xlu1 %v2560_v1  ;;  %6014 = vrcp.f32 %v2041_v28  ;;  %v5349_v1 = vmul.f32 -1.442695, %v7387_v26  ;;  %v7547_v47 = vpop.permute.xlu1 %3243 }
 0x210   :  { %v5997_v18 = vpop.eup %5996  ;;  %v2400_v38 = vmul.f32 %v5995_v4, %v7204_v9  ;;  %6016 = vrcp.f32 %v2058_v25  ;;  %v5348_v4 = vmul.f32 -1.442695, %v7392_v40 }
 0x211   :  { %v5999_v7 = vpop.eup %5998  ;;  %v2409_v50 = vmul.f32 %v5997_v18, %v7204_v9  ;;  %6018 = vpow2.f32 %v5308_v19 }
 0x212   :  { %2558 = vadd.xlane.f32.xlu0 %v2557_v6  ;;  %v6001_v62 = vpop.eup %6000  ;;  %6020 = vpow2.f32 %v5317_v3  ;;  %v2581_v45 = vsel %vm2502_vm1, %v2400_v38, 0.0  ;;  %v2408_v56 = vmul.f32 %v5999_v7, %v7204_v9  ;;  %v5357_v3 = vmul.f32 -1.442695, %v7398_v21  ;;  %v7552_v38 = vpop.permute.xlu0 %3255 }
 0x213   :  { %2585 = vadd.xlane.f32.xlu1 %v2584_v52  ;;  %v6003_v58 = vpop.eup %6002  ;;  %6022 = vpow2.f32 %v5316_v63  ;;  %v2608_v49 = vsel %vm2502_vm1, %v2409_v50, 0.0  ;;  %v2417_v54 = vmul.f32 %v6001_v62, %v7204_v9  ;;  %9781 = vst [vmem:[#allocation126_spill] sm:$0xff] %v7552_v38 }
 0x214   :  { %v6005_v23 = vpop.eup %6004  ;;  %6024 = vpow2.f32 %v5325_v17  ;;  %v2605_v36 = vsel %vm2502_vm1, %v2408_v56, 0.0  ;;  %v2043_v6 = vadd.f32 1.0, %v6003_v58 }
 0x215   :  { %v6007_v31 = vpop.eup %6006  ;;  %6026 = vpow2.f32 %v5324_v12  ;;  %v2416_v25 = vmul.f32 %v6005_v23, %v7204_v9  ;;  %v2632_v18 = vsel %vm2502_vm1, %v2417_v54, 0.0 }
 0x216   :  { %2582 = vadd.xlane.f32.xlu0 %v2581_v45  ;;  %v7541_v28 = vpop.eup %6008  ;;  %6028 = vpow2.f32 %v5333_v37  ;;  %v2425_v60 = vmul.f32 %v6007_v31, %v7204_v9  ;;  %v7558_v45 = vpop.permute.xlu1 %3251 }
 0x217   :  { %2609 = vadd.xlane.f32.xlu1 %v2608_v49  ;;  %v6011_v14 = vpop.eup %6010  ;;  %6030 = vpow2.f32 %v5332_v39  ;;  %v2629_v7 = vsel %vm2502_vm1, %v2416_v25, 0.0  ;;  %9782 = vst [vmem:[#allocation127_spill] sm:$0xff] %v7558_v45  ;;  %v7560_v23 = vpop.permute.xlu0 %3263 }
 0x218   :  { %v6013_v19 = vpop.eup %6012  ;;  %6032 = vpow2.f32 %v5341_v15  ;;  %v2424_v52 = vmul.f32 %v6011_v14, %v7204_v9  ;;  %v2656_v17 = vsel %vm2502_vm1, %v2425_v60, 0.0  ;;  %9783 = vst [vmem:[#allocation128_spill] sm:$0xff] %v7560_v23 }
 0x219   :  { %v6015_v26 = vpop.eup %6014  ;;  %6034 = vpow2.f32 %v5340_v27  ;;  %v2433_v21 = vmul.f32 %v6013_v19, %v7204_v9 }
 0x21a   :  { %2606 = vadd.xlane.f32.xlu0 %v2605_v36  ;;  %v6017_v63 = vpop.eup %6016  ;;  %6036 = vpow2.f32 %v5349_v1  ;;  %v2653_v49 = vsel %vm2502_vm1, %v2424_v52, 0.0  ;;  %v2432_v54 = vmul.f32 %v6015_v26, %v7204_v9 }
 0x21b   :  { %2633 = vadd.xlane.f32.xlu1 %v2632_v18  ;;  %v6019_v40 = vpop.eup %6018  ;;  %6038 = vpow2.f32 %v5348_v4  ;;  %v2680_v27 = vsel %vm2502_vm1, %v2433_v21, 0.0  ;;  %v2449_v1 = vmul.f32 %v6017_v63, %v7204_v9  ;;  %v9784_v18 = vld [vmem:[#allocation19_spill] sm:$0xff] }
 0x21c   :  { %v6021_v50 = vpop.eup %6020  ;;  %v2057_v62 = vadd.f32 1.0, %v6019_v40  ;;  %6040 = vpow2.f32 %v5357_v3  ;;  %v1475_v60 = vadd.f32 %v7106_v43, %v9784_v18  ;;  %v2677_v26 = vsel %vm2502_vm1, %v2432_v54, 0.0  ;;  %v9785_v40 = vld [vmem:[#allocation23_spill] sm:$0xff] }
 0x21d   :  { %v6023_v12 = vpop.eup %6022  ;;  %6042 = vrcp.f32 %v2043_v6  ;;  %v2066_v37 = vadd.f32 1.0, %v6021_v50  ;;  %v1476_v9 = vadd.f32 %v7092_v35, %v9785_v40  ;;  %v2728_v52 = vsel %vm2502_vm1, %v2449_v1, 0.0 }
 0x21e   :  { %2630 = vadd.xlane.f32.xlu0 %v2629_v7  ;;  %v6025_v58 = vpop.eup %6024  ;;  %6044 = vrcp.f32 %v2057_v62  ;;  %v2065_v56 = vadd.f32 1.0, %v6023_v12  ;;  %v7571_v7 = vpop.permute.xlu1 %3259  ;;  %v5356_v54 = vmul.f32 -1.442695, %v7404_v20 }
 0x21f   :  { %2657 = vadd.xlane.f32.xlu1 %v2656_v17  ;;  %v6027_v39 = vpop.eup %6026  ;;  %6046 = vrcp.f32 %v2066_v37  ;;  %v2074_v15 = vadd.f32 1.0, %v6025_v58  ;;  %9786 = vst [vmem:[#allocation19_spill] sm:$0xff] %v7571_v7  ;;  %v9787_v17 = vld [vmem:[#allocation27_spill] sm:$0xff]  ;;  %v7576_v12 = vpop.permute.xlu0 %3274 }
 0x220   :  { %v6029_v31 = vpop.eup %6028  ;;  %6048 = vrcp.f32 %v2065_v56  ;;  %v2073_v14 = vadd.f32 1.0, %v6027_v39  ;;  %v1483_v21 = vadd.f32 %v7106_v43, %v9787_v17  ;;  %9788 = vst [vmem:[#allocation23_spill] sm:$0xff] %v7576_v12  ;;  %v9789_v58 = vld [vmem:[#allocation31_spill] sm:$0xff] }
 0x221   :  { %v6031_v36 = vpop.eup %6030  ;;  %6050 = vrcp.f32 %v2074_v15  ;;  %v2082_v25 = vadd.f32 1.0, %v6029_v31  ;;  %v1484_v56 = vadd.f32 %v7092_v35, %v9789_v58  ;;  %v9790_v15 = vld [vmem:[#allocation37_spill] sm:$0xff]  ;;  %v9795_v58 = vld [vmem:[#allocation51_spill] sm:$0xff] }
 0x222   :  { %2654 = vadd.xlane.f32.xlu0 %v2653_v49  ;;  %v6033_v4 = vpop.eup %6032  ;;  %6052 = vrcp.f32 %v2073_v14  ;;  %v2081_v19 = vadd.f32 1.0, %v6031_v36  ;;  %v1491_v31 = vadd.f32 %v7106_v43, %v9790_v15  ;;  %v5236_v14 = vmul.f32 -1.442695, %v7419_v30  ;;  %v7594_v30 = vpop.permute.xlu1 %3267  ;;  %v9796_v15 = vld [vmem:[#allocation57_spill] sm:$0xff] }
 0x223   :  { %2681 = vadd.xlane.f32.xlu1 %v2680_v27  ;;  %v6035_v3 = vpop.eup %6034  ;;  %6054 = vrcp.f32 %v2082_v25  ;;  %v2090_v6 = vadd.f32 1.0, %v6033_v4  ;;  %v5238_v25 = vmul.f32 -1.442695, %v1475_v60  ;;  %v5239_v4 = vmul.f32 -1.442695, %v1476_v9  ;;  %9792 = vst [vmem:[#allocation27_spill] sm:$0xff] %v7594_v30 }
 0x224   :  { %v6037_v63 = vpop.eup %6036  ;;  %6056 = vrcp.f32 %v2081_v19  ;;  %v2089_v50 = vadd.f32 1.0, %v6035_v3  ;;  %v5246_v19 = vmul.f32 -1.442695, %v1483_v21  ;;  %v7589_v3 = vld [vmem:[%s9607_s7] ss:$0 sm:$0xff]  ;;  %v7599_v21 = vpop.permute.xlu0 %3282 }
 0x225   :  { %v6039_v62 = vpop.eup %6038  ;;  %6058 = vrcp.f32 %v2090_v6  ;;  %v2098_v37 = vadd.f32 1.0, %v6037_v63  ;;  %v9791_v6 = vld [vmem:[#allocation41_spill] sm:$0xff]  ;;  %v5254_v9 = vmul.f32 -1.442695, %v1491_v31  ;;  %9794 = vst [vmem:[#allocation31_spill] sm:$0xff] %v7599_v21  ;;  %v1507_v31 = vadd.f32 %v7106_v43, %v9796_v15 }
 0x226   :  { %2678 = vadd.xlane.f32.xlu0 %v2677_v26  ;;  %v6041_v39 = vpop.eup %6040  ;;  %6060 = vrcp.f32 %v2089_v50  ;;  %v2097_v49 = vadd.f32 1.0, %v6039_v62  ;;  %v5247_v26 = vmul.f32 -1.442695, %v1484_v56  ;;  %v1492_v40 = vadd.f32 %v7092_v35, %v9791_v6 }
 0x227   :  { %2729 = vadd.xlane.f32.xlu1 %v2728_v52  ;;  %v7583_v27 = vpop.eup %6042  ;;  %6062 = vrcp.f32 %v2098_v37  ;;  %v2106_v1 = vadd.f32 1.0, %v6041_v39  ;;  %v9793_v52 = vld [vmem:[#allocation47_spill] sm:$0xff]  ;;  %v1500_v56 = vadd.f32 %v7092_v35, %v9795_v58 }
 0x228   :  { %v6045_v36 = vpop.eup %6044  ;;  %6064 = vrcp.f32 %v2097_v49  ;;  %v1499_v50 = vadd.f32 %v7106_v43, %v9793_v52  ;;  %v7619_v15 = vpop.permute.xlu0 %3290 }
 0x229   :  { %v6047_v18 = vpop.eup %6046  ;;  %v2448_v20 = vmul.f32 %v7589_v3, %v6045_v36  ;;  %6066 = vrcp.f32 %v2106_v1  ;;  %v5255_v36 = vmul.f32 -1.442695, %v1492_v40  ;;  %9800 = vst [vmem:[#allocation41_spill] sm:$0xff] %v7619_v15 }
 0x22a   :  { %v6049_v63 = vpop.eup %6048  ;;  %v2457_v60 = vmul.f32 %v7589_v3, %v6047_v18  ;;  %6068 = vpow2.f32 %v5356_v54  ;;  %v9797_v18 = vld [vmem:[#allocation61_spill] sm:$0xff]  ;;  %v5262_v6 = vmul.f32 -1.442695, %v1499_v50 }
 0x22b   :  { %v6051_v17 = vpop.eup %6050  ;;  %v2725_v62 = vsel %vm2502_vm1, %v2448_v20, 0.0  ;;  %v2456_v37 = vmul.f32 %v7589_v3, %v6049_v63  ;;  %6070 = vpow2.f32 %v5236_v14  ;;  %v1508_v14 = vadd.f32 %v7092_v35, %v9797_v18  ;;  %v9798_v63 = vld [vmem:[#allocation71_spill] sm:$0xff] }
 0x22c   :  { %v6053_v39 = vpop.eup %6052  ;;  %2726 = vadd.xlane.f32.xlu0 %v2725_v62  ;;  %v2752_v49 = vsel %vm2502_vm1, %v2457_v60, 0.0  ;;  %v2465_v54 = vmul.f32 %v7589_v3, %v6051_v17  ;;  %6072 = vpow2.f32 %v5238_v25  ;;  %v1515_v52 = vadd.f32 %v7106_v43, %v9798_v63 }
 0x22d   :  { %v6055_v1 = vpop.eup %6054  ;;  %2753 = vadd.xlane.f32.xlu1 %v2752_v49  ;;  %6074 = vpow2.f32 %v5239_v4  ;;  %v2749_v17 = vsel %vm2502_vm1, %v2456_v37, 0.0  ;;  %v2464_v25 = vmul.f32 %v7589_v3, %v6053_v39  ;;  %v5263_v62 = vmul.f32 -1.442695, %v1500_v56  ;;  %v7615_v49 = vpop.permute.xlu1 %3278 }
 0x22e   :  { %v6057_v20 = vpop.eup %6056  ;;  %6076 = vpow2.f32 %v5246_v19  ;;  %9799 = vst [vmem:[#allocation37_spill] sm:$0xff] %v7615_v49  ;;  %v2776_v4 = vsel %vm2502_vm1, %v2465_v54, 0.0  ;;  %v2473_v40 = vmul.f32 %v7589_v3, %v6055_v1  ;;  %v5270_v19 = vmul.f32 -1.442695, %v1507_v31 }
 0x22f   :  { %v6059_v60 = vpop.eup %6058  ;;  %6078 = vpow2.f32 %v5247_v26  ;;  %v5271_v37 = vmul.f32 -1.442695, %v1508_v14  ;;  %v5278_v26 = vmul.f32 -1.442695, %v1515_v52  ;;  %v2773_v39 = vsel %vm2502_vm1, %v2464_v25, 0.0  ;;  %v7627_v25 = vpop.permute.xlu0 %3298 }
 0x230   :  { %v6061_v58 = vpop.eup %6060  ;;  %2750 = vadd.xlane.f32.xlu0 %v2749_v17  ;;  %6080 = vpow2.f32 %v5254_v9  ;;  %v2472_v63 = vmul.f32 %v7589_v3, %v6057_v20  ;;  %v2800_v9 = vsel %vm2502_vm1, %v2473_v40, 0.0  ;;  %v2481_v31 = vmul.f32 %v7589_v3, %v6059_v60  ;;  %9802 = vst [vmem:[#allocation51_spill] sm:$0xff] %v7627_v25  ;;  %v9809_v25 = vld [vmem:[#allocation30_spill] sm:$0xff] }
 0x231   :  { %v6063_v50 = vpop.eup %6062  ;;  %2777 = vadd.xlane.f32.xlu1 %v2776_v4  ;;  %6082 = vpow2.f32 %v5255_v36 }
 0x232   :  { %v6065_v18 = vpop.eup %6064  ;;  %6084 = vpow2.f32 %v5262_v6  ;;  %v7625_v6 = vpop.permute.xlu1 %3286  ;;  %v2797_v20 = vsel %vm2502_vm1, %v2472_v63, 0.0  ;;  %v2824_v40 = vsel %vm2502_vm1, %v2481_v31, 0.0  ;;  %v9803_v63 = vld [vmem:[#allocation75_spill] sm:$0xff] }
 0x233   :  { %v6067_v56 = vpop.eup %6066  ;;  %6086 = vpow2.f32 %v5263_v62  ;;  %9801 = vst [vmem:[#allocation47_spill] sm:$0xff] %v7625_v6  ;;  %v2480_v62 = vmul.f32 %v7589_v3, %v6061_v58  ;;  %v1516_v58 = vadd.f32 %v7092_v35, %v9803_v63  ;;  %v9807_v63 = vld [vmem:[#allocation89_spill] sm:$0xff] }
 0x234   :  { %v6069_v54 = vpop.eup %6068  ;;  %2774 = vadd.xlane.f32.xlu0 %v2773_v39  ;;  %6088 = vpow2.f32 %v5270_v19  ;;  %v2489_v19 = vmul.f32 %v7589_v3, %v6063_v50  ;;  %v2488_v50 = vmul.f32 %v7589_v3, %v6065_v18  ;;  %v1524_v18 = vadd.f32 %v7092_v35, %v9807_v63 }
 0x235   :  { %v6071_v1 = vpop.eup %6070  ;;  %2801 = vadd.xlane.f32.xlu1 %v2800_v9  ;;  %v2105_v36 = vadd.f32 1.0, %v6069_v54  ;;  %6090 = vpow2.f32 %v5271_v37  ;;  %v2821_v31 = vsel %vm2502_vm1, %v2480_v62, 0.0 }
 0x236   :  { %v6073_v14 = vpop.eup %6072  ;;  %v1985_v52 = vadd.f32 1.0, %v6071_v1  ;;  %6092 = vpow2.f32 %v5278_v26  ;;  %v9804_v1 = vld [vmem:[#allocation85_spill] sm:$0xff] }
 0x237   :  { %v6075_v17 = vpop.eup %6074  ;;  %6094 = vrcp.f32 %v2105_v36  ;;  %v1987_v4 = vadd.f32 1.0, %v6073_v14  ;;  %v1523_v36 = vadd.f32 %v7106_v43, %v9804_v1 }
 0x238   :  { %v6077_v60 = vpop.eup %6076  ;;  %2798 = vadd.xlane.f32.xlu0 %v2797_v20  ;;  %6096 = vrcp.f32 %v1985_v52  ;;  %v1988_v37 = vadd.f32 1.0, %v6075_v17  ;;  %v7639_v20 = vpop.permute.xlu1 %3294 }
 0x239   :  { %v6079_v39 = vpop.eup %6078  ;;  %2825 = vadd.xlane.f32.xlu1 %v2824_v40  ;;  %6098 = vrcp.f32 %v1987_v4  ;;  %v1995_v26 = vadd.f32 1.0, %v6077_v60  ;;  %9805 = vst [vmem:[#allocation57_spill] sm:$0xff] %v7639_v20  ;;  %v2848_v4 = vsel %vm2502_vm1, %v2489_v19, 0.0  ;;  %v2497_v60 = vmul.f32 %v7589_v3, %v6067_v56  ;;  %v9818_v20 = vld [vmem:[#allocation46_spill] sm:$0xff] }
 0x23a   :  { %v6081_v54 = vpop.eup %6080  ;;  %6100 = vrcp.f32 %v1988_v37  ;;  %v1996_v9 = vadd.f32 1.0, %v6079_v39  ;;  %v7643_v39 = vpop.permute.xlu0 %3309  ;;  %v5279_v19 = vmul.f32 -1.442695, %v1516_v58  ;;  %v1556_v56 = vadd.f32 %v7092_v35, %v9809_v25 }
 0x23b   :  { %v6083_v14 = vpop.eup %6082  ;;  %6102 = vrcp.f32 %v1995_v26  ;;  %v2003_v52 = vadd.f32 1.0, %v6081_v54  ;;  %9806 = vst [vmem:[#allocation61_spill] sm:$0xff] %v7643_v39  ;;  %v9808_v26 = vld [vmem:[#allocation22_spill] sm:$0xff]  ;;  %v2872_v63 = vsel %vm2502_vm1, %v2497_v60, 0.0  ;;  %v5287_v25 = vmul.f32 -1.442695, %v1524_v18 }
 0x23c   :  { %v6085_v17 = vpop.eup %6084  ;;  %2822 = vadd.xlane.f32.xlu0 %v2821_v31  ;;  %6104 = vrcp.f32 %v1996_v9  ;;  %v2004_v40 = vadd.f32 1.0, %v6083_v14  ;;  %v1548_v54 = vadd.f32 %v7092_v35, %v9808_v26  ;;  %v2845_v14 = vsel %vm2502_vm1, %v2488_v50, 0.0  ;;  %v7655_v50 = vpop.permute.xlu1 %3302 }
 0x23d   :  { %v6087_v37 = vpop.eup %6086  ;;  %2849 = vadd.xlane.f32.xlu1 %v2848_v4  ;;  %6106 = vrcp.f32 %v2003_v52  ;;  %v2011_v62 = vadd.f32 1.0, %v6085_v17  ;;  %v9810_v52 = vld [vmem:[#allocation18_spill] sm:$0xff]  ;;  %9811 = vst [vmem:[#allocation71_spill] sm:$0xff] %v7655_v50  ;;  %v9817_v50 = vld [vmem:[#allocation60_spill] sm:$0xff] }
 0x23e   :  { %v6089_v1 = vpop.eup %6088  ;;  %6108 = vrcp.f32 %v2004_v40  ;;  %v2012_v31 = vadd.f32 1.0, %v6087_v37  ;;  %v1547_v17 = vadd.f32 %v7106_v43, %v9810_v52  ;;  %v5286_v40 = vmul.f32 -1.442695, %v1523_v36  ;;  %v9812_v52 = vld [vmem:[#allocation40_spill] sm:$0xff] }
 0x23f   :  { %v6091_v9 = vpop.eup %6090  ;;  %6110 = vrcp.f32 %v2011_v62  ;;  %v2019_v4 = vadd.f32 1.0, %v6089_v1  ;;  %v5311_v23 = vmul.f32 -1.442695, %v1548_v54  ;;  %v5319_v1 = vmul.f32 -1.442695, %v1556_v56  ;;  %v9815_v56 = vld [vmem:[#allocation50_spill] sm:$0xff] }
 0x240   :  { %v6093_v30 = vpop.eup %6092  ;;  %2846 = vadd.xlane.f32.xlu0 %v2845_v14  ;;  %6112 = vrcp.f32 %v2012_v31  ;;  %v2020_v26 = vadd.f32 1.0, %v6091_v9  ;;  %v1564_v14 = vadd.f32 %v7092_v35, %v9812_v52  ;;  %v7660_v31 = vpop.permute.xlu0 %3317  ;;  %v5310_v9 = vmul.f32 -1.442695, %v1547_v17  ;;  %v9816_v17 = vld [vmem:[#allocation36_spill] sm:$0xff] }
 0x241   :  { %v6095_v37 = vpop.eup %6094  ;;  %2873 = vadd.xlane.f32.xlu1 %v2872_v63  ;;  %6114 = vrcp.f32 %v2019_v4  ;;  %v2027_v58 = vadd.f32 1.0, %v6093_v30  ;;  %9813 = vst [vmem:[#allocation75_spill] sm:$0xff] %v7660_v31  ;;  %v9814_v30 = vld [vmem:[#allocation26_spill] sm:$0xff]  ;;  %v7677_v41 = vpop.permute.xlu1 %3313 }
 0x242   :  { %v6097_v42 = vpop.eup %6096  ;;  %v2496_v62 = vmul.f32 %v7589_v3, %v6095_v37  ;;  %6116 = vrcp.f32 %v2020_v26  ;;  %v1555_v18 = vadd.f32 %v7106_v43, %v9814_v30  ;;  %v1572_v26 = vadd.f32 %v7092_v35, %v9815_v56  ;;  %9819 = vst [vmem:[#allocation85_spill] sm:$0xff] %v7677_v41 }
 0x243   :  { %v6099_v60 = vpop.eup %6098  ;;  %v2376_v36 = vmul.f32 %v7589_v3, %v6097_v42  ;;  %6118 = vrcp.f32 %v2027_v58  ;;  %v1563_v58 = vadd.f32 %v7106_v43, %v9816_v17 }
 0x244   :  { %v6101_v54 = vpop.eup %6100  ;;  %v2869_v4 = vsel %vm2502_vm1, %v2496_v62, 0.0  ;;  %v2378_v63 = vmul.f32 %v7589_v3, %v6099_v60  ;;  %6120 = vpow2.f32 %v5279_v19  ;;  %v5327_v62 = vmul.f32 -1.442695, %v1564_v14  ;;  %v7681_v14 = vpop.permute.xlu0 %3325 }
 0x245   :  { %v6103_v37 = vpop.eup %6102  ;;  %2870 = vadd.xlane.f32.xlu0 %v2869_v4  ;;  %v2509_v52 = vsel %vm2502_vm1, %v2376_v36, 0.0  ;;  %v2379_v42 = vmul.f32 %v7589_v3, %v6101_v54  ;;  %6122 = vpow2.f32 %v5286_v40  ;;  %v1580_v19 = vadd.f32 %v7092_v35, %v9817_v50  ;;  %9820 = vst [vmem:[#allocation89_spill] sm:$0xff] %v7681_v14 }
 0x246   :  { %v6105_v30 = vpop.eup %6104  ;;  %2510 = vadd.xlane.f32.xlu1 %v2509_v52  ;;  %6124 = vpow2.f32 %v5287_v25  ;;  %v5318_v56 = vmul.f32 -1.442695, %v1555_v18  ;;  %v1571_v4 = vadd.f32 %v7106_v43, %v9818_v20  ;;  %v2515_v40 = vsel %vm2502_vm1, %v2378_v63, 0.0 }
 0x247   :  { %v6107_v60 = vpop.eup %6106  ;;  %6126 = vpow2.f32 %v5311_v23  ;;  %v2386_v54 = vmul.f32 %v7589_v3, %v6103_v37  ;;  %v5335_v52 = vmul.f32 -1.442695, %v1572_v26  ;;  %v2518_v50 = vsel %vm2502_vm1, %v2379_v42, 0.0 }
 0x248   :  { %v6109_v36 = vpop.eup %6108  ;;  %6128 = vpow2.f32 %v5319_v1  ;;  %v2387_v23 = vmul.f32 %v7589_v3, %v6105_v30  ;;  %v5326_v18 = vmul.f32 -1.442695, %v1563_v58  ;;  %v5343_v17 = vmul.f32 -1.442695, %v1580_v19  ;;  %v7693_v19 = vpop.permute.xlu1 %3321 }
 0x249   :  { %v6111_v25 = vpop.eup %6110  ;;  %2516 = vadd.xlane.f32.xlu0 %v2515_v40  ;;  %6130 = vpow2.f32 %v5310_v9  ;;  %v5334_v63 = vmul.f32 -1.442695, %v1571_v4  ;;  %v2539_v1 = vsel %vm2502_vm1, %v2386_v54, 0.0  ;;  %v2394_v26 = vmul.f32 %v7589_v3, %v6107_v60  ;;  %v9821_v40 = vld [vmem:[#allocation74_spill] sm:$0xff]  ;;  %9822 = vst [vmem:[#allocation22_spill] sm:$0xff] %v7693_v19  ;;  %v9826_v19 = vld [vmem:[#allocation84_spill] sm:$0xff] }
 0x24a   :  { %v6113_v20 = vpop.eup %6112  ;;  %2519 = vadd.xlane.f32.xlu1 %v2518_v50  ;;  %6132 = vpow2.f32 %v5327_v62  ;;  %v1588_v42 = vadd.f32 %v7092_v35, %v9821_v40  ;;  %v2542_v9 = vsel %vm2502_vm1, %v2387_v23, 0.0  ;;  %v2395_v58 = vmul.f32 %v7589_v3, %v6109_v36 }
 0x24b   :  { %v6115_v15 = vpop.eup %6114  ;;  %6134 = vpow2.f32 %v5318_v56  ;;  %v2563_v54 = vsel %vm2502_vm1, %v2394_v26, 0.0 }
 0x24c   :  { %v6117_v37 = vpop.eup %6116  ;;  %6136 = vpow2.f32 %v5335_v52  ;;  %v2402_v52 = vmul.f32 %v7589_v3, %v6111_v25  ;;  %v5351_v23 = vmul.f32 -1.442695, %v1588_v42  ;;  %v2566_v36 = vsel %vm2502_vm1, %v2395_v58, 0.0 }
 0x24d   :  { %v6119_v14 = vpop.eup %6118  ;;  %2540 = vadd.xlane.f32.xlu0 %v2539_v1  ;;  %6138 = vpow2.f32 %v5326_v18  ;;  %v2403_v18 = vmul.f32 %v7589_v3, %v6113_v20  ;;  %v2410_v58 = vmul.f32 %v7589_v3, %v6115_v15 }
 0x24e   :  { %v6121_v62 = vpop.eup %6120  ;;  %2543 = vadd.xlane.f32.xlu1 %v2542_v9  ;;  %6140 = vpow2.f32 %v5343_v17 }
 0x24f   :  { %v7691_v30 = vpop.xlane.xlu0 %2507  ;;  %v6123_v56 = vpop.eup %6122  ;;  %v2028_v60 = vadd.f32 1.0, %v6121_v62  ;;  %6142 = vpow2.f32 %v5334_v63 }
 0x250   :  { %v6125_v4 = vpop.eup %6124  ;;  %v2035_v50 = vadd.f32 1.0, %v6123_v56  ;;  %v2587_v56 = vsel %vm2502_vm1, %v2402_v52, 0.0  ;;  %v9824_v52 = vld [vmem:[#allocation88_spill] sm:$0xff] }
 0x251   :  { %v6127_v1 = vpop.eup %6126  ;;  %2564 = vadd.xlane.f32.xlu0 %v2563_v54  ;;  %6144 = vrcp.f32 %v2028_v60  ;;  %v2036_v40 = vadd.f32 1.0, %v6125_v4  ;;  %v2590_v60 = vsel %vm2502_vm1, %v2403_v18, 0.0  ;;  %v2411_v4 = vmul.f32 %v7589_v3, %v6117_v37 }
 0x252   :  { %v6129_v9 = vpop.eup %6128  ;;  %2567 = vadd.xlane.f32.xlu1 %v2566_v36  ;;  %v7699_v17 = vpop.xlane.xlu1 %2531  ;;  %6146 = vrcp.f32 %v2035_v50  ;;  %v2060_v63 = vadd.f32 1.0, %v6127_v1  ;;  %v1596_v15 = vadd.f32 %v7092_v35, %v9824_v52  ;;  %v1595_v37 = vadd.f32 %v7106_v43, %v9826_v19 }
 0x253   :  { %v6131_v62 = vpop.eup %6130  ;;  %6148 = vrcp.f32 %v2036_v40  ;;  %v7701_v26 = vpop.xlane.xlu0 %2504  ;;  %v2068_v25 = vadd.f32 1.0, %v6129_v9  ;;  %v9823_v40 = vld [vmem:[#allocation56_spill] sm:$0xff] }
 0x254   :  { %v6133_v42 = vpop.eup %6132  ;;  %v2059_v54 = vadd.f32 1.0, %v6131_v62  ;;  %6150 = vpow2.f32 %v5351_v23  ;;  %v1579_v9 = vadd.f32 %v7106_v43, %v9823_v40 }
 0x255   :  { %v6135_v20 = vpop.eup %6134  ;;  %2588 = vadd.xlane.f32.xlu0 %v2587_v56  ;;  %6152 = vrcp.f32 %v2060_v63  ;;  %v2076_v50 = vadd.f32 1.0, %v6133_v42  ;;  %v9825_v56 = vld [vmem:[#allocation70_spill] sm:$0xff]  ;;  %v2611_v42 = vsel %vm2502_vm1, %v2410_v58, 0.0 }
 0x256   :  { %v6137_v1 = vpop.eup %6136  ;;  %2591 = vadd.xlane.f32.xlu1 %v2590_v60  ;;  %6154 = vrcp.f32 %v2068_v25  ;;  %v2067_v36 = vadd.f32 1.0, %v6135_v20  ;;  %v1587_v18 = vadd.f32 %v7106_v43, %v9825_v56  ;;  %v2418_v25 = vmul.f32 %v7589_v3, %v6119_v14  ;;  %v7717_v20 = vpop.xlane.xlu1 %2555  ;;  %v9827_v56 = vld [vmem:[#allocation107_spill] sm:$0xff] }
 0x257   :  { %v6139_v62 = vpop.eup %6138  ;;  %6156 = vrcp.f32 %v2059_v54  ;;  %v2084_v23 = vadd.f32 1.0, %v6137_v1  ;;  %v2614_v54 = vsel %vm2502_vm1, %v2411_v4, 0.0  ;;  %v7720_v1 = vpop.xlane.xlu0 %2528  ;;  %v1477_v19 = vadd.f32 %v9828_v0, %v9827_v56  ;;  %v9831_v0 = vld [vmem:[#allocation25_spill] sm:$0xff] }
 0x258   :  { %v6141_v63 = vpop.eup %6140  ;;  %6158 = vrcp.f32 %v2076_v50  ;;  %v2075_v60 = vadd.f32 1.0, %v6139_v62  ;;  %v5342_v7 = vmul.f32 -1.442695, %v1579_v9  ;;  %v5359_v14 = vmul.f32 -1.442695, %v1596_v15 }
 0x259   :  { %v6143_v40 = vpop.eup %6142  ;;  %2612 = vadd.xlane.f32.xlu0 %v2611_v42  ;;  %6160 = vrcp.f32 %v2067_v36  ;;  %v2092_v52 = vadd.f32 1.0, %v6141_v63  ;;  %v5350_v50 = vmul.f32 -1.442695, %v1587_v18  ;;  %v5358_v62 = vmul.f32 -1.442695, %v1595_v37  ;;  %v9830_v42 = vld [vmem:[#allocation21_spill] sm:$0xff] }
 0x25a   :  { %2615 = vadd.xlane.f32.xlu1 %v2614_v54  ;;  %6162 = vrcp.f32 %v2084_v23  ;;  %v2083_v58 = vadd.f32 1.0, %v6143_v40  ;;  %v1478_v38 = vadd.f32 %v9830_v42, %v9829_v5  ;;  %v2635_v6 = vsel %vm2502_vm1, %v2418_v25, 0.0  ;;  %v9832_v18 = vld [vmem:[#allocation29_spill] sm:$0xff]  ;;  %v7735_v54 = vpop.xlane.xlu1 %2579 }
 0x25b   :  { %v6145_v31 = vpop.eup %6144  ;;  %6164 = vrcp.f32 %v2075_v60  ;;  %v1485_v63 = vadd.f32 %v9831_v0, %v9827_v56  ;;  %v5240_v15 = vmul.f32 -1.442695, %v1477_v19  ;;  %v1486_v37 = vadd.f32 %v9832_v18, %v9829_v5  ;;  %v7741_v19 = vpop.xlane.xlu0 %2552 }
 0x25c   :  { %v6147_v4 = vpop.eup %6146  ;;  %v2419_v36 = vmul.f32 %v7589_v3, %v6145_v31  ;;  %6166 = vrcp.f32 %v2092_v52  ;;  %v9833_v31 = vld [vmem:[#allocation35_spill] sm:$0xff] }
 0x25d   :  { %v6149_v23 = vpop.eup %6148  ;;  %2636 = vadd.xlane.f32.xlu0 %v2635_v6  ;;  %v2426_v9 = vmul.f32 %v7589_v3, %v6147_v4  ;;  %6168 = vrcp.f32 %v2083_v58  ;;  %v1493_v52 = vadd.f32 %v9833_v31, %v9827_v56  ;;  %v9834_v6 = vld [vmem:[#allocation101_spill] sm:$0xff]  ;;  %v5241_v58 = vmul.f32 -1.442695, %v1478_v38 }
 0x25e   :  { %v6151_v60 = vpop.eup %6150  ;;  %v2638_v40 = vsel %vm2502_vm1, %v2419_v36, 0.0  ;;  %v2427_v25 = vmul.f32 %v7589_v3, %v6149_v23  ;;  %6170 = vpow2.f32 %v5342_v7  ;;  %v1534_v4 = vadd.f32 %v9834_v6, %v9829_v5 }
 0x25f   :  { %v6153_v42 = vpop.eup %6152  ;;  %2639 = vadd.xlane.f32.xlu1 %v2638_v40  ;;  %6172 = vpow2.f32 %v5359_v14  ;;  %v2659_v36 = vsel %vm2502_vm1, %v2426_v9, 0.0  ;;  %v2434_v23 = vmul.f32 %v7589_v3, %v7583_v27  ;;  %v5248_v7 = vmul.f32 -1.442695, %v1485_v63 }
 0x260   :  { %v6155_v0 = vpop.eup %6154  ;;  %6174 = vpow2.f32 %v5350_v50  ;;  %v5249_v31 = vmul.f32 -1.442695, %v1486_v37  ;;  %v1494_v6 = vadd.f32 %v9835_v61, %v9829_v5  ;;  %v2662_v21 = vsel %vm2502_vm1, %v2427_v25, 0.0  ;;  %v9836_v50 = vld [vmem:[#allocation108_spill] sm:$0xff]  ;;  %v7755_v25 = vpop.xlane.xlu0 %2576 }
 0x261   :  { %v6157_v18 = vpop.eup %6156  ;;  %2660 = vadd.xlane.f32.xlu0 %v2659_v36  ;;  %6176 = vpow2.f32 %v5358_v62  ;;  %v2451_v38 = vmul.f32 %v7589_v3, %v6153_v42  ;;  %v5256_v14 = vmul.f32 -1.442695, %v1493_v52  ;;  %v5297_v13 = vmul.f32 -1.442695, %v1534_v4  ;;  %v7753_v36 = vpop.xlane.xlu1 %2603  ;;  %v9837_v52 = vld [vmem:[#allocation45_spill] sm:$0xff] }
 0x262   :  { %v6159_v40 = vpop.eup %6158  ;;  %6178 = vpow2.f32 %v5240_v15  ;;  %v5300_v63 = vmul.f32 -1.442695, %v9836_v50  ;;  %v2683_v62 = vsel %vm2502_vm1, %v2434_v23, 0.0  ;;  %v2450_v37 = vmul.f32 %v7589_v3, %v6157_v18 }
 0x263   :  { %v6161_v9 = vpop.eup %6160  ;;  %2663 = vadd.xlane.f32.xlu1 %v2662_v21  ;;  %6180 = vpow2.f32 %v5241_v58  ;;  %v2100_v15 = vadd.f32 1.0, %v6151_v60  ;;  %v1501_v21 = vadd.f32 %v9837_v52, %v9827_v56  ;;  %v2734_v4 = vsel %vm2502_vm1, %v2451_v38, 0.0 }
 0x264   :  { %v6163_v27 = vpop.eup %6162  ;;  %6182 = vpow2.f32 %v5248_v7  ;;  %v2459_v58 = vmul.f32 %v7589_v3, %v6155_v0  ;;  %v5257_v23 = vmul.f32 -1.442695, %v1494_v6  ;;  %v9838_v7 = vld [vmem:[#allocation49_spill] sm:$0xff]  ;;  %v2731_v60 = vsel %vm2502_vm1, %v2450_v37, 0.0  ;;  %v9839_v0 = vld [vmem:[#allocation55_spill] sm:$0xff] }
 0x265   :  { %v6165_v61 = vpop.eup %6164  ;;  %2684 = vadd.xlane.f32.xlu0 %v2683_v62  ;;  %6184 = vpow2.f32 %v5249_v31  ;;  %v1502_v50 = vadd.f32 %v9838_v7, %v9829_v5  ;;  %v2458_v31 = vmul.f32 %v7589_v3, %v6161_v9  ;;  %v5264_v45 = vmul.f32 -1.442695, %v1501_v21 }
 0x266   :  { %v7759_v42 = vpop.eup %6166  ;;  %6186 = vpow2.f32 %v5256_v14  ;;  %v1509_v6 = vadd.f32 %v9839_v0, %v9827_v56  ;;  %v2466_v0 = vmul.f32 %v7589_v3, %v6165_v61 }
 0x267   :  { %v6169_v18 = vpop.eup %6168  ;;  %6188 = vpow2.f32 %v5297_v13  ;;  %2735 = vadd.xlane.f32.xlu1 %v2734_v4  ;;  %v2758_v13 = vsel %vm2502_vm1, %v2459_v58, 0.0  ;;  %v2467_v4 = vmul.f32 %v7589_v3, %v6159_v40  ;;  %v2044_v40 = vadd.f32 1.0, %v7541_v28 }
 0x268   :  { %v6171_v62 = vpop.eup %6170  ;;  %6190 = vpow2.f32 %v5300_v63 }
 0x269   :  { %v6173_v52 = vpop.eup %6172  ;;  %2732 = vadd.xlane.f32.xlu0 %v2731_v60  ;;  %6192 = vrcp.f32 %v2100_v15  ;;  %v2091_v38 = vadd.f32 1.0, %v6171_v62  ;;  %v5265_v62 = vmul.f32 -1.442695, %v1502_v50  ;;  %v2755_v60 = vsel %vm2502_vm1, %v2458_v31, 0.0 }
 0x26a   :  { %v6175_v14 = vpop.eup %6174  ;;  %v2108_v63 = vadd.f32 1.0, %v6173_v52  ;;  %6194 = vpow2.f32 %v5257_v23  ;;  %v2782_v52 = vsel %vm2502_vm1, %v2467_v4, 0.0  ;;  %v5272_v50 = vmul.f32 -1.442695, %v1509_v6  ;;  %v9841_v6 = vld [vmem:[#allocation69_spill] sm:$0xff] }
 0x26b   :  { %v6177_v37 = vpop.eup %6176  ;;  %2759 = vadd.xlane.f32.xlu1 %v2758_v13  ;;  %6196 = vrcp.f32 %v2091_v38  ;;  %v2099_v15 = vadd.f32 1.0, %v6175_v14  ;;  %v2475_v13 = vmul.f32 %v7589_v3, %v6163_v27  ;;  %v2474_v4 = vmul.f32 %v7589_v3, %v6169_v18 }
 0x26c   :  { %v7771_v7 = vpop.xlane.xlu1 %2627  ;;  %v6179_v21 = vpop.eup %6178  ;;  %6198 = vrcp.f32 %v2108_v63  ;;  %v2107_v58 = vadd.f32 1.0, %v6177_v37  ;;  %v9840_v63 = vld [vmem:[#allocation59_spill] sm:$0xff]  ;;  %v2483_v18 = vmul.f32 %v7589_v3, %v7759_v42 }
 0x26d   :  { %v7773_v9 = vpop.xlane.xlu0 %2600  ;;  %v6181_v41 = vpop.eup %6180  ;;  %2756 = vadd.xlane.f32.xlu0 %v2755_v60  ;;  %6200 = vrcp.f32 %v2099_v15  ;;  %v1989_v61 = vadd.f32 1.0, %v6179_v21  ;;  %v1510_v28 = vadd.f32 %v9840_v63, %v9829_v5  ;;  %v2779_v15 = vsel %vm2502_vm1, %v2466_v0, 0.0  ;;  %v9842_v21 = vld [vmem:[#allocation73_spill] sm:$0xff] }
 0x26e   :  { %v6183_v23 = vpop.eup %6182  ;;  %6202 = vpow2.f32 %v5264_v45  ;;  %v1990_v60 = vadd.f32 1.0, %v6181_v41  ;;  %v2806_v63 = vsel %vm2502_vm1, %v2475_v13, 0.0  ;;  %v2803_v34 = vsel %vm2502_vm1, %v2474_v4, 0.0 }
 0x26f   :  { %v6185_v14 = vpop.eup %6184  ;;  %2783 = vadd.xlane.f32.xlu1 %v2782_v52  ;;  %6204 = vrcp.f32 %v2107_v58  ;;  %v1997_v45 = vadd.f32 1.0, %v6183_v23  ;;  %v1517_v52 = vadd.f32 %v9841_v6, %v9827_v56  ;;  %v1518_v58 = vadd.f32 %v9842_v21, %v9829_v5  ;;  %v9845_v21 = vld [vmem:[#allocation87_spill] sm:$0xff] }
 0x270   :  { %v7780_v38 = vpop.xlane.xlu1 %2651  ;;  %v6187_v37 = vpop.eup %6186  ;;  %6206 = vpow2.f32 %v5265_v62  ;;  %v1998_v62 = vadd.f32 1.0, %v6185_v14  ;;  %v1526_v22 = vadd.f32 %v9845_v21, %v9829_v5  ;;  %v5273_v42 = vmul.f32 -1.442695, %v1510_v28 }
 0x271   :  { %v7782_v31 = vpop.xlane.xlu0 %2624  ;;  %v7788_v27 = vpop.eup %6188  ;;  %6208 = vrcp.f32 %v2044_v40  ;;  %2780 = vadd.xlane.f32.xlu0 %v2779_v15  ;;  %v2005_v23 = vadd.f32 1.0, %v6187_v37  ;;  %v9844_v15 = vld [vmem:[#allocation83_spill] sm:$0xff]  ;;  %v5281_v14 = vmul.f32 -1.442695, %v1518_v58  ;;  %v2830_v24 = vsel %vm2502_vm1, %v2483_v18, 0.0  ;;  %v9849_v18 = vld [vmem:[#allocation16_spill] sm:$0xff] }
 0x272   :  { %v7794_v39 = vpop.eup %6190  ;;  %6210 = vpow2.f32 %v5272_v50  ;;  %v1525_v6 = vadd.f32 %v9844_v15, %v9827_v56  ;;  %v5280_v50 = vmul.f32 -1.442695, %v1517_v52 }
 0x273   :  { %v6193_v0 = vpop.eup %6192  ;;  %2807 = vadd.xlane.f32.xlu1 %v2806_v63  ;;  %6212 = vrcp.f32 %v1989_v61  ;;  %v9846_v63 = vld [vmem:[#allocation99_spill] sm:$0xff] }
 0x274   :  { %v7799_v41 = vpop.xlane.xlu1 %2723  ;;  %v6195_v13 = vpop.eup %6194  ;;  %6214 = vrcp.f32 %v1990_v60  ;;  %v1533_v61 = vadd.f32 %v9846_v63, %v9827_v56  ;;  %v2491_v15 = vmul.f32 %v7589_v3, %v6193_v0  ;;  %v5289_v60 = vmul.f32 -1.442695, %v1526_v22 }
 0x275   :  { %9843 = vst [vmem:[#allocation30_spill] sm:$0xff] %v7799_v41  ;;  %v7801_v40 = vpop.xlane.xlu0 %2648  ;;  %v6197_v41 = vpop.eup %6196  ;;  %2804 = vadd.xlane.f32.xlu0 %v2803_v34  ;;  %6216 = vrcp.f32 %v1997_v45  ;;  %v5288_v34 = vmul.f32 -1.442695, %v1525_v6  ;;  %v1549_v0 = vadd.f32 %v9849_v18, %v9827_v56  ;;  %v2006_v63 = vadd.f32 1.0, %v6195_v13  ;;  %v9852_v18 = vld [vmem:[#allocation20_spill] sm:$0xff] }
 0x276   :  { %v6199_v37 = vpop.eup %6198  ;;  %v2482_v21 = vmul.f32 %v7589_v3, %v6197_v41  ;;  %6218 = vrcp.f32 %v1998_v62  ;;  %v5296_v22 = vmul.f32 -1.442695, %v1533_v61 }
 0x277   :  { %v6201_v4 = vpop.eup %6200  ;;  %2831 = vadd.xlane.f32.xlu1 %v2830_v24  ;;  %6220 = vrcp.f32 %v2005_v23  ;;  %v2854_v24 = vsel %vm2502_vm1, %v2491_v15, 0.0  ;;  %v2499_v23 = vmul.f32 %v7589_v3, %v6199_v37  ;;  %v5312_v37 = vmul.f32 -1.442695, %v1549_v0 }
 0x278   :  { %v7813_v53 = vpop.xlane.xlu1 %2747  ;;  %v6203_v45 = vpop.eup %6202  ;;  %v2827_v52 = vsel %vm2502_vm1, %v2482_v21, 0.0  ;;  %v2490_v58 = vmul.f32 %v7589_v3, %v6201_v4  ;;  %6222 = vpow2.f32 %v5273_v42 }
 0x279   :  { %9847 = vst [vmem:[#allocation18_spill] sm:$0xff] %v7813_v53  ;;  %v7815_v28 = vpop.xlane.xlu0 %2672  ;;  %v6205_v41 = vpop.eup %6204  ;;  %2828 = vadd.xlane.f32.xlu0 %v2827_v52  ;;  %6224 = vpow2.f32 %v5280_v50  ;;  %v2013_v42 = vadd.f32 1.0, %v6203_v45  ;;  %v1550_v52 = vadd.f32 %v9852_v18, %v9829_v5  ;;  %v2878_v45 = vsel %vm2502_vm1, %v2499_v23, 0.0 }
 0x27a   :  { %9848 = vst [vmem:[#allocation40_spill] sm:$0xff] %v7815_v28  ;;  %v6207_v62 = vpop.eup %6206  ;;  %6226 = vpow2.f32 %v5281_v14  ;;  %v2851_v50 = vsel %vm2502_vm1, %v2490_v58, 0.0  ;;  %v2498_v15 = vmul.f32 %v7589_v3, %v6205_v41  ;;  %v9855_v58 = vld [vmem:[#allocation24_spill] sm:$0xff] }
 0x27b   :  { %v6209_v21 = vpop.eup %6208  ;;  %2855 = vadd.xlane.f32.xlu1 %v2854_v24  ;;  %6228 = vpow2.f32 %v5288_v34  ;;  %v2014_v61 = vadd.f32 1.0, %v6207_v62  ;;  %v1557_v18 = vadd.f32 %v9855_v58, %v9827_v56  ;;  %v9858_v58 = vld [vmem:[#allocation34_spill] sm:$0xff] }
 0x27c   :  { %v7823_v6 = vpop.xlane.xlu1 %2771  ;;  %v6211_v13 = vpop.eup %6210  ;;  %6230 = vpow2.f32 %v5289_v60  ;;  %v2435_v34 = vmul.f32 %v7589_v3, %v6209_v21  ;;  %v2875_v23 = vsel %vm2502_vm1, %v2498_v15, 0.0 }
 0x27d   :  { %9850 = vst [vmem:[#allocation26_spill] sm:$0xff] %v7823_v6  ;;  %v7825_v4 = vpop.xlane.xlu0 %2720  ;;  %v6213_v53 = vpop.eup %6212  ;;  %v9853_v6 = vld [vmem:[#allocation109_spill] sm:$0xff]  ;;  %2852 = vadd.xlane.f32.xlu0 %v2851_v50  ;;  %6232 = vrcp.f32 %v2006_v63  ;;  %v2021_v0 = vadd.f32 1.0, %v6211_v13  ;;  %v9857_v63 = vld [vmem:[#allocation28_spill] sm:$0xff]  ;;  %v5313_v50 = vmul.f32 -1.442695, %v1550_v52 }
 0x27e   :  { %9851 = vst [vmem:[#allocation50_spill] sm:$0xff] %v7825_v4  ;;  %v5298_v14 = vmul.f32 -1.442695, %v9853_v6  ;;  %v6215_v24 = vpop.eup %6214  ;;  %6234 = vpow2.f32 %v5296_v22  ;;  %v1558_v62 = vadd.f32 %v9857_v63, %v9829_v5  ;;  %v2380_v21 = vmul.f32 %v7589_v3, %v6213_v53 }
 0x27f   :  { %v6217_v41 = vpop.eup %6216  ;;  %2879 = vadd.xlane.f32.xlu1 %v2878_v45  ;;  %6236 = vrcp.f32 %v2013_v42  ;;  %v1565_v45 = vadd.f32 %v9858_v58, %v9827_v56  ;;  %v2686_v42 = vsel %vm2502_vm1, %v2435_v34, 0.0  ;;  %v2381_v13 = vmul.f32 %v7589_v3, %v6215_v24 }
 0x280   :  { %v7834_v4 = vpop.xlane.xlu1 %2795  ;;  %v6219_v6 = vpop.eup %6218  ;;  %6238 = vpow2.f32 %v5312_v37  ;;  %v5321_v52 = vmul.f32 -1.442695, %v1558_v62  ;;  %v9860_v37 = vld [vmem:[#allocation38_spill] sm:$0xff]  ;;  %v2521_v58 = vsel %vm2502_vm1, %v2380_v21, 0.0  ;;  %v9863_v21 = vld [vmem:[#allocation44_spill] sm:$0xff] }
 0x281   :  { %9854 = vst [vmem:[#allocation36_spill] sm:$0xff] %v7834_v4  ;;  %v7838_v60 = vpop.xlane.xlu0 %2744  ;;  %v6221_v22 = vpop.eup %6220  ;;  %2876 = vadd.xlane.f32.xlu0 %v2875_v23  ;;  %6240 = vrcp.f32 %v2014_v61  ;;  %v1566_v61 = vadd.f32 %v9860_v37, %v9829_v5  ;;  %v2389_v62 = vmul.f32 %v7589_v3, %v6219_v6 }
 0x282   :  { %9856 = vst [vmem:[#allocation60_spill] sm:$0xff] %v7838_v60  ;;  %v6223_v4 = vpop.eup %6222  ;;  %6242 = vpow2.f32 %v5298_v14  ;;  %v5320_v60 = vmul.f32 -1.442695, %v1557_v18  ;;  %v2388_v14 = vmul.f32 %v7589_v3, %v6217_v41  ;;  %v1573_v41 = vadd.f32 %v9863_v21, %v9827_v56 }
 0x283   :  { %v6225_v15 = vpop.eup %6224  ;;  %2687 = vadd.xlane.f32.xlu1 %v2686_v42  ;;  %6244 = vrcp.f32 %v2021_v0  ;;  %v2022_v53 = vadd.f32 1.0, %v6223_v4  ;;  %v5328_v42 = vmul.f32 -1.442695, %v1565_v45  ;;  %v2524_v4 = vsel %vm2502_vm1, %v2381_v13, 0.0 }
 0x284   :  { %v7848_v63 = vpop.xlane.xlu1 %2819  ;;  %v6227_v23 = vpop.eup %6226  ;;  %v2029_v49 = vadd.f32 1.0, %v6225_v15  ;;  %6246 = vpow2.f32 %v5313_v50  ;;  %v2396_v45 = vmul.f32 %v7589_v3, %v6221_v22 }
 0x285   :  { %9859 = vst [vmem:[#allocation46_spill] sm:$0xff] %v7848_v63  ;;  %v6229_v34 = vpop.eup %6228  ;;  %2522 = vadd.xlane.f32.xlu0 %v2521_v58  ;;  %6248 = vrcp.f32 %v2022_v53  ;;  %v2030_v18 = vadd.f32 1.0, %v6227_v23  ;;  %v2545_v53 = vsel %vm2502_vm1, %v2388_v14, 0.0  ;;  %v5329_v23 = vmul.f32 -1.442695, %v1566_v61 }
 0x286   :  { %v6231_v0 = vpop.eup %6230  ;;  %6250 = vpow2.f32 %v5320_v60  ;;  %v2037_v50 = vadd.f32 1.0, %v6229_v34  ;;  %v7872_v14 = vld [vmem:[%s9607_s7] ss:$0 sm:$0xff]  ;;  %v2046_v34 = vadd.f32 1.0, %v7788_v27  ;;  %s6512_s7 = smov 32  }
 0x287   :  { %v7854_v24 = vpop.xlane.xlu0 %2768  ;;  %v6233_v15 = vpop.eup %6232  ;;  %2525 = vadd.xlane.f32.xlu1 %v2524_v4  ;;  %6252 = vrcp.f32 %v2029_v49  ;;  %v2038_v60 = vadd.f32 1.0, %v6231_v0  ;;  %v2548_v49 = vsel %vm2502_vm1, %v2389_v62, 0.0  ;;  %v9867_v0 = vld [vmem:[#allocation54_spill] sm:$0xff] }
 0x288   :  { %9861 = vst [vmem:[#allocation74_spill] sm:$0xff] %v7854_v24  ;;  %v7858_v37 = vpop.xlane.xlu1 %2843  ;;  %v6235_v58 = vpop.eup %6234  ;;  %6254 = vpow2.f32 %v5321_v52  ;;  %v2397_v3 = vmul.f32 %v7872_v14, %v6233_v15  ;;  %v5336_v52 = vmul.f32 -1.442695, %v1573_v41  ;;  %v1581_v4 = vadd.f32 %v9867_v0, %v9827_v56  ;;  %v9868_v15 = vld [vmem:[#allocation58_spill] sm:$0xff] }
 0x289   :  { %9862 = vst [vmem:[#allocation56_spill] sm:$0xff] %v7858_v37  ;;  %v6237_v13 = vpop.eup %6236  ;;  %2546 = vadd.xlane.f32.xlu0 %v2545_v53  ;;  %6256 = vrcp.f32 %v2030_v18  ;;  %v9865_v37 = vld [vmem:[#allocation48_spill] sm:$0xff]  ;;  %v2045_v18 = vadd.f32 1.0, %v6235_v58 }
 0x28a   :  { %v1574_v21 = vadd.f32 %v9865_v37, %v9829_v5  ;;  %v6239_v63 = vpop.eup %6238  ;;  %6258 = vpow2.f32 %v5328_v42  ;;  %v2569_v37 = vsel %vm2502_vm1, %v2396_v45, 0.0  ;;  %v2404_v53 = vmul.f32 %v7872_v14, %v6237_v13  ;;  %v9871_v45 = vld [vmem:[#allocation68_spill] sm:$0xff] }
 0x28b   :  { %v7864_v6 = vpop.xlane.xlu0 %2792  ;;  %v6241_v61 = vpop.eup %6240  ;;  %2549 = vadd.xlane.f32.xlu1 %v2548_v49  ;;  %6260 = vrcp.f32 %v2037_v50  ;;  %v1582_v42 = vadd.f32 %v9868_v15, %v9829_v5  ;;  %v2061_v27 = vadd.f32 1.0, %v6239_v63  ;;  %v2572_v49 = vsel %vm2502_vm1, %v2397_v3, 0.0  ;;  %v9872_v15 = vld [vmem:[#allocation72_spill] sm:$0xff] }
 0x28c   :  { %9864 = vst [vmem:[#allocation88_spill] sm:$0xff] %v7864_v6  ;;  %v7875_v22 = vpop.xlane.xlu1 %2867  ;;  %v7880_v62 = vpop.eup %6242  ;;  %6262 = vpow2.f32 %v5329_v23  ;;  %v5337_v50 = vmul.f32 -1.442695, %v1574_v21  ;;  %v2405_v0 = vmul.f32 %v7872_v14, %v6241_v61  ;;  %v1589_v23 = vadd.f32 %v9871_v45, %v9827_v56 }
 0x28d   :  { %9866 = vst [vmem:[#allocation70_spill] sm:$0xff] %v7875_v22  ;;  %v6245_v41 = vpop.eup %6244  ;;  %2570 = vadd.xlane.f32.xlu0 %v2569_v37  ;;  %6264 = vrcp.f32 %v2038_v60  ;;  %v5344_v37 = vmul.f32 -1.442695, %v1581_v4  ;;  %v1590_v60 = vadd.f32 %v9872_v15, %v9829_v5  ;;  %v2593_v21 = vsel %vm2502_vm1, %v2404_v53, 0.0 }
 0x28e   :  { %v6247_v58 = vpop.eup %6246  ;;  %6266 = vpow2.f32 %v5336_v52  ;;  %v2412_v3 = vmul.f32 %v7872_v14, %v6245_v41  ;;  %v5345_v61 = vmul.f32 -1.442695, %v1582_v42  ;;  %v2596_v24 = vsel %vm2502_vm1, %v2405_v0, 0.0 }
 0x28f   :  { %v7886_v22 = vpop.xlane.xlu0 %2816  ;;  %v6249_v13 = vpop.eup %6248  ;;  %2573 = vadd.xlane.f32.xlu1 %v2572_v49  ;;  %6268 = vrcp.f32 %v2045_v18  ;;  %v2062_v45 = vadd.f32 1.0, %v6247_v58  ;;  %v9874_v49 = vld [vmem:[#allocation82_spill] sm:$0xff]  ;;  %v5352_v53 = vmul.f32 -1.442695, %v1589_v23 }
 0x290   :  { %9869 = vst [vmem:[#allocation84_spill] sm:$0xff] %v7886_v22  ;;  %v7890_v6 = vpop.xlane.xlu1 %2675  ;;  %v6251_v63 = vpop.eup %6250  ;;  %6270 = vrcp.f32 %v2046_v34  ;;  %v1597_v18 = vadd.f32 %v9874_v49, %v9827_v56  ;;  %v2413_v15 = vmul.f32 %v7872_v14, %v6249_v13  ;;  %v9875_v49 = vld [vmem:[#allocation86_spill] sm:$0xff] }
 0x291   :  { %9870 = vst [vmem:[#allocation107_spill] sm:$0xff] %v7890_v6  ;;  %v6253_v22 = vpop.eup %6252  ;;  %2594 = vadd.xlane.f32.xlu0 %v2593_v21  ;;  %6272 = vrcp.f32 %v2061_v27  ;;  %v2069_v42 = vadd.f32 1.0, %v6251_v63  ;;  %v5353_v21 = vmul.f32 -1.442695, %v1590_v60  ;;  %v2617_v27 = vsel %vm2502_vm1, %v2412_v3, 0.0 }
 0x292   :  { %v6255_v4 = vpop.eup %6254  ;;  %6274 = vpow2.f32 %v5337_v50  ;;  %v2420_v58 = vmul.f32 %v7872_v14, %v6253_v22  ;;  %v1598_v0 = vadd.f32 %v9875_v49, %v9829_v5  ;;  %v5360_v63 = vmul.f32 -1.442695, %v1597_v18 }
 0x293   :  { %v7898_v52 = vpop.xlane.xlu0 %2840  ;;  %v6257_v41 = vpop.eup %6256  ;;  %2597 = vadd.xlane.f32.xlu1 %v2596_v24  ;;  %6276 = vpow2.f32 %v5344_v37  ;;  %v2070_v50 = vadd.f32 1.0, %v6255_v4  ;;  %v2620_v24 = vsel %vm2502_vm1, %v2413_v15, 0.0  ;;  %v5301_v18 = vmul.f32 -1.442695, %v7162_v59 }
 0x294   :  { %9873 = vst [vmem:[#allocation17_spill] sm:$0xff] %v7898_v52  ;;  %v7904_v34 = vpop.xlane.xlu1 %2513  ;;  %v6259_v52 = vpop.eup %6258  ;;  %6278 = vpow2.f32 %v5345_v61  ;;  %v2421_v37 = vmul.f32 %v7872_v14, %v6257_v41 }
 0x295   :  { %v6261_v12 = vpop.eup %6260  ;;  %2618 = vadd.xlane.f32.xlu0 %v2617_v27  ;;  %6280 = vrcp.f32 %v2062_v45  ;;  %v2077_v3 = vadd.f32 1.0, %v6259_v52  ;;  %v2641_v27 = vsel %vm2502_vm1, %v2420_v58, 0.0  ;;  %v5361_v45 = vmul.f32 -1.442695, %v1598_v0 }
 0x296   :  { %v6263_v23 = vpop.eup %6262  ;;  %6282 = vpow2.f32 %v5352_v53  ;;  %v2428_v49 = vmul.f32 %v7872_v14, %v6261_v12  ;;  %v2644_v53 = vsel %vm2502_vm1, %v2421_v37, 0.0  ;;  %v5299_v0 = vmul.f32 -1.442695, %v7167_v48 }
 0x297   :  { %v7910_v13 = vpop.xlane.xlu0 %2864  ;;  %v6265_v22 = vpop.eup %6264  ;;  %2621 = vadd.xlane.f32.xlu1 %v2620_v24  ;;  %6284 = vrcp.f32 %v2069_v42  ;;  %v2078_v41 = vadd.f32 1.0, %v6263_v23 }
 0x298   :  { %9876 = vst [vmem:[#allocation104_spill] sm:$0xff] %v7910_v13  ;;  %v7914_v60 = vpop.xlane.xlu1 %2537  ;;  %v6267_v61 = vpop.eup %6266  ;;  %6286 = vpow2.f32 %v5353_v21  ;;  %v2429_v52 = vmul.f32 %v7872_v14, %v6265_v22 }
 0x299   :  { %v6269_v4 = vpop.eup %6268  ;;  %2642 = vadd.xlane.f32.xlu0 %v2641_v27  ;;  %6288 = vrcp.f32 %v2070_v50  ;;  %v2085_v12 = vadd.f32 1.0, %v6267_v61  ;;  %v2665_v50 = vsel %vm2502_vm1, %v2428_v49, 0.0 }
 0x29a   :  { %v6271_v13 = vpop.eup %6270  ;;  %6290 = vpow2.f32 %v5360_v63  ;;  %v2436_v23 = vmul.f32 %v7872_v14, %v6269_v4  ;;  %v1541_v63 = vadd.f32 %v7181_v55, %v9827_v56  ;;  %v9877_v4 = vld [vmem:[#allocation115_spill] sm:$0xff] }
 0x29b   :  { %v7918_v15 = vpop.xlane.xlu0 %2534  ;;  %v6273_v58 = vpop.eup %6272  ;;  %2645 = vadd.xlane.f32.xlu1 %v2644_v53  ;;  %6292 = vrcp.f32 %v2077_v3  ;;  %v2668_v3 = vsel %vm2502_vm1, %v2429_v52, 0.0  ;;  %v2437_v48 = vmul.f32 %v7872_v14, %v6271_v13 }
 0x29c   :  { %v7923_v42 = vpop.xlane.xlu1 %2561  ;;  %v6275_v21 = vpop.eup %6274  ;;  %6294 = vpow2.f32 %v5361_v45  ;;  %v2452_v53 = vmul.f32 %v7872_v14, %v6273_v58 }
 0x29d   :  { %v6277_v59 = vpop.eup %6276  ;;  %2666 = vadd.xlane.f32.xlu0 %v2665_v50  ;;  %6296 = vrcp.f32 %v2078_v41  ;;  %v2086_v37 = vadd.f32 1.0, %v6275_v21  ;;  %v1542_v41 = vadd.f32 %v9877_v4, %v9829_v5  ;;  %v5304_v21 = vmul.f32 -1.442695, %v1541_v63  ;;  %v9878_v50 = vld [vmem:[#allocation113_spill] sm:$0xff] }
 0x29e   :  { %v6279_v22 = vpop.eup %6278  ;;  %6298 = vpow2.f32 %v5301_v18  ;;  %v2093_v49 = vadd.f32 1.0, %v6277_v59  ;;  %v2689_v18 = vsel %vm2502_vm1, %v2436_v23, 0.0 }
 0x29f   :  { %v7928_v24 = vpop.xlane.xlu0 %2558  ;;  %v6281_v27 = vpop.eup %6280  ;;  %2669 = vadd.xlane.f32.xlu1 %v2668_v3  ;;  %6300 = vrcp.f32 %v2085_v12  ;;  %v2094_v13 = vadd.f32 1.0, %v6279_v22  ;;  %v1539_v12 = vadd.f32 %v7106_v43, %v9878_v50  ;;  %v5305_v4 = vmul.f32 -1.442695, %v1542_v41 }
 0x2a0   :  { %v7934_v61 = vpop.xlane.xlu1 %2585  ;;  %v6283_v45 = vpop.eup %6282  ;;  %6302 = vpow2.f32 %v5299_v0  ;;  %v2692_v0 = vsel %vm2502_vm1, %v2437_v48, 0.0  ;;  %v2453_v59 = vmul.f32 %v7872_v14, %v6281_v27  ;;  %v2737_v22 = vsel %vm2502_vm1, %v2452_v53, 0.0 }
 0x2a1   :  { %v6285_v55 = vpop.eup %6284  ;;  %2690 = vadd.xlane.f32.xlu0 %v2689_v18  ;;  %6304 = vrcp.f32 %v2086_v37  ;;  %v2101_v58 = vadd.f32 1.0, %v6283_v45  ;;  %v9879_v18 = vld [vmem:[#allocation116_spill] sm:$0xff] }
 0x2a2   :  { %v6287_v52 = vpop.eup %6286  ;;  %6306 = vrcp.f32 %v2093_v49  ;;  %v1540_v37 = vadd.f32 %v7092_v35, %v9879_v18  ;;  %v2460_v63 = vmul.f32 %v7872_v14, %v6285_v55  ;;  %v2740_v49 = vsel %vm2502_vm1, %v2453_v59, 0.0 }
 0x2a3   :  { %v7940_v56 = vpop.xlane.xlu0 %2582  ;;  %v6289_v23 = vpop.eup %6288  ;;  %2693 = vadd.xlane.f32.xlu1 %v2692_v0  ;;  %6308 = vrcp.f32 %v2094_v13  ;;  %v2102_v27 = vadd.f32 1.0, %v6287_v52  ;;  %v5302_v0 = vmul.f32 -1.442695, %v1539_v12 }
 0x2a4   :  { %v7946_v5 = vpop.xlane.xlu1 %2609  ;;  %v6291_v3 = vpop.eup %6290  ;;  %6310 = vpow2.f32 %v5304_v21  ;;  %v2461_v45 = vmul.f32 %v7872_v14, %v6289_v23  ;;  %v5303_v18 = vmul.f32 -1.442695, %v1540_v37  ;;  %v2049_v37 = vadd.f32 1.0, %v7794_v39 }
 0x2a5   :  { %v6293_v43 = vpop.eup %6292  ;;  %2738 = vadd.xlane.f32.xlu0 %v2737_v22  ;;  %6312 = vrcp.f32 %v2101_v58  ;;  %v2109_v53 = vadd.f32 1.0, %v6291_v3  ;;  %v2761_v22 = vsel %vm2502_vm1, %v2460_v63, 0.0 }
 0x2a6   :  { %v6295_v50 = vpop.eup %6294  ;;  %6314 = vpow2.f32 %v5305_v4  ;;  %v2468_v13 = vmul.f32 %v7872_v14, %v6293_v43  ;;  %v2764_v23 = vsel %vm2502_vm1, %v2461_v45, 0.0 }
 0x2a7   :  { %v7952_v48 = vpop.xlane.xlu0 %2606  ;;  %v6297_v35 = vpop.eup %6296  ;;  %2741 = vadd.xlane.f32.xlu1 %v2740_v49  ;;  %6316 = vrcp.f32 %v2102_v27  ;;  %v2110_v12 = vadd.f32 1.0, %v6295_v50 }
 0x2a8   :  { %v7956_v41 = vpop.xlane.xlu1 %2633  ;;  %v6299_v55 = vpop.eup %6298  ;;  %6318 = vpow2.f32 %v5302_v0  ;;  %v2469_v58 = vmul.f32 %v7872_v14, %v6297_v35  ;;  %v2785_v63 = vsel %vm2502_vm1, %v2468_v13, 0.0 }
 0x2a9   :  { %9880 = vst [vmem:[#allocation21_spill] sm:$0xff] %v7956_v41  ;;  %v6301_v52 = vpop.eup %6300  ;;  %2762 = vadd.xlane.f32.xlu0 %v2761_v22  ;;  %6320 = vrcp.f32 %v2109_v53  ;;  %v2050_v50 = vadd.f32 1.0, %v6299_v55  ;;  %v2047_v53 = vadd.f32 1.0, %v7880_v62 }
 0x2aa   :  { %v6303_v59 = vpop.eup %6302  ;;  %6322 = vpow2.f32 %v5303_v18  ;;  %v2476_v43 = vmul.f32 %v7872_v14, %v6301_v52  ;;  %v2788_v49 = vsel %vm2502_vm1, %v2469_v58, 0.0 }
 0x2ab   :  { %v7960_v21 = vpop.xlane.xlu0 %2630  ;;  %v6305_v4 = vpop.eup %6304  ;;  %2765 = vadd.xlane.f32.xlu1 %v2764_v23  ;;  %6324 = vrcp.f32 %v2110_v12  ;;  %v2048_v52 = vadd.f32 1.0, %v6303_v59 }
 0x2ac   :  { %v7964_v3 = vpop.xlane.xlu1 %2657  ;;  %v6307_v27 = vpop.eup %6306  ;;  %v2477_v45 = vmul.f32 %v7872_v14, %v6305_v4  ;;  %6326 = vrcp.f32 %v2049_v37  ;;  %v2809_v22 = vsel %vm2502_vm1, %v2476_v43, 0.0 }
 0x2ad   :  { %9881 = vst [vmem:[#allocation25_spill] sm:$0xff] %v7964_v3  ;;  %2786 = vadd.xlane.f32.xlu0 %v2785_v63  ;;  %v6309_v39 = vpop.eup %6308  ;;  %v2484_v55 = vmul.f32 %v7872_v14, %v6307_v27  ;;  %6328 = vrcp.f32 %v2050_v50 }
 0x2ae   :  { %v6311_v18 = vpop.eup %6310  ;;  %v2812_v23 = vsel %vm2502_vm1, %v2477_v45, 0.0  ;;  %v2485_v58 = vmul.f32 %v7872_v14, %v6309_v39  ;;  %6330 = vrcp.f32 %v2047_v53 }
 0x2af   :  { %v7969_v0 = vpop.xlane.xlu0 %2654  ;;  %2789 = vadd.xlane.f32.xlu1 %v2788_v49  ;;  %v6313_v13 = vpop.eup %6312  ;;  %v2053_v37 = vadd.f32 1.0, %v6311_v18  ;;  %v2833_v43 = vsel %vm2502_vm1, %v2484_v55, 0.0  ;;  %6332 = vrcp.f32 %v2048_v52 }
 0x2b0   :  { %9882 = vst [vmem:[#allocation29_spill] sm:$0xff] %v7969_v0  ;;  %v7973_v35 = vpop.xlane.xlu1 %2681  ;;  %v6315_v12 = vpop.eup %6314  ;;  %v2492_v27 = vmul.f32 %v7872_v14, %v6313_v13  ;;  %v2836_v39 = vsel %vm2502_vm1, %v2485_v58, 0.0 }
 0x2b1   :  { %9883 = vst [vmem:[#allocation35_spill] sm:$0xff] %v7973_v35  ;;  %2810 = vadd.xlane.f32.xlu0 %v2809_v22  ;;  %v6317_v4 = vpop.eup %6316  ;;  %v2054_v50 = vadd.f32 1.0, %v6315_v12  ;;  %6334 = vrcp.f32 %v2053_v37 }
 0x2b2   :  { %v6319_v63 = vpop.eup %6318  ;;  %v2493_v53 = vmul.f32 %v7872_v14, %v6317_v4 }
 0x2b3   :  { %2813 = vadd.xlane.f32.xlu1 %v2812_v23  ;;  %v7980_v62 = vpop.xlane.xlu0 %2678  ;;  %v6321_v59 = vpop.eup %6320  ;;  %v2051_v22 = vadd.f32 1.0, %v6319_v63  ;;  %v2857_v23 = vsel %vm2502_vm1, %v2492_v27, 0.0  ;;  %6336 = vrcp.f32 %v2054_v50 }
 0x2b4   :  { %9884 = vst [vmem:[#allocation101_spill] sm:$0xff] %v7980_v62  ;;  %v7983_v49 = vpop.xlane.xlu1 %2729  ;;  %v6323_v45 = vpop.eup %6322  ;;  %v2500_v55 = vmul.f32 %v7872_v14, %v6321_v59  ;;  %v2860_v12 = vsel %vm2502_vm1, %v2493_v53, 0.0 }
 0x2b5   :  { %9885 = vst [vmem:[#allocation39_spill] sm:$0xff] %v7983_v49  ;;  %2834 = vadd.xlane.f32.xlu0 %v2833_v43  ;;  %v6325_v18 = vpop.eup %6324  ;;  %v2052_v13 = vadd.f32 1.0, %v6323_v45  ;;  %6338 = vrcp.f32 %v2051_v22 }
 0x2b6   :  { %v6327_v49 = vpop.eup %6326  ;;  %v2501_v58 = vmul.f32 %v7872_v14, %v6325_v18  ;;  %v2881_v37 = vsel %vm2502_vm1, %v2500_v55, 0.0 }
 0x2b7   :  { %2837 = vadd.xlane.f32.xlu1 %v2836_v39  ;;  %v6329_v4 = vpop.eup %6328  ;;  %v2440_v63 = vmul.f32 %v7872_v14, %v6327_v49  ;;  %6340 = vrcp.f32 %v2052_v13 }
 0x2b8   :  { %v6331_v27 = vpop.eup %6330  ;;  %v2884_v50 = vsel %vm2502_vm1, %v2501_v58, 0.0  ;;  %v2441_v39 = vmul.f32 %v7872_v14, %v6329_v4 }
 0x2b9   :  { %2858 = vadd.xlane.f32.xlu0 %v2857_v23  ;;  %v7990_v52 = vpop.xlane.xlu0 %2726  ;;  %v6333_v53 = vpop.eup %6332  ;;  %v2701_v18 = vsel %vm2502_vm1, %v2440_v63, 0.0  ;;  %v2438_v22 = vmul.f32 %v7872_v14, %v6331_v27 }
 0x2ba   :  { %9886 = vst [vmem:[#allocation108_spill] sm:$0xff] %v7990_v52  ;;  %v7993_v43 = vpop.xlane.xlu1 %2753  ;;  %v2704_v55 = vsel %vm2502_vm1, %v2441_v39, 0.0 }
 0x2bb   :  { %9887 = vst [vmem:[#allocation45_spill] sm:$0xff] %v7993_v43  ;;  %2861 = vadd.xlane.f32.xlu1 %v2860_v12  ;;  %v6335_v23 = vpop.eup %6334  ;;  %v2439_v12 = vmul.f32 %v7872_v14, %v6333_v53  ;;  %v2695_v4 = vsel %vm2502_vm1, %v2438_v22, 0.0 }
 0x2bd   :  { %2882 = vadd.xlane.f32.xlu0 %v2881_v37  ;;  %v7998_v59 = vpop.xlane.xlu0 %2750  ;;  %v6337_v58 = vpop.eup %6336  ;;  %v2444_v37 = vmul.f32 %v7872_v14, %v6335_v23  ;;  %v2698_v27 = vsel %vm2502_vm1, %v2439_v12, 0.0 }
 0x2be   :  { %9888 = vst [vmem:[#allocation49_spill] sm:$0xff] %v7998_v59  ;;  %v8001_v45 = vpop.xlane.xlu1 %2777  ;;  %v2445_v39 = vmul.f32 %v7872_v14, %v6337_v58 }
 0x2bf   :  { %9889 = vst [vmem:[#allocation55_spill] sm:$0xff] %v8001_v45  ;;  %2885 = vadd.xlane.f32.xlu1 %v2884_v50  ;;  %v6339_v50 = vpop.eup %6338  ;;  %v2713_v53 = vsel %vm2502_vm1, %v2444_v37, 0.0 }
 0x2c0   :  { %v2716_v23 = vsel %vm2502_vm1, %v2445_v39, 0.0 }
 0x2c1   :  { %2702 = vadd.xlane.f32.xlu0 %v2701_v18  ;;  %v8006_v49 = vpop.xlane.xlu0 %2774  ;;  %v6341_v45 = vpop.eup %6340 }
 0x2c2   :  { %9890 = vst [vmem:[#allocation59_spill] sm:$0xff] %v8006_v49  ;;  %v8009_v13 = vpop.xlane.xlu1 %2801 }
 0x2c3   :  { %9891 = vst [vmem:[#allocation69_spill] sm:$0xff] %v8009_v13  ;;  %2705 = vadd.xlane.f32.xlu1 %v2704_v55  ;;  %v2442_v55 = vmul.f32 %v7872_v14, %v6339_v50 }
 0x2c5   :  { %2696 = vadd.xlane.f32.xlu0 %v2695_v4  ;;  %v8014_v63 = vpop.xlane.xlu0 %2798  ;;  %v2707_v12 = vsel %vm2502_vm1, %v2442_v55, 0.0 }
 0x2c6   :  { %9892 = vst [vmem:[#allocation73_spill] sm:$0xff] %v8014_v63  ;;  %v8017_v18 = vpop.xlane.xlu1 %2825  ;;  %v2443_v63 = vmul.f32 %v7872_v14, %v6341_v45  ;;  %v6511_v14 = vmov 0  }
 0x2c7   :  { %9893 = vst [vmem:[#allocation83_spill] sm:$0xff] %v8017_v18  ;;  %2699 = vadd.xlane.f32.xlu1 %v2698_v27  ;;  %5697 = vset.pattern.permute.xlu0 %v6511_v14 }
 0x2c8   :  { %v2710_v27 = vsel %vm2502_vm1, %v2443_v63, 0.0  ;;  %5696 = vset.pattern.permute.xlu1 %v6511_v14 }
 0x2c9   :  { %2714 = vadd.xlane.f32.xlu0 %v2713_v53  ;;  %v8022_v22 = vpop.xlane.xlu0 %2822 }
 0x2ca   :  { %9894 = vst [vmem:[#allocation87_spill] sm:$0xff] %v8022_v22  ;;  %v8025_v4 = vpop.xlane.xlu1 %2849 }
 0x2cb   :  { %9895 = vst [vmem:[#allocation99_spill] sm:$0xff] %v8025_v4  ;;  %2717 = vadd.xlane.f32.xlu1 %v2716_v23 }
 0x2cd   :  { %2708 = vadd.xlane.f32.xlu0 %v2707_v12  ;;  %v8029_v58 = vpop.xlane.xlu0 %2846  ;;  %v9899_v12 = vld [vmem:[#allocation14_spill] sm:$0xff] }
 0x2ce   :  { %9896 = vst [vmem:[#allocation16_spill] sm:$0xff] %v8029_v58  ;;  %v8032_v37 = vpop.xlane.xlu1 %2873  ;;  %v9901_v58 = vld [vmem:[#allocation13_spill] sm:$0xff] }
 0x2cf   :  { %9897 = vst [vmem:[#allocation20_spill] sm:$0xff] %v8032_v37  ;;  %2711 = vadd.xlane.f32.xlu1 %v2710_v27  ;;  %v8056_v37 = vld [vmem:[#allocation5 + $0x8] sm:$0xff]  ;;  %v9902_v14 = vsub.s32 1, %v9901_v58 }
 0x2d1   :  { %v3342_v22 = vrot.slane %v8056_v37, %v9902_v14 }
 0x2d2   :  { %v8034_v50 = vpop.xlane.xlu0 %2870 }
 0x2d3   :  { %9898 = vst [vmem:[#allocation109_spill] sm:$0xff] %v8034_v50  ;;  %v8036_v53 = vpop.xlane.xlu1 %2510 }
 0x2d6   :  { %v8038_v39 = vpop.xlane.xlu0 %2516 }
 0x2d7   :  { %v8040_v4 = vpop.xlane.xlu1 %2519 }
 0x2da   :  { %v8042_v45 = vpop.xlane.xlu0 %2540 }
 0x2db   :  { %v8044_v55 = vpop.xlane.xlu1 %2543 }
 0x2de   :  { %v8046_v23 = vpop.xlane.xlu0 %2564 }
 0x2df   :  { %v8048_v63 = vpop.xlane.xlu1 %2567 }
 0x2e0   :  { %3329 = vbcast.lane.b32.xlu1 %v9899_v12, 296 }
 0x2e2   :  { %v8051_v27 = vpop.xlane.xlu0 %2588 }
 0x2e3   :  { %v8053_v50 = vpop.xlane.xlu1 %2591  ;;  %3333 = vbcast.lane.b32.xlu0 %v9899_v12, 304 }
 0x2e4   :  { %9900 = vst [vmem:[#allocation24_spill] sm:$0xff] %v8053_v50  ;;  %3337 = vbcast.lane.b32.xlu1 %v9899_v12, 312  ;;  %v9910_v12 = vsub.s32 2, %v9901_v58 }
 0x2e6   :  { %v8062_v18 = vpop.xlane.xlu0 %2612  ;;  %v3377_v35 = vrot.slane %v8056_v37, %v9910_v12 }
 0x2e7   :  { %9903 = vst [vmem:[#allocation28_spill] sm:$0xff] %v8062_v18  ;;  %v8064_v13 = vpop.xlane.xlu1 %2615  ;;  %3344 = vbcast.lane.b32.xlu0 %v3342_v22, 256 }
 0x2e8   :  { %9904 = vst [vmem:[#allocation34_spill] sm:$0xff] %v8064_v13  ;;  %3348 = vbcast.lane.b32.xlu1 %v3342_v22, 264 }
 0x2ea   :  { %v8066_v49 = vpop.xlane.xlu0 %2636 }
 0x2eb   :  { %9905 = vst [vmem:[#allocation38_spill] sm:$0xff] %v8066_v49  ;;  %3352 = vbcast.lane.b32.xlu0 %v3342_v22, 272 }
 0x2ec   :  { %v8068_v43 = vpop.xlane.xlu1 %2639  ;;  %3356 = vbcast.lane.b32.xlu1 %v3342_v22, 280 }
 0x2ed   :  { %9906 = vst [vmem:[#allocation44_spill] sm:$0xff] %v8068_v43 }
 0x2ee   :  { %v8070_v59 = vpop.xlane.xlu0 %2660 }
 0x2ef   :  { %9907 = vst [vmem:[#allocation48_spill] sm:$0xff] %v8070_v59  ;;  %3360 = vbcast.lane.b32.xlu0 %v3342_v22, 288 }
 0x2f0   :  { %v8072_v52 = vpop.xlane.xlu1 %2663  ;;  %3364 = vbcast.lane.b32.xlu1 %v3342_v22, 296 }
 0x2f1   :  { %9908 = vst [vmem:[#allocation54_spill] sm:$0xff] %v8072_v52 }
 0x2f2   :  { %v8074_v14 = vpop.xlane.xlu0 %2684 }
 0x2f3   :  { %9909 = vst [vmem:[#allocation58_spill] sm:$0xff] %v8074_v14  ;;  %3368 = vbcast.lane.b32.xlu0 %v3342_v22, 304 }
 0x2f4   :  { %v8079_v62 = vpop.xlane.xlu1 %2735  ;;  %3372 = vbcast.lane.b32.xlu1 %v3342_v22, 312  ;;  %v9919_v22 = vsub.s32 3, %v9901_v58 }
 0x2f5   :  { %9911 = vst [vmem:[#allocation68_spill] sm:$0xff] %v8079_v62 }
 0x2f6   :  { %v8081_v49 = vpop.xlane.xlu0 %2732 }
 0x2f7   :  { %9912 = vst [vmem:[#allocation72_spill] sm:$0xff] %v8081_v49  ;;  %3379 = vbcast.lane.b32.xlu0 %v3377_v35, 256 }
 0x2f8   :  { %v8083_v43 = vpop.xlane.xlu1 %2759  ;;  %3383 = vbcast.lane.b32.xlu1 %v3377_v35, 264 }
 0x2f9   :  { %9913 = vst [vmem:[#allocation82_spill] sm:$0xff] %v8083_v43  ;;  %v3412_v43 = vrot.slane %v8056_v37, %v9919_v22 }
 0x2fa   :  { %v8085_v59 = vpop.xlane.xlu0 %2756 }
 0x2fb   :  { %9914 = vst [vmem:[#allocation86_spill] sm:$0xff] %v8085_v59  ;;  %3387 = vbcast.lane.b32.xlu0 %v3377_v35, 272 }
 0x2fc   :  { %v8087_v52 = vpop.xlane.xlu1 %2783  ;;  %3391 = vbcast.lane.b32.xlu1 %v3377_v35, 280 }
 0x2fd   :  { %9915 = vst [vmem:[#allocation115_spill] sm:$0xff] %v8087_v52 }
 0x2fe   :  { %v8089_v14 = vpop.xlane.xlu0 %2780 }
 0x2ff   :  { %9916 = vst [vmem:[#allocation113_spill] sm:$0xff] %v8089_v14  ;;  %3395 = vbcast.lane.b32.xlu0 %v3377_v35, 288 }
 0x300   :  { %v8091_v3 = vpop.xlane.xlu1 %2807  ;;  %3399 = vbcast.lane.b32.xlu1 %v3377_v35, 296 }
 0x301   :  { %9917 = vst [vmem:[#allocation116_spill] sm:$0xff] %v8091_v3 }
 0x302   :  { %v8093_v12 = vpop.xlane.xlu0 %2804 }
 0x303   :  { %9918 = vst [vmem:[#allocation14_spill] sm:$0xff] %v8093_v12  ;;  %3403 = vbcast.lane.b32.xlu0 %v3377_v35, 304 }
 0x304   :  { %v8098_v62 = vpop.xlane.xlu1 %2831  ;;  %3407 = vbcast.lane.b32.xlu1 %v3377_v35, 312  ;;  %v9927_v35 = vsub.s32 4, %v9901_v58 }
 0x305   :  { %9920 = vst [vmem:[#allocation13_spill] sm:$0xff] %v8098_v62 }
 0x306   :  { %v8100_v59 = vpop.xlane.xlu0 %2828 }
 0x307   :  { %9921 = vst [vmem:[#allocation129_spill] sm:$0xff] %v8100_v59  ;;  %3414 = vbcast.lane.b32.xlu0 %v3412_v43, 256  ;;  %v3447_v59 = vrot.slane %v8056_v37, %v9927_v35 }
 0x308   :  { %v8102_v52 = vpop.xlane.xlu1 %2855  ;;  %3418 = vbcast.lane.b32.xlu1 %v3412_v43, 264 }
 0x309   :  { %9922 = vst [vmem:[#allocation130_spill] sm:$0xff] %v8102_v52 }
 0x30a   :  { %v8104_v14 = vpop.xlane.xlu0 %2852 }
 0x30b   :  { %9923 = vst [vmem:[#allocation131_spill] sm:$0xff] %v8104_v14  ;;  %3422 = vbcast.lane.b32.xlu0 %v3412_v43, 272 }
 0x30c   :  { %v8106_v3 = vpop.xlane.xlu1 %2879  ;;  %3426 = vbcast.lane.b32.xlu1 %v3412_v43, 280 }
 0x30d   :  { %9924 = vst [vmem:[#allocation132_spill] sm:$0xff] %v8106_v3 }
 0x30e   :  { %v8108_v12 = vpop.xlane.xlu0 %2876 }
 0x30f   :  { %9925 = vst [vmem:[#allocation133_spill] sm:$0xff] %v8108_v12  ;;  %3430 = vbcast.lane.b32.xlu0 %v3412_v43, 288 }
 0x310   :  { %v8110_v49 = vpop.xlane.xlu1 %2687  ;;  %3434 = vbcast.lane.b32.xlu1 %v3412_v43, 296 }
 0x311   :  { %9926 = vst [vmem:[#allocation134_spill] sm:$0xff] %v8110_v49 }
 0x312   :  { %v8112_v22 = vpop.xlane.xlu0 %2522 }
 0x313   :  { %3438 = vbcast.lane.b32.xlu0 %v3412_v43, 304 }
 0x314   :  { %v8117_v52 = vpop.xlane.xlu1 %2525  ;;  %3442 = vbcast.lane.b32.xlu1 %v3412_v43, 312  ;;  %v9931_v43 = vsub.s32 5, %v9901_v58 }
 0x316   :  { %v8119_v14 = vpop.xlane.xlu0 %2546  ;;  %v3482_v18 = vrot.slane %v8056_v37, %v9931_v43 }
 0x317   :  { %3449 = vbcast.lane.b32.xlu0 %v3447_v59, 256 }
 0x318   :  { %v8121_v3 = vpop.xlane.xlu1 %2549  ;;  %3453 = vbcast.lane.b32.xlu1 %v3447_v59, 264 }
 0x31a   :  { %v8123_v12 = vpop.xlane.xlu0 %2570 }
 0x31b   :  { %3457 = vbcast.lane.b32.xlu0 %v3447_v59, 272 }
 0x31c   :  { %v8125_v62 = vpop.xlane.xlu1 %2573  ;;  %3461 = vbcast.lane.b32.xlu1 %v3447_v59, 280 }
 0x31e   :  { %v8127_v49 = vpop.xlane.xlu0 %2594 }
 0x31f   :  { %9928 = vst [vmem:[#allocation135_spill] sm:$0xff] %v8127_v49  ;;  %3465 = vbcast.lane.b32.xlu0 %v3447_v59, 288 }
 0x320   :  { %v8129_v13 = vpop.xlane.xlu1 %2597  ;;  %3469 = vbcast.lane.b32.xlu1 %v3447_v59, 296 }
 0x321   :  { %9929 = vst [vmem:[#allocation136_spill] sm:$0xff] %v8129_v13 }
 0x322   :  { %v8131_v35 = vpop.xlane.xlu0 %2618 }
 0x323   :  { %9930 = vst [vmem:[#allocation137_spill] sm:$0xff] %v8131_v35  ;;  %3473 = vbcast.lane.b32.xlu0 %v3447_v59, 304 }
 0x324   :  { %v8136_v0 = vpop.xlane.xlu1 %2621  ;;  %3477 = vbcast.lane.b32.xlu1 %v3447_v59, 312  ;;  %v9940_v59 = vsub.s32 6, %v9901_v58 }
 0x325   :  { %9932 = vst [vmem:[#allocation138_spill] sm:$0xff] %v8136_v0 }
 0x326   :  { %v8138_v41 = vpop.xlane.xlu0 %2642 }
 0x327   :  { %9933 = vst [vmem:[#allocation139_spill] sm:$0xff] %v8138_v41  ;;  %3484 = vbcast.lane.b32.xlu0 %v3482_v18, 256 }
 0x328   :  { %v8140_v6 = vpop.xlane.xlu1 %2645  ;;  %3488 = vbcast.lane.b32.xlu1 %v3482_v18, 264 }
 0x329   :  { %9934 = vst [vmem:[#allocation140_spill] sm:$0xff] %v8140_v6  ;;  %v3517_v6 = vrot.slane %v8056_v37, %v9940_v59 }
 0x32a   :  { %v8142_v49 = vpop.xlane.xlu0 %2666 }
 0x32b   :  { %9935 = vst [vmem:[#allocation141_spill] sm:$0xff] %v8142_v49  ;;  %3492 = vbcast.lane.b32.xlu0 %v3482_v18, 272 }
 0x32c   :  { %v8144_v13 = vpop.xlane.xlu1 %2669  ;;  %3496 = vbcast.lane.b32.xlu1 %v3482_v18, 280 }
 0x32d   :  { %9936 = vst [vmem:[#allocation142_spill] sm:$0xff] %v8144_v13 }
 0x32e   :  { %v8146_v35 = vpop.xlane.xlu0 %2690 }
 0x32f   :  { %9937 = vst [vmem:[#allocation143_spill] sm:$0xff] %v8146_v35  ;;  %3500 = vbcast.lane.b32.xlu0 %v3482_v18, 288 }
 0x330   :  { %v8148_v28 = vpop.xlane.xlu1 %2693  ;;  %3504 = vbcast.lane.b32.xlu1 %v3482_v18, 296 }
 0x331   :  { %9938 = vst [vmem:[#allocation144_spill] sm:$0xff] %v8148_v28 }
 0x332   :  { %v8150_v43 = vpop.xlane.xlu0 %2738 }
 0x333   :  { %9939 = vst [vmem:[#allocation145_spill] sm:$0xff] %v8150_v43  ;;  %3508 = vbcast.lane.b32.xlu0 %v3482_v18, 304 }
 0x334   :  { %v8155_v41 = vpop.xlane.xlu1 %2741  ;;  %3512 = vbcast.lane.b32.xlu1 %v3482_v18, 312  ;;  %v9949_v18 = vsub.s32 7, %v9901_v58  ;;  %v8186_v58 = vld [vmem:[#allocation2] ss:$0 sm:$0xff] }
 0x335   :  { %9941 = vst [vmem:[#allocation146_spill] sm:$0xff] %v8155_v41  ;;  %v9959_v41 = vld [vmem:[#allocation62_spill] sm:$0xff] }
 0x336   :  { %v8157_v49 = vpop.xlane.xlu0 %2762 }
 0x337   :  { %9942 = vst [vmem:[#allocation147_spill] sm:$0xff] %v8157_v49  ;;  %3519 = vbcast.lane.b32.xlu0 %v3517_v6, 256 }
 0x338   :  { %v8159_v13 = vpop.xlane.xlu1 %2765  ;;  %3523 = vbcast.lane.b32.xlu1 %v3517_v6, 264 }
 0x339   :  { %9943 = vst [vmem:[#allocation148_spill] sm:$0xff] %v8159_v13  ;;  %v3552_v13 = vrot.slane %v8056_v37, %v9949_v18  ;;  %v2895_v18 = vadd.f32 %v8186_v58, %v7691_v30 }
 0x33a   :  { %v8161_v35 = vpop.xlane.xlu0 %2786 }
 0x33b   :  { %9944 = vst [vmem:[#allocation149_spill] sm:$0xff] %v8161_v35  ;;  %3527 = vbcast.lane.b32.xlu0 %v3517_v6, 272 }
 0x33c   :  { %v8163_v28 = vpop.xlane.xlu1 %2789  ;;  %3531 = vbcast.lane.b32.xlu1 %v3517_v6, 280 }
 0x33d   :  { %9945 = vst [vmem:[#allocation150_spill] sm:$0xff] %v8163_v28 }
 0x33e   :  { %v8165_v43 = vpop.xlane.xlu0 %2810 }
 0x33f   :  { %9946 = vst [vmem:[#allocation151_spill] sm:$0xff] %v8165_v43  ;;  %3535 = vbcast.lane.b32.xlu0 %v3517_v6, 288 }
 0x340   :  { %v8167_v0 = vpop.xlane.xlu1 %2813  ;;  %3539 = vbcast.lane.b32.xlu1 %v3517_v6, 296 }
 0x341   :  { %9947 = vst [vmem:[#allocation152_spill] sm:$0xff] %v8167_v0 }
 0x342   :  { %v8169_v59 = vpop.xlane.xlu0 %2834 }
 0x343   :  { %9948 = vst [vmem:[#allocation153_spill] sm:$0xff] %v8169_v59  ;;  %3543 = vbcast.lane.b32.xlu0 %v3517_v6, 304 }
 0x344   :  { %v8174_v49 = vpop.xlane.xlu1 %2837  ;;  %3547 = vbcast.lane.b32.xlu1 %v3517_v6, 312  ;;  %v2894_v6 = vadd.f32 %v8186_v58, %v7701_v26 }
 0x345   :  { %9950 = vst [vmem:[#allocation154_spill] sm:$0xff] %v8174_v49  ;;  %v2897_v49 = vadd.f32 %v8186_v58, %v7904_v34  ;;  %v2898_v34 = vadd.f32 %v8186_v58, %v8038_v39 }
 0x346   :  { %v8176_v35 = vpop.xlane.xlu0 %2858 }
 0x347   :  { %9951 = vst [vmem:[#allocation155_spill] sm:$0xff] %v8176_v35  ;;  %3554 = vbcast.lane.b32.xlu0 %v3552_v13, 256 }
 0x348   :  { %v8178_v28 = vpop.xlane.xlu1 %2861  ;;  %3558 = vbcast.lane.b32.xlu1 %v3552_v13, 264 }
 0x349   :  { %9952 = vst [vmem:[#allocation156_spill] sm:$0xff] %v8178_v28 }
 0x34a   :  { %v8180_v43 = vpop.xlane.xlu0 %2882 }
 0x34b   :  { %9953 = vst [vmem:[#allocation157_spill] sm:$0xff] %v8180_v43  ;;  %3562 = vbcast.lane.b32.xlu0 %v3552_v13, 272 }
 0x34c   :  { %v8182_v0 = vpop.xlane.xlu1 %2885  ;;  %3566 = vbcast.lane.b32.xlu1 %v3552_v13, 280 }
 0x34d   :  { %9954 = vst [vmem:[#allocation158_spill] sm:$0xff] %v8182_v0  ;;  %v9958_v0 = vld [vmem:[#allocation63_spill] sm:$0xff] }
 0x34e   :  { %v8184_v59 = vpop.xlane.xlu0 %2702  ;;  %v3712_v35 = vmul.f32 %v9958_v0, %v2894_v6  ;;  %v9962_v0 = vld [vmem:[#allocation66_spill] sm:$0xff] }
 0x34f   :  { %9955 = vst [vmem:[#allocation159_spill] sm:$0xff] %v8184_v59  ;;  %3570 = vbcast.lane.b32.xlu0 %v3552_v13, 288  ;;  %v2896_v59 = vadd.f32 %v8186_v58, %v8036_v53 }
 0x350   :  { %v8188_v37 = vpop.xlane.xlu1 %2705  ;;  %3574 = vbcast.lane.b32.xlu1 %v3552_v13, 296 }
 0x351   :  { %9956 = vst [vmem:[#allocation160_spill] sm:$0xff] %v8188_v37  ;;  %v3713_v37 = vmul.f32 %v9959_v41, %v2895_v18  ;;  %v3714_v6 = vmul.f32 %v9962_v0, %v2896_v59  ;;  %v9965_v0 = vld [vmem:[#allocation90_spill] sm:$0xff] }
 0x352   :  { %v8194_v28 = vpop.xlane.xlu0 %2696 }
 0x353   :  { %9957 = vst [vmem:[#allocation161_spill] sm:$0xff] %v8194_v28  ;;  %3578 = vbcast.lane.b32.xlu0 %v3552_v13, 304  ;;  %v9961_v28 = vld [vmem:[#allocation76_spill] sm:$0xff] }
 0x354   :  { %v8196_v43 = vpop.xlane.xlu1 %2699  ;;  %3582 = vbcast.lane.b32.xlu1 %v3552_v13, 312  ;;  %v3715_v50 = vmul.f32 %v9961_v28, %v2897_v49  ;;  %v2899_v13 = vadd.f32 %v8186_v58, %v8040_v4  ;;  %v9964_v28 = vld [vmem:[#allocation67_spill] sm:$0xff]  ;;  %v2900_v4 = vadd.f32 %v8186_v58, %v8112_v22 }
 0x355   :  { %v3716_v49 = vmul.f32 %v9964_v28, %v2898_v34 }
 0x356   :  { %v8204_v26 = vpop.xlane.xlu0 %2714 }
 0x357   :  { %3842 = vperm.xlu0 %5697, %v3712_v35   ;;  %v9963_v35 = vld [vmem:[#allocation80_spill] sm:$0xff] }
 0x358   :  { %v8206_v30 = vpop.xlane.xlu1 %2717  ;;  %3847 = vperm.xlu1 %5696, %v3713_v37   ;;  %v3717_v18 = vmul.f32 %v9963_v35, %v2899_v13  ;;  %v2901_v37 = vadd.f32 %v8186_v58, %v8117_v52  ;;  %v2902_v13 = vadd.f32 %v8186_v58, %v7720_v1  ;;  %v9966_v52 = vld [vmem:[#allocation77_spill] sm:$0xff] }
 0x359   :  { %9960 = vst [vmem:[#allocation63_spill] sm:$0xff] %v8206_v30  ;;  %v3718_v35 = vmul.f32 %v9966_v52, %v2900_v4  ;;  %v9968_v30 = vld [vmem:[#allocation81_spill] sm:$0xff]  ;;  %v9969_v4 = vld [vmem:[#allocation103_spill] sm:$0xff]  ;;  %v2907_v52 = vadd.f32 %v8186_v58, %v8044_v55  ;;  %v2908_v55 = vadd.f32 %v8186_v58, %v8119_v14 }
 0x35a   :  { %v8214_v41 = vpop.xlane.xlu0 %2708 }
 0x35b   :  { %3857 = vperm.xlu0 %5697, %v3715_v50   ;;  %v2903_v50 = vadd.f32 %v8186_v58, %v7699_v17  ;;  %v3720_v17 = vmul.f32 %v9968_v30, %v2902_v13  ;;  %v9971_v13 = vld [vmem:[#allocation110_spill] sm:$0xff] }
 0x35c   :  { %3852 = vperm.xlu1 %5696, %v3714_v6   ;;  %v8216_v53 = vpop.xlane.xlu1 %2711  ;;  %v3719_v6 = vmul.f32 %v9965_v0, %v2901_v37  ;;  %v2904_v37 = vadd.f32 %v8186_v58, %v7918_v15 }
 0x35e   :  { %v8224_v59 = vpop.permute.xlu0 %3333 }
 0x35f   :  { %3867 = vperm.xlu0 %5697, %v3717_v18   ;;  %v9967_v18 = vld [vmem:[#allocation96_spill] sm:$0xff] }
 0x360   :  { %3862 = vperm.xlu1 %5696, %v3716_v49   ;;  %v8226_v39 = vpop.permute.xlu1 %3329  ;;  %v3721_v28 = vmul.f32 %v9967_v18, %v2903_v50  ;;  %v2905_v49 = vadd.f32 %v8186_v58, %v7914_v60  ;;  %v9970_v50 = vld [vmem:[#allocation91_spill] sm:$0xff]  ;;  %v2906_v60 = vadd.f32 %v8186_v58, %v8042_v45  ;;  %v3725_v18 = vmul.f32 %v9971_v13, %v2907_v52  ;;  %v9975_v13 = vld [vmem:[#allocation117_spill] sm:$0xff] }
 0x361   :  { %v2910_v52 = vadd.f32 %v8186_v58, %v7741_v19 }
 0x362   :  { %v8234_v34 = vpop.permute.xlu0 %3344 }
 0x363   :  { %3877 = vperm.xlu0 %5697, %v3719_v6   ;;  %v3723_v6 = vmul.f32 %v9969_v4, %v2905_v49  ;;  %v9972_v49 = vld [vmem:[#allocation97_spill] sm:$0xff]  ;;  %v2911_v4 = vadd.f32 %v8186_v58, %v7717_v20 }
 0x364   :  { %3872 = vperm.xlu1 %5696, %v3718_v35   ;;  %v8236_v22 = vpop.permute.xlu1 %3337  ;;  %v3722_v35 = vmul.f32 %v9970_v50, %v2904_v37 }
 0x366   :  { %v8244_v0 = vpop.permute.xlu0 %3352 }
 0x367   :  { %3887 = vperm.xlu0 %5697, %v3721_v28   ;;  %v2909_v28 = vadd.f32 %v8186_v58, %v8121_v3  ;;  %v9974_v3 = vld [vmem:[#allocation106_spill] sm:$0xff] }
 0x368   :  { %3882 = vperm.xlu1 %5696, %v3720_v17   ;;  %v8246_v1 = vpop.permute.xlu1 %3348  ;;  %v3724_v17 = vmul.f32 %v9972_v49, %v2906_v60  ;;  %v2913_v49 = vadd.f32 %v8186_v58, %v7923_v42  ;;  %v2914_v42 = vadd.f32 %v8186_v58, %v8046_v23 }
 0x36a   :  { %v8254_v30 = vpop.permute.xlu0 %3360 }
 0x36b   :  { %3897 = vperm.xlu0 %5697, %v3723_v6   ;;  %v9973_v6 = vld [vmem:[#allocation112_spill] sm:$0xff] }
 0x36c   :  { %3892 = vperm.xlu1 %5696, %v3722_v35   ;;  %v8256_v15 = vpop.permute.xlu1 %3356  ;;  %v3727_v50 = vmul.f32 %v9973_v6, %v2909_v28  ;;  %v3726_v35 = vmul.f32 %v9974_v3, %v2908_v55  ;;  %v2912_v28 = vadd.f32 %v8186_v58, %v7928_v24  ;;  %v3731_v55 = vmul.f32 %v7249_v44, %v2913_v49  ;;  %v9978_v44 = vld [vmem:[#allocation118_spill] sm:$0xff] }
 0x36e   :  { %v8264_v37 = vpop.permute.xlu0 %3368 }
 0x36f   :  { %3907 = vperm.xlu0 %5697, %v3725_v18   ;;  %v3729_v18 = vmul.f32 %v9975_v13, %v2911_v4  ;;  %v9977_v4 = vld [vmem:[#allocation114_spill] sm:$0xff]  ;;  %v2917_v13 = vadd.f32 %v8186_v58, %v8125_v62 }
 0x370   :  { %3902 = vperm.xlu1 %5696, %v3724_v17   ;;  %v8266_v45 = vpop.permute.xlu1 %3364  ;;  %v9976_v17 = vld [vmem:[#allocation111_spill] sm:$0xff]  ;;  %v3730_v3 = vmul.f32 %v9977_v4, %v2912_v28  ;;  %v2926_v4 = vadd.f32 %v8186_v58, %v7773_v9  ;;  %v9981_v9 = vld [vmem:[#allocation120_spill] sm:$0xff] }
 0x371   :  { %v3728_v20 = vmul.f32 %v9976_v17, %v2910_v52  ;;  %v2919_v17 = vadd.f32 %v8186_v58, %v7735_v54 }
 0x372   :  { %v8274_v60 = vpop.permute.xlu0 %3379 }
 0x373   :  { %3917 = vperm.xlu0 %5697, %v3727_v50   ;;  %v2915_v50 = vadd.f32 %v8186_v58, %v8048_v63  ;;  %v2916_v63 = vadd.f32 %v8186_v58, %v8123_v12 }
 0x374   :  { %3912 = vperm.xlu1 %5696, %v3726_v35   ;;  %v8276_v14 = vpop.permute.xlu1 %3372 }
 0x375   :  { %v3733_v35 = vmul.f32 %v7286_v51, %v2915_v50  ;;  %v2918_v51 = vadd.f32 %v8186_v58, %v7755_v25  ;;  %v3734_v62 = vmul.f32 %v7257_v11, %v2916_v63  ;;  %v3744_v25 = vmul.f32 %v7411_v33, %v2926_v4 }
 0x376   :  { %v8284_v6 = vpop.permute.xlu0 %3387  ;;  %v2935_v63 = vadd.f32 %v8186_v58, %v7771_v7 }
 0x377   :  { %3927 = vperm.xlu0 %5697, %v3729_v18   ;;  %v3732_v18 = vmul.f32 %v9978_v44, %v2914_v42 }
 0x378   :  { %3922 = vperm.xlu1 %5696, %v3728_v20   ;;  %v8286_v19 = vpop.permute.xlu1 %3383  ;;  %v3735_v20 = vmul.f32 %v7323_v29, %v2917_v13  ;;  %v2920_v29 = vadd.f32 %v8186_v58, %v7940_v56  ;;  %v2927_v13 = vadd.f32 %v8186_v58, %v7753_v36 }
 0x37a   :  { %v8294_v52 = vpop.permute.xlu0 %3395  ;;  %v3738_v44 = vmul.f32 %v9981_v9, %v2920_v29  ;;  %v3745_v33 = vmul.f32 %v7439_v16, %v2927_v13  ;;  %v2936_v29 = vadd.f32 %v8186_v58, %v7960_v21  ;;  %v9985_v21 = vld [vmem:[#allocation122_spill] sm:$0xff] }
 0x37b   :  { %3937 = vperm.xlu0 %5697, %v3731_v55   ;;  %v9979_v55 = vld [vmem:[#allocation121_spill] sm:$0xff] }
 0x37c   :  { %3932 = vperm.xlu1 %5696, %v3730_v3   ;;  %v8296_v24 = vpop.permute.xlu1 %3391  ;;  %v3737_v50 = vmul.f32 %v9979_v55, %v2919_v17  ;;  %v9980_v3 = vld [vmem:[#allocation119_spill] sm:$0xff]  ;;  %v9982_v55 = vld [vmem:[#allocation33_spill] sm:$0xff] }
 0x37d   :  { %v3736_v54 = vmul.f32 %v9980_v3, %v2918_v51  ;;  %v3753_v51 = vmul.f32 %v7490_v10, %v2935_v63  ;;  %v2929_v10 = vadd.f32 %v8186_v58, %v7946_v5  ;;  %v3754_v5 = vmul.f32 %v7480_v57, %v2936_v29  ;;  %v9986_v63 = vld [vmem:[#allocation107_spill] sm:$0xff] }
 0x37e   :  { %v8304_v49 = vpop.permute.xlu0 %3403  ;;  %v9988_v57 = vld [vmem:[#allocation23_spill] sm:$0xff] }
 0x37f   :  { %3947 = vperm.xlu0 %5697, %v3733_v35   ;;  %v2934_v35 = vadd.f32 %v8186_v58, %v7782_v31  ;;  %v2921_v31 = vadd.f32 %v8186_v58, %v7934_v61 }
 0x380   :  { %3942 = vperm.xlu1 %5696, %v3732_v18   ;;  %v8306_v23 = vpop.permute.xlu1 %3399 }
 0x381   :  { %v3752_v17 = vmul.f32 %v7466_v32, %v2934_v35  ;;  %v3739_v7 = vmul.f32 %v9982_v55, %v2921_v31  ;;  %v2928_v32 = vadd.f32 %v8186_v58, %v7952_v48  ;;  %v9983_v35 = vld [vmem:[#allocation24_spill] sm:$0xff] }
 0x382   :  { %v8314_v28 = vpop.permute.xlu0 %3414  ;;  %v2923_v13 = vadd.f32 %v8186_v58, %v9983_v35 }
 0x383   :  { %3957 = vperm.xlu0 %5697, %v3735_v20  }
 0x384   :  { %3952 = vperm.xlu1 %5696, %v3734_v62   ;;  %v8316_v12 = vpop.permute.xlu1 %3407  ;;  %v2942_v62 = vadd.f32 %v8186_v58, %v7801_v40  ;;  %v3746_v40 = vmul.f32 %v7431_v8, %v2928_v32 }
 0x386   :  { %v8324_v42 = vpop.permute.xlu0 %3422  ;;  %v3760_v4 = vmul.f32 %v7518_v2, %v2942_v62  ;;  %v2922_v2 = vadd.f32 %v8186_v58, %v8051_v27  ;;  %v9989_v62 = vld [vmem:[#allocation21_spill] sm:$0xff] }
 0x387   :  { %3967 = vperm.xlu0 %5697, %v3737_v50   ;;  %v2943_v50 = vadd.f32 %v8186_v58, %v7780_v38  ;;  %v3747_v38 = vmul.f32 %v7452_v46, %v2929_v10  ;;  %v2937_v55 = vadd.f32 %v8186_v58, %v9989_v62  ;;  %v9991_v10 = vld [vmem:[#allocation29_spill] sm:$0xff] }
 0x388   :  { %3962 = vperm.xlu1 %5696, %v3736_v54   ;;  %v8326_v11 = vpop.permute.xlu1 %3418 }
 0x389   :  { %v3761_v54 = vmul.f32 %v7547_v47, %v2943_v50  ;;  %v9984_v47 = vld [vmem:[#allocation40_spill] sm:$0xff]  ;;  %v9990_v50 = vld [vmem:[#allocation37_spill] sm:$0xff] }
 0x38a   :  { %v8334_v18 = vpop.permute.xlu0 %3430  ;;  %v2950_v9 = vadd.f32 %v8186_v58, %v9984_v47 }
 0x38b   :  { %4002 = vperm.xlu0 %5697, %v3744_v25  }
 0x38c   :  { %3972 = vperm.xlu1 %5696, %v3738_v44   ;;  %v8336_v56 = vpop.permute.xlu1 %3426  ;;  %v3740_v44 = vmul.f32 %v9985_v21, %v2922_v2 }
 0x38e   :  { %v8344_v20 = vpop.permute.xlu0 %3438 }
 0x38f   :  { %4042 = vperm.xlu0 %5697, %v3752_v17   ;;  %v2951_v17 = vadd.f32 %v8186_v58, %v9986_v63 }
 0x390   :  { %4007 = vperm.xlu1 %5696, %v3745_v33   ;;  %v8346_v36 = vpop.permute.xlu1 %3434  ;;  %v9987_v33 = vld [vmem:[#allocation43_spill] sm:$0xff] }
 0x391   :  { %v3741_v31 = vmul.f32 %v9987_v33, %v2923_v13  ;;  %v9994_v13 = vld [vmem:[#allocation125_spill] sm:$0xff] }
 0x392   :  { %v8354_v16 = vpop.permute.xlu0 %3449 }
 0x393   :  { %4047 = vperm.xlu0 %5697, %v3753_v51   ;;  %v3768_v51 = vmul.f32 %v9988_v57, %v2950_v9  ;;  %v9995_v9 = vld [vmem:[#allocation34_spill] sm:$0xff] }
 0x394   :  { %3977 = vperm.xlu1 %5696, %v3739_v7   ;;  %v8356_v61 = vpop.permute.xlu1 %3442  ;;  %v2931_v21 = vadd.f32 %v8186_v58, %v9995_v9  ;;  %v10004_v9 = vld [vmem:[#allocation127_spill] sm:$0xff] }
 0x396   :  { %v8364_v3 = vpop.permute.xlu0 %3457 }
 0x397   :  { %4082 = vperm.xlu0 %5697, %v3760_v4   ;;  %v3769_v4 = vmul.f32 %v9990_v50, %v2951_v17  ;;  %v9997_v17 = vld [vmem:[#allocation161_spill] sm:$0xff] }
 0x398   :  { %4012 = vperm.xlu1 %5696, %v3746_v40   ;;  %v8366_v48 = vpop.permute.xlu1 %3453  ;;  %v2944_v40 = vadd.f32 %v8186_v58, %v9991_v10  ;;  %v2958_v33 = vadd.f32 %v8186_v58, %v9997_v17  ;;  %v9999_v50 = vld [vmem:[#allocation25_spill] sm:$0xff] }
 0x399   :  { %v10000_v10 = vld [vmem:[#allocation61_spill] sm:$0xff] }
 0x39a   :  { %v8374_v25 = vpop.permute.xlu0 %3465  ;;  %v3762_v47 = vmul.f32 %v9994_v13, %v2944_v40  ;;  %v3776_v40 = vmul.f32 %v10000_v10, %v2958_v33  ;;  %v10003_v13 = vld [vmem:[#allocation85_spill] sm:$0xff]  ;;  %v10007_v33 = vld [vmem:[#allocation79_spill] sm:$0xff]  ;;  %v10009_v10 = vld [vmem:[#allocation32_spill] sm:$0xff] }
 0x39b   :  { %4087 = vperm.xlu0 %5697, %v3761_v54   ;;  %v9992_v54 = vld [vmem:[#allocation78_spill] sm:$0xff] }
 0x39c   :  { %4017 = vperm.xlu1 %5696, %v3747_v38   ;;  %v8376_v8 = vpop.permute.xlu1 %3461  ;;  %v3755_v29 = vmul.f32 %v9992_v54, %v2937_v55  ;;  %v9993_v38 = vld [vmem:[#allocation28_spill] sm:$0xff]  ;;  %v2959_v55 = vadd.f32 %v8186_v58, %v8196_v43 }
 0x39d   :  { %v2930_v2 = vadd.f32 %v8186_v58, %v9993_v38  ;;  %v10002_v38 = vld [vmem:[#allocation38_spill] sm:$0xff] }
 0x39e   :  { %v8384_v46 = vpop.permute.xlu0 %3473 }
 0x39f   :  { %4052 = vperm.xlu0 %5697, %v3754_v5  }
 0x3a0   :  { %3982 = vperm.xlu1 %5696, %v3740_v44   ;;  %v8386_v27 = vpop.permute.xlu1 %3469  ;;  %v9996_v44 = vld [vmem:[#allocation53_spill] sm:$0xff] }
 0x3a1   :  { %v3748_v63 = vmul.f32 %v9996_v44, %v2930_v2  ;;  %v2938_v2 = vadd.f32 %v8186_v58, %v10002_v38  ;;  %v10005_v44 = vld [vmem:[#allocation135_spill] sm:$0xff] }
 0x3a2   :  { %v8394_v7 = vpop.permute.xlu0 %3484  ;;  %v2924_v43 = vadd.f32 %v8186_v58, %v10005_v44 }
 0x3a3   :  { %3987 = vperm.xlu0 %5697, %v3741_v31  }
 0x3a4   :  { %4122 = vperm.xlu1 %5696, %v3768_v51   ;;  %v8396_v32 = vpop.permute.xlu1 %3477  ;;  %v9998_v51 = vld [vmem:[#allocation65_spill] sm:$0xff] }
 0x3a5   :  { %v3749_v62 = vmul.f32 %v9998_v51, %v2931_v21  ;;  %v3756_v51 = vmul.f32 %v10007_v33, %v2938_v2  ;;  %v10013_v2 = vld [vmem:[#allocation31_spill] sm:$0xff]  ;;  %v10014_v33 = vld [vmem:[#allocation136_spill] sm:$0xff] }
 0x3a6   :  { %v8404_v5 = vpop.permute.xlu0 %3492 }
 0x3a7   :  { %4127 = vperm.xlu0 %5697, %v3769_v4   ;;  %v2945_v4 = vadd.f32 %v8186_v58, %v9999_v50 }
 0x3a8   :  { %4057 = vperm.xlu1 %5696, %v3755_v29   ;;  %v8406_v35 = vpop.permute.xlu1 %3488 }
 0x3a9   :  { %v3763_v21 = vmul.f32 %v10004_v9, %v2945_v4 }
 0x3aa   :  { %v8414_v31 = vpop.permute.xlu0 %3500 }
 0x3ab   :  { %4092 = vperm.xlu0 %5697, %v3762_v47   ;;  %v3777_v47 = vmul.f32 %v10003_v13, %v2959_v55  ;;  %v10011_v55 = vld [vmem:[#allocation50_spill] sm:$0xff] }
 0x3ac   :  { %4022 = vperm.xlu1 %5696, %v3748_v63   ;;  %v8416_v57 = vpop.permute.xlu1 %3496  ;;  %v2966_v4 = vadd.f32 %v8186_v58, %v10011_v55  ;;  %v10017_v55 = vld [vmem:[#allocation35_spill] sm:$0xff] }
 0x3ae   :  { %v8424_v54 = vpop.permute.xlu0 %3508 }
 0x3af   :  { %4027 = vperm.xlu0 %5697, %v3749_v62   ;;  %v10008_v62 = vld [vmem:[#allocation101_spill] sm:$0xff] }
 0x3b0   :  { %4162 = vperm.xlu1 %5696, %v3776_v40   ;;  %v8426_v29 = vpop.permute.xlu1 %3504  ;;  %v2952_v50 = vadd.f32 %v8186_v58, %v10008_v62  ;;  %v3742_v40 = vmul.f32 %v10009_v10, %v2924_v43  ;;  %v2925_v62 = vadd.f32 %v8186_v58, %v10014_v33 }
 0x3b1   :  { %10001 = vst [vmem:[#allocation62_spill] sm:$0xff] %v8426_v29 }
 0x3b2   :  { %v8434_v63 = vpop.permute.xlu0 %3519  ;;  %v3770_v44 = vmul.f32 %v10013_v2, %v2952_v50 }
 0x3b3   :  { %4167 = vperm.xlu0 %5697, %v3777_v47   ;;  %v10012_v47 = vld [vmem:[#allocation44_spill] sm:$0xff] }
 0x3b4   :  { %4097 = vperm.xlu1 %5696, %v3763_v21   ;;  %v8436_v17 = vpop.permute.xlu1 %3512  ;;  %v2939_v9 = vadd.f32 %v8186_v58, %v10012_v47  ;;  %v3784_v21 = vmul.f32 %v8234_v34, %v2966_v4  ;;  %v10020_v34 = vld [vmem:[#allocation30_spill] sm:$0xff] }
 0x3b5   :  { %10006 = vst [vmem:[#allocation76_spill] sm:$0xff] %v8436_v17  ;;  %v10018_v17 = vld [vmem:[#allocation42_spill] sm:$0xff]  ;;  %v2967_v50 = vadd.f32 %v8186_v58, %v10020_v34  ;;  %v10027_v34 = vld [vmem:[#allocation52_spill] sm:$0xff] }
 0x3b6   :  { %v8442_v38 = vpop.permute.xlu0 %3527  ;;  %v3743_v47 = vmul.f32 %v10018_v17, %v2925_v62 }
 0x3b7   :  { %10010 = vst [vmem:[#allocation66_spill] sm:$0xff] %v8442_v38  ;;  %4062 = vperm.xlu0 %5697, %v3756_v51   ;;  %v10016_v51 = vld [vmem:[#allocation123_spill] sm:$0xff]  ;;  %v2953_v38 = vadd.f32 %v8186_v58, %v10017_v55 }
 0x3b8   :  { %3992 = vperm.xlu1 %5696, %v3742_v40   ;;  %v8446_v13 = vpop.permute.xlu1 %3523  ;;  %v3757_v40 = vmul.f32 %v10016_v51, %v2939_v9  ;;  %v10023_v9 = vld [vmem:[#allocation47_spill] sm:$0xff]  ;;  %v10024_v51 = vld [vmem:[#allocation137_spill] sm:$0xff] }
 0x3b9   :  { %v3771_v33 = vmul.f32 %v10023_v9, %v2953_v38  ;;  %v2932_v55 = vadd.f32 %v8186_v58, %v10024_v51 }
 0x3ba   :  { %v8454_v43 = vpop.permute.xlu0 %3535 }
 0x3bb   :  { %4202 = vperm.xlu0 %5697, %v3784_v21   ;;  %v10022_v21 = vld [vmem:[#allocation48_spill] sm:$0xff] }
 0x3bc   :  { %4132 = vperm.xlu1 %5696, %v3770_v44   ;;  %v8456_v10 = vpop.permute.xlu1 %3531  ;;  %v2946_v2 = vadd.f32 %v8186_v58, %v10022_v21  ;;  %v3785_v44 = vmul.f32 %v8246_v1, %v2967_v50  ;;  %v10030_v1 = vld [vmem:[#allocation60_spill] sm:$0xff] }
 0x3bd   :  { %10015 = vst [vmem:[#allocation80_spill] sm:$0xff] %v8456_v10  ;;  %v2974_v38 = vadd.f32 %v8186_v58, %v10030_v1  ;;  %v10038_v1 = vld [vmem:[#allocation64_spill] sm:$0xff] }
 0x3be   :  { %v8462_v29 = vpop.permute.xlu0 %3543 }
 0x3bf   :  { %10019 = vst [vmem:[#allocation67_spill] sm:$0xff] %v8462_v29  ;;  %4067 = vperm.xlu0 %5697, %v3757_v40   ;;  %v10026_v40 = vld [vmem:[#allocation126_spill] sm:$0xff]  ;;  %v10028_v29 = vld [vmem:[#allocation159_spill] sm:$0xff] }
 0x3c0   :  { %3997 = vperm.xlu1 %5696, %v3743_v47   ;;  %v8466_v4 = vpop.permute.xlu1 %3539  ;;  %v3764_v47 = vmul.f32 %v10026_v40, %v2946_v2  ;;  %v2960_v21 = vadd.f32 %v8186_v58, %v10028_v29  ;;  %v10033_v2 = vld [vmem:[#allocation138_spill] sm:$0xff] }
 0x3c1   :  { %10021 = vst [vmem:[#allocation90_spill] sm:$0xff] %v8466_v4  ;;  %v3750_v4 = vmul.f32 %v10027_v34, %v2932_v55  ;;  %v2933_v51 = vadd.f32 %v8186_v58, %v10033_v2  ;;  %v10034_v55 = vld [vmem:[#allocation75_spill] sm:$0xff] }
 0x3c2   :  { %v8474_v17 = vpop.permute.xlu0 %3554  ;;  %v3778_v40 = vmul.f32 %v10034_v55, %v2960_v21  ;;  %v10042_v21 = vld [vmem:[#allocation58_spill] sm:$0xff]  ;;  %v10043_v55 = vld [vmem:[#allocation139_spill] sm:$0xff] }
 0x3c3   :  { %4207 = vperm.xlu0 %5697, %v3785_v44   ;;  %v10032_v44 = vld [vmem:[#allocation54_spill] sm:$0xff] }
 0x3c4   :  { %4137 = vperm.xlu1 %5696, %v3771_v33   ;;  %v8476_v62 = vpop.permute.xlu1 %3547  ;;  %v2947_v9 = vadd.f32 %v8186_v58, %v10032_v44  ;;  %v3792_v33 = vmul.f32 %v8274_v60, %v2974_v38 }
 0x3c5   :  { %10025 = vst [vmem:[#allocation77_spill] sm:$0xff] %v8476_v62  ;;  %v10039_v62 = vld [vmem:[#allocation160_spill] sm:$0xff] }
 0x3c6   :  { %v8482_v10 = vpop.permute.xlu0 %3562  ;;  %v2961_v44 = vadd.f32 %v8186_v58, %v10039_v62 }
 0x3c7   :  { %10029 = vst [vmem:[#allocation96_spill] sm:$0xff] %v8482_v10  ;;  %4102 = vperm.xlu0 %5697, %v3764_v47   ;;  %v10037_v47 = vld [vmem:[#allocation19_spill] sm:$0xff]  ;;  %v3751_v10 = vmul.f32 %v10038_v1, %v2933_v51 }
 0x3c8   :  { %4032 = vperm.xlu1 %5696, %v3750_v4   ;;  %v8486_v50 = vpop.permute.xlu1 %3558  ;;  %v3765_v4 = vmul.f32 %v10037_v47, %v2947_v9  ;;  %v2940_v9 = vadd.f32 %v8186_v58, %v10043_v55 }
 0x3c9   :  { %10031 = vst [vmem:[#allocation81_spill] sm:$0xff] %v8486_v50  ;;  %v10040_v50 = vld [vmem:[#allocation18_spill] sm:$0xff] }
 0x3ca   :  { %v8494_v29 = vpop.permute.xlu0 %3570  ;;  %v2975_v60 = vadd.f32 %v8186_v58, %v10040_v50  ;;  %v10047_v50 = vld [vmem:[#allocation41_spill] sm:$0xff] }
 0x3cb   :  { %4242 = vperm.xlu0 %5697, %v3792_v33   ;;  %10035 = vst [vmem:[#allocation103_spill] sm:$0xff] %v8494_v29  ;;  %v2954_v33 = vadd.f32 %v8186_v58, %v10042_v21  ;;  %v10050_v21 = vld [vmem:[#allocation74_spill] sm:$0xff] }
 0x3cc   :  { %4172 = vperm.xlu1 %5696, %v3778_v40   ;;  %v8496_v34 = vpop.permute.xlu1 %3566  ;;  %v3793_v2 = vmul.f32 %v8286_v19, %v2975_v60  ;;  %v10044_v40 = vld [vmem:[#allocation22_spill] sm:$0xff]  ;;  %v2982_v19 = vadd.f32 %v8186_v58, %v10050_v21  ;;  %v10051_v60 = vld [vmem:[#allocation108_spill] sm:$0xff]  ;;  %v10057_v21 = vld [vmem:[#allocation57_spill] sm:$0xff] }
 0x3cd   :  { %10036 = vst [vmem:[#allocation91_spill] sm:$0xff] %v8496_v34  ;;  %v3779_v51 = vmul.f32 %v10044_v40, %v2961_v44  ;;  %v2968_v55 = vadd.f32 %v8186_v58, %v10051_v60  ;;  %v10058_v60 = vld [vmem:[#allocation124_spill] sm:$0xff] }
 0x3ce   :  { %v8512_v47 = vpop.permute.xlu0 %3578 }
 0x3cf   :  { %4107 = vperm.xlu0 %5697, %v3765_v4   ;;  %10045 = vst [vmem:[#allocation97_spill] sm:$0xff] %v8512_v47  ;;  %v10048_v4 = vld [vmem:[#allocation15_spill] sm:$0xff] }
 0x3d0   :  { %4037 = vperm.xlu1 %5696, %v3751_v10   ;;  %v8504_v38 = vpop.permute.xlu1 %3574  ;;  %v3772_v10 = vmul.f32 %v10047_v50, %v2954_v33  ;;  %v3758_v1 = vmul.f32 %v10048_v4, %v2940_v9  ;;  %v10054_v33 = vld [vmem:[#allocation140_spill] sm:$0xff]  ;;  %v3786_v50 = vmul.f32 %v8244_v0, %v2968_v55  ;;  %v2962_v55 = vadd.f32 %v8186_v58, %v8214_v41 }
 0x3d1   :  { %10041 = vst [vmem:[#allocation110_spill] sm:$0xff] %v8504_v38  ;;  %v2941_v9 = vadd.f32 %v8186_v58, %v10054_v33  ;;  %v10068_v41 = vld [vmem:[#allocation88_spill] sm:$0xff] }
 0x3d3   :  { %4247 = vperm.xlu0 %5697, %v3793_v2   ;;  %v10053_v2 = vld [vmem:[#allocation134_spill] sm:$0xff]  ;;  %v3759_v47 = vmul.f32 %v10058_v60, %v2941_v9  ;;  %v10066_v60 = vld [vmem:[#allocation89_spill] sm:$0xff] }
 0x3d4   :  { %4177 = vperm.xlu1 %5696, %v3779_v51   ;;  %v8514_v62 = vpop.permute.xlu1 %3582  ;;  %v2955_v40 = vadd.f32 %v8186_v58, %v10053_v2  ;;  %v3800_v51 = vmul.f32 %v8314_v28, %v2982_v19  ;;  %v10060_v2 = vld [vmem:[#allocation26_spill] sm:$0xff]  ;;  %v10061_v19 = vld [vmem:[#allocation39_spill] sm:$0xff] }
 0x3d5   :  { %10046 = vst [vmem:[#allocation112_spill] sm:$0xff] %v8514_v62  ;;  %v2983_v28 = vadd.f32 %v8186_v58, %v10060_v2  ;;  %v2969_v33 = vadd.f32 %v8186_v58, %v10061_v19  ;;  %v10067_v2 = vld [vmem:[#allocation128_spill] sm:$0xff] }
 0x3d6   :  { %v8518_v38 = vpop.permute.xlu0 %3842 }
 0x3d7   :  { %10049 = vst [vmem:[#allocation106_spill] sm:$0xff] %v8518_v38  ;;  %4142 = vperm.xlu0 %5697, %v3772_v10  }
 0x3d8   :  { %4072 = vperm.xlu1 %5696, %v3758_v1   ;;  %v8524_v44 = vpop.permute.xlu1 %3847  ;;  %v3773_v1 = vmul.f32 %v10057_v21, %v2955_v40  ;;  %v10063_v40 = vld [vmem:[#allocation141_spill] sm:$0xff] }
 0x3d9   :  { %10052 = vst [vmem:[#allocation117_spill] sm:$0xff] %v8524_v44  ;;  %v2948_v9 = vadd.f32 %v8186_v58, %v10063_v40 }
 0x3da   :  { %v8532_v4 = vpop.permute.xlu0 %3857 }
 0x3db   :  { %10055 = vst [vmem:[#allocation111_spill] sm:$0xff] %v8532_v4  ;;  %4282 = vperm.xlu0 %5697, %v3800_v51   ;;  %v3801_v51 = vmul.f32 %v8326_v11, %v2983_v28  ;;  %v3766_v19 = vmul.f32 %v10067_v2, %v2948_v9  ;;  %v2990_v11 = vadd.f32 %v8186_v58, %v10068_v41  ;;  %v10069_v28 = vld [vmem:[#allocation49_spill] sm:$0xff] }
 0x3dc   :  { %4212 = vperm.xlu1 %5696, %v3786_v50   ;;  %v8534_v10 = vpop.permute.xlu1 %3852  ;;  %v3787_v50 = vmul.f32 %v8256_v15, %v2969_v33  ;;  %v2976_v40 = vadd.f32 %v8186_v58, %v10069_v28 }
 0x3dd   :  { %10056 = vst [vmem:[#allocation114_spill] sm:$0xff] %v8534_v10  ;;  %v3808_v33 = vmul.f32 %v8354_v16, %v2990_v11  ;;  %v10076_v16 = vld [vmem:[#allocation36_spill] sm:$0xff] }
 0x3de   :  { %v8538_v62 = vpop.permute.xlu0 %3867  ;;  %v2991_v11 = vadd.f32 %v8186_v58, %v10076_v16  ;;  %v10083_v16 = vld [vmem:[#allocation51_spill] sm:$0xff]  ;;  %v10124_v10 = vld [vmem:[#allocation132_spill] sm:$0xff] }
 0x3df   :  { %10059 = vst [vmem:[#allocation118_spill] sm:$0xff] %v8538_v62  ;;  %4147 = vperm.xlu0 %5697, %v3773_v1  }
 0x3e0   :  { %4077 = vperm.xlu1 %5696, %v3759_v47   ;;  %v8544_v0 = vpop.permute.xlu1 %3862  ;;  %v3780_v47 = vmul.f32 %v10066_v60, %v2962_v55  ;;  %v3794_v55 = vmul.f32 %v8284_v6, %v2976_v40  ;;  %v2963_v60 = vadd.f32 %v8186_v58, %v8216_v53  ;;  %v10077_v6 = vld [vmem:[#allocation45_spill] sm:$0xff]  ;;  %v3809_v53 = vmul.f32 %v8366_v48, %v2991_v11  ;;  %v10085_v48 = vld [vmem:[#allocation84_spill] sm:$0xff] }
 0x3e1   :  { %10062 = vst [vmem:[#allocation121_spill] sm:$0xff] %v8544_v0  ;;  %v2977_v40 = vadd.f32 %v8186_v58, %v10077_v6  ;;  %v2998_v11 = vadd.f32 %v8186_v58, %v10085_v48  ;;  %v10092_v48 = vld [vmem:[#allocation71_spill] sm:$0xff] }
 0x3e2   :  { %v8552_v21 = vpop.permute.xlu0 %3877  ;;  %v3781_v2 = vmul.f32 %v8226_v39, %v2963_v60  ;;  %v10081_v60 = vld [vmem:[#allocation72_spill] sm:$0xff] }
 0x3e3   :  { %10064 = vst [vmem:[#allocation119_spill] sm:$0xff] %v8552_v21  ;;  %4287 = vperm.xlu0 %5697, %v3801_v51   ;;  %v10071_v51 = vld [vmem:[#allocation142_spill] sm:$0xff]  ;;  %v3795_v39 = vmul.f32 %v8296_v24, %v2977_v40  ;;  %v10086_v24 = vld [vmem:[#allocation59_spill] sm:$0xff] }
 0x3e4   :  { %4217 = vperm.xlu1 %5696, %v3787_v50   ;;  %v8554_v1 = vpop.permute.xlu1 %3872  ;;  %v2949_v50 = vadd.f32 %v8186_v58, %v10071_v51  ;;  %v2984_v40 = vadd.f32 %v8186_v58, %v10086_v24 }
 0x3e5   :  { %10065 = vst [vmem:[#allocation120_spill] sm:$0xff] %v8554_v1  ;;  %v10116_v1 = vld [vmem:[#allocation115_spill] sm:$0xff] }
 0x3e6   :  { %v8558_v0 = vpop.permute.xlu0 %3887 }
 0x3e7   :  { %4182 = vperm.xlu0 %5697, %v3780_v47  }
 0x3e8   :  { %4112 = vperm.xlu1 %5696, %v3766_v19   ;;  %v8564_v15 = vpop.permute.xlu1 %3882  ;;  %v10074_v19 = vld [vmem:[#allocation27_spill] sm:$0xff] }
 0x3e9   :  { %10070 = vst [vmem:[#allocation33_spill] sm:$0xff] %v8564_v15  ;;  %v3767_v41 = vmul.f32 %v10074_v19, %v2949_v50  ;;  %v2970_v19 = vadd.f32 %v8186_v58, %v10081_v60  ;;  %v10133_v15 = vld [vmem:[#allocation148_spill] sm:$0xff] }
 0x3ea   :  { %v8570_v9 = vpop.permute.xlu0 %3897 }
 0x3eb   :  { %10072 = vst [vmem:[#allocation24_spill] sm:$0xff] %v8570_v9  ;;  %4322 = vperm.xlu0 %5697, %v3808_v33   ;;  %v10079_v33 = vld [vmem:[#allocation143_spill] sm:$0xff] }
 0x3ec   :  { %4252 = vperm.xlu1 %5696, %v3794_v55   ;;  %v8574_v47 = vpop.permute.xlu1 %3892  ;;  %v2956_v55 = vadd.f32 %v8186_v58, %v10079_v33 }
 0x3ed   :  { %10073 = vst [vmem:[#allocation40_spill] sm:$0xff] %v8574_v47  ;;  %v10119_v47 = vld [vmem:[#allocation14_spill] sm:$0xff] }
 0x3ee   :  { %v8578_v28 = vpop.permute.xlu0 %3907  ;;  %v3774_v6 = vmul.f32 %v10083_v16, %v2956_v55 }
 0x3ef   :  { %10075 = vst [vmem:[#allocation122_spill] sm:$0xff] %v8578_v28  ;;  %4187 = vperm.xlu0 %5697, %v3781_v2   ;;  %v10118_v28 = vld [vmem:[#allocation113_spill] sm:$0xff] }
 0x3f0   :  { %4117 = vperm.xlu1 %5696, %v3767_v41   ;;  %v8584_v51 = vpop.permute.xlu1 %3902  ;;  %v3788_v41 = vmul.f32 %v8254_v30, %v2970_v19  ;;  %v3802_v30 = vmul.f32 %v8324_v42, %v2984_v40  ;;  %v10090_v19 = vld [vmem:[#allocation68_spill] sm:$0xff]  ;;  %v10095_v42 = vld [vmem:[#allocation55_spill] sm:$0xff] }
 0x3f1   :  { %10078 = vst [vmem:[#allocation107_spill] sm:$0xff] %v8584_v51  ;;  %v2971_v16 = vadd.f32 %v8186_v58, %v10090_v19  ;;  %v2985_v40 = vadd.f32 %v8186_v58, %v10095_v42  ;;  %v10100_v42 = vld [vmem:[#allocation70_spill] sm:$0xff] }
 0x3f2   :  { %v8590_v50 = vpop.permute.xlu0 %3917 }
 0x3f3   :  { %10080 = vst [vmem:[#allocation43_spill] sm:$0xff] %v8590_v50  ;;  %4327 = vperm.xlu0 %5697, %v3809_v53   ;;  %v3816_v53 = vmul.f32 %v8394_v7, %v2998_v11  ;;  %v10094_v7 = vld [vmem:[#allocation46_spill] sm:$0xff] }
 0x3f4   :  { %4257 = vperm.xlu1 %5696, %v3795_v39   ;;  %v8594_v2 = vpop.permute.xlu1 %3912  ;;  %v10088_v39 = vld [vmem:[#allocation144_spill] sm:$0xff]  ;;  %v2999_v11 = vadd.f32 %v8186_v58, %v10094_v7  ;;  %v10115_v50 = vld [vmem:[#allocation82_spill] sm:$0xff] }
 0x3f5   :  { %10082 = vst [vmem:[#allocation23_spill] sm:$0xff] %v8594_v2  ;;  %v2957_v60 = vadd.f32 %v8186_v58, %v10088_v39  ;;  %v10099_v7 = vld [vmem:[#allocation56_spill] sm:$0xff] }
 0x3f6   :  { %v8598_v51 = vpop.permute.xlu0 %3927 }
 0x3f7   :  { %10084 = vst [vmem:[#allocation21_spill] sm:$0xff] %v8598_v51  ;;  %4222 = vperm.xlu0 %5697, %v3788_v41   ;;  %v3775_v24 = vmul.f32 %v10092_v48, %v2957_v60  ;;  %v10098_v48 = vld [vmem:[#allocation86_spill] sm:$0xff] }
 0x3f8   :  { %4152 = vperm.xlu1 %5696, %v3774_v6   ;;  %v8604_v33 = vpop.permute.xlu1 %3922  ;;  %v3789_v6 = vmul.f32 %v8266_v45, %v2971_v16  ;;  %v8630_v45 = vld [vmem:[#allocation3] sm:$0xff]   ;;  %v10103_v16 = vld [vmem:[#allocation104_spill] sm:$0xff] }
 0x3f9   :  { %10087 = vst [vmem:[#allocation37_spill] sm:$0xff] %v8604_v33 }
 0x3fa   :  { %v8610_v55 = vpop.permute.xlu0 %3937 }
 0x3fb   :  { %10089 = vst [vmem:[#allocation29_spill] sm:$0xff] %v8610_v55  ;;  %4362 = vperm.xlu0 %5697, %v3816_v53   ;;  %v3817_v53 = vmul.f32 %v8406_v35, %v2999_v11  ;;  %v8642_v35 = vadd.f32 %v8186_v58, %v10100_v42  ;;  %v10110_v55 = vld [vmem:[#allocation16_spill] sm:$0xff] }
 0x3fc   :  { %4292 = vperm.xlu1 %5696, %v3802_v30   ;;  %v8614_v41 = vpop.permute.xlu1 %3932  ;;  %v3803_v30 = vmul.f32 %v8336_v56, %v2985_v40  ;;  %v10101_v56 = vld [vmem:[#allocation17_spill] sm:$0xff]  ;;  %v2964_v40 = vadd.f32 %v8186_v58, %v8204_v26  ;;  %v10107_v26 = vld [vmem:[#allocation87_spill] sm:$0xff] }
 0x3fd   :  { %10091 = vst [vmem:[#allocation78_spill] sm:$0xff] %v8614_v41  ;;  %v3006_v11 = vadd.f32 %v8186_v58, %v10101_v56  ;;  %v10106_v56 = vld [vmem:[#allocation83_spill] sm:$0xff] }
 0x3fe   :  { %v8618_v2 = vpop.permute.xlu0 %3947 }
 0x3ff   :  { %10093 = vst [vmem:[#allocation28_spill] sm:$0xff] %v8618_v2  ;;  %4227 = vperm.xlu0 %5697, %v3789_v6   ;;  %v2978_v6 = vadd.f32 %v8186_v58, %v10098_v48  ;;  %v10104_v48 = vld [vmem:[#allocation69_spill] sm:$0xff]  ;;  %v8663_v2 = vadd.f32 %v8186_v58, %v10106_v56 }
 0x400   :  { %4157 = vperm.xlu1 %5696, %v3775_v24   ;;  %v8624_v39 = vpop.permute.xlu1 %3942  ;;  %v8638_v24 = vadd.f32 %v8186_v58, %v10099_v7  ;;  %v8656_v7 = vadd.f32 %v8186_v58, %v10104_v48  ;;  %v3782_v48 = vmul.f32 %v8224_v59, %v2964_v40  ;;  %v10113_v56 = vld [vmem:[#allocation109_spill] sm:$0xff]  ;;  %v8692_v59 = vadd.f32 %v8186_v58, %v10116_v1  ;;  %v10117_v40 = vld [vmem:[#allocation116_spill] sm:$0xff]  ;;  %v10122_v1 = vld [vmem:[#allocation130_spill] sm:$0xff] }
 0x401   :  { %10096 = vst [vmem:[#allocation125_spill] sm:$0xff] %v8624_v39  ;;  %v3796_v39 = vmul.f32 %v8294_v52, %v2978_v6  ;;  %v10111_v52 = vld [vmem:[#allocation20_spill] sm:$0xff]  ;;  %v8714_v21 = vadd.f32 %v8186_v58, %v10122_v1 }
 0x402   :  { %v8628_v19 = vpop.permute.xlu0 %3957  ;;  %v8682_v6 = vadd.f32 %v8186_v58, %v10111_v52  ;;  %v8700_v52 = vadd.f32 %v8186_v58, %v10118_v28  ;;  %v3824_v28 = vmul.f32 %v8434_v63, %v3006_v11  ;;  %v10131_v63 = vld [vmem:[#allocation146_spill] sm:$0xff] }
 0x403   :  { %10097 = vst [vmem:[#allocation34_spill] sm:$0xff] %v8628_v19  ;;  %4367 = vperm.xlu0 %5697, %v3817_v53   ;;  %v8652_v53 = vadd.f32 %v8186_v58, %v10103_v16  ;;  %v10105_v19 = vld [vmem:[#allocation73_spill] sm:$0xff]  ;;  %v2973_v11 = vadd.f32 %v8186_v58, %v10131_v63  ;;  %v10137_v63 = vld [vmem:[#allocation63_spill] sm:$0xff] }
 0x404   :  { %4297 = vperm.xlu1 %5696, %v3803_v30   ;;  %v8648_v60 = vpop.permute.xlu1 %3952  ;;  %v2992_v42 = vadd.f32 %v8186_v58, %v10105_v19  ;;  %v8667_v30 = vadd.f32 %v8186_v58, %v10107_v26  ;;  %v8678_v19 = vadd.f32 %v8186_v58, %v10110_v55  ;;  %10112 = vst [vmem:[#allocation65_spill] sm:$0xff] %v8682_v6 }
 0x405   :  { %10102 = vst [vmem:[#allocation53_spill] sm:$0xff] %v8648_v60  ;;  %v10108_v60 = vld [vmem:[#allocation99_spill] sm:$0xff]  ;;  %v8686_v26 = vadd.f32 %v8186_v58, %v10113_v56  ;;  %v8696_v55 = vadd.f32 %v8186_v58, %v10117_v40  ;;  %v8704_v56 = vadd.f32 %v8186_v58, %v10119_v47  ;;  %v10123_v40 = vld [vmem:[#allocation129_spill] sm:$0xff]  ;;  %v8723_v47 = vadd.f32 %v8186_v58, %v10124_v10 }
 0x406   :  { %v8671_v16 = vadd.f32 %v8186_v58, %v10108_v60  ;;  %v8674_v41 = vpop.permute.xlu0 %3967  ;;  %v2979_v60 = vadd.f32 %v8186_v58, %v10115_v50  ;;  %v10121_v50 = vld [vmem:[#allocation13_spill] sm:$0xff]  ;;  %v8718_v62 = vadd.f32 %v8186_v58, %v10123_v40  ;;  %v3810_v1 = vmul.f32 %v8364_v3, %v2992_v42  ;;  %v10132_v10 = vld [vmem:[#allocation147_spill] sm:$0xff]  ;;  %v10135_v3 = vld [vmem:[#allocation150_spill] sm:$0xff] }
 0x407   :  { %10109 = vst [vmem:[#allocation161_spill] sm:$0xff] %v8674_v41  ;;  %10114 = vst [vmem:[#allocation25_spill] sm:$0xff] %v8686_v26  ;;  %4262 = vperm.xlu0 %5697, %v3796_v39   ;;  %v8710_v39 = vadd.f32 %v8186_v58, %v10121_v50  ;;  %v10127_v50 = vld [vmem:[#allocation133_spill] sm:$0xff]  ;;  %v8752_v42 = vadd.f32 %v8186_v58, %v10135_v3  ;;  %v10141_v3 = vld [vmem:[#allocation154_spill] sm:$0xff] }
 0x408   :  { %4192 = vperm.xlu1 %5696, %v3782_v48   ;;  %v8706_v9 = vpop.permute.xlu1 %3962  ;;  %10125 = vst [vmem:[#allocation38_spill] sm:$0xff] %v8723_v47  ;;  %v10126_v48 = vld [vmem:[#allocation131_spill] sm:$0xff]  ;;  %v8731_v4 = vadd.f32 %v8186_v58, %v10127_v50  ;;  %v10130_v40 = vld [vmem:[#allocation145_spill] sm:$0xff]  ;;  %v2980_v47 = vadd.f32 %v8186_v58, %v10132_v10  ;;  %v2965_v10 = vadd.f32 %v8186_v58, %v10137_v63 }
 0x409   :  { %10120 = vst [vmem:[#allocation61_spill] sm:$0xff] %v8706_v9  ;;  %v8727_v9 = vadd.f32 %v8186_v58, %v10126_v48  ;;  %v2972_v38 = vadd.f32 %v8186_v58, %v10130_v40  ;;  %v8744_v48 = vadd.f32 %v8186_v58, %v10133_v15  ;;  %v10134_v50 = vld [vmem:[#allocation149_spill] sm:$0xff]  ;;  %v10136_v40 = vld [vmem:[#allocation151_spill] sm:$0xff]  ;;  %v10139_v15 = vld [vmem:[#allocation152_spill] sm:$0xff] }
 0x40a   :  { %10128 = vst [vmem:[#allocation85_spill] sm:$0xff] %v8731_v4  ;;  %v8734_v33 = vpop.permute.xlu0 %4002  ;;  %v8748_v34 = vadd.f32 %v8186_v58, %v10134_v50  ;;  %v10140_v50 = vld [vmem:[#allocation153_spill] sm:$0xff]  ;;  %v8772_v4 = vadd.f32 %v8186_v58, %v10141_v3  ;;  %v10142_v41 = vld [vmem:[#allocation155_spill] sm:$0xff]  ;;  %v10148_v3 = vld [vmem:[#allocation158_spill] sm:$0xff] }
 0x40b   :  { %10129 = vst [vmem:[#allocation127_spill] sm:$0xff] %v8734_v33  ;;  %4402 = vperm.xlu0 %5697, %v3824_v28   ;;  %v8756_v33 = vadd.f32 %v8186_v58, %v10136_v40  ;;  %v8764_v28 = vadd.f32 %v8186_v58, %v10139_v15  ;;  %v8768_v29 = vadd.f32 %v8186_v58, %v10140_v50  ;;  %v10145_v15 = vld [vmem:[#allocation157_spill] sm:$0xff] }
 0x40c   :  { %4332 = vperm.xlu1 %5696, %v3810_v1   ;;  %v8760_v6 = vpop.permute.xlu1 %3972  ;;  %v3797_v40 = vmul.f32 %v8306_v23, %v2979_v60  ;;  %v8777_v63 = vadd.f32 %v8186_v58, %v10142_v41  ;;  %v10143_v1 = vld [vmem:[#allocation156_spill] sm:$0xff]  ;;  %v8785_v26 = vadd.f32 %v8186_v58, %v10145_v15  ;;  %v3783_v50 = vmul.f32 %v8236_v22, %v2965_v10  ;;  %v8802_v22 = vld [vmem:[#allocation3 + $0x18] sm:$0xff]   ;;  %v8849_v15 = vld [vmem:[#allocation3 + $0x50] sm:$0xff]  }
 0x40d   :  { %10138 = vst [vmem:[#allocation135_spill] sm:$0xff] %v8760_v6  ;;  %v8781_v6 = vadd.f32 %v8186_v58, %v10143_v1  ;;  %v8792_v44 = vadd.f32 %v8186_v58, %v10148_v3  ;;  %v8794_v23 = vld [vmem:[#allocation3 + $0x8] sm:$0xff]   ;;  %v8798_v1 = vld [vmem:[#allocation3 + $0x10] sm:$0xff]   ;;  %10149 = vst [vmem:[#allocation50_spill] sm:$0xff] %v8802_v22  ;;  %v3825_v60 = vmul.f32 %v8446_v13, %v8638_v24 }
 0x40e   :  { %10146 = vst [vmem:[#allocation101_spill] sm:$0xff] %v8785_v26  ;;  %v8788_v51 = vpop.permute.xlu0 %4042  ;;  %v8806_v3 = vld [vmem:[#allocation3 + $0x20] sm:$0xff]   ;;  %v3790_v58 = vmul.f32 %v8264_v37, %v2972_v38  ;;  %v3811_v22 = vmul.f32 %v8376_v8, %v8656_v7  ;;  %v8821_v26 = vld [vmem:[#allocation3 + $0x30] sm:$0xff]   ;;  %v8828_v24 = vmul.f32 %v8276_v14, %v2973_v11  ;;  %v8838_v7 = vmul.f32 %v8304_v49, %v2980_v47  ;;  %v8853_v47 = vld [vmem:[#allocation3 + $0x58] sm:$0xff]  }
 0x40f   :  { %10144 = vst [vmem:[#allocation79_spill] sm:$0xff] %v8781_v6  ;;  %10147 = vst [vmem:[#allocation32_spill] sm:$0xff] %v8788_v51  ;;  %4267 = vperm.xlu0 %5697, %v3797_v40   ;;  %v8814_v6 = vld [vmem:[#allocation3 + $0x28] sm:$0xff]   ;;  %v8830_v40 = vld [vmem:[#allocation3 + $0x38] sm:$0xff]   ;;  %v3804_v37 = vmul.f32 %v8334_v18, %v8700_v52  ;;  %v8858_v14 = vmul.f32 %v8316_v12, %v8744_v48  ;;  %v8869_v49 = vmul.f32 %v8344_v20, %v8748_v34 }
 0x410   :  { %4197 = vperm.xlu1 %5696, %v3783_v50   ;;  %v8809_v41 = vpop.permute.xlu1 %4007  ;;  %v8834_v38 = vld [vmem:[#allocation3 + $0x40] sm:$0xff]   ;;  %v8841_v50 = vld [vmem:[#allocation3 + $0x48] sm:$0xff]   ;;  %v3805_v52 = vmul.f32 %v8346_v36, %v8692_v59  ;;  %v8884_v20 = vmul.f32 %v8356_v61, %v8752_v42  ;;  %v3832_v48 = vmul.f32 %v8474_v17, %v8652_v53  ;;  %v8901_v42 = vmul.f32 %v8374_v25, %v8704_v56 }
 0x411   :  { %v8861_v11 = vld [vmem:[#allocation3 + $0x60] sm:$0xff]   ;;  %v8874_v12 = vld [vmem:[#allocation3 + $0x68] sm:$0xff]   ;;  %v8911_v18 = vmul.f32 %v8384_v46, %v8756_v33  ;;  %v8915_v61 = vmul.f32 %v8386_v27, %v8696_v55  ;;  %v8925_v53 = vmul.f32 %v8396_v32, %v8764_v28  ;;  %v8936_v56 = vmul.f32 %v8414_v31, %v8718_v62  ;;  %v10157_v55 = vld [vmem:[#allocation62_spill] sm:$0xff] }
 0x412   :  { %v8825_v13 = vpop.permute.xlu0 %4047  ;;  %v8896_v59 = vld [vmem:[#allocation3 + $0x88] sm:$0xff]   ;;  %v8930_v27 = vld [vmem:[#allocation3 + $0xe0] sm:$0xff]   ;;  %v8946_v33 = vmul.f32 %v8424_v54, %v8768_v29  ;;  %v8950_v36 = vmul.f32 %v10157_v55, %v8710_v39  ;;  %v8954_v31 = vld [vmem:[#allocation3 + $0x90] sm:$0xff]   ;;  %v8973_v62 = vmul.f32 %v8454_v43, %v8727_v9  ;;  %v10167_v9 = vunpack.c.h.bf16 %v8806_v3 }
 0x413   :  { %4407 = vperm.xlu0 %5697, %v3825_v60   ;;  %v8871_v60 = vld [vmem:[#allocation3 + $0x80] sm:$0xff]   ;;  %10151 = vst [vmem:[#allocation31_spill] sm:$0xff] %v8911_v18  ;;  %v8917_v25 = vld [vmem:[#allocation3 + $0xa8] sm:$0xff]   ;;  %10153 = vst [vmem:[#allocation123_spill] sm:$0xff] %v8925_v53 }
 0x414   :  { %4337 = vperm.xlu1 %5696, %v3811_v22   ;;  %v8845_v10 = vpop.permute.xlu1 %3977  ;;  %v8877_v22 = vld [vmem:[#allocation3 + $0xa0] sm:$0xff]   ;;  %10152 = vst [vmem:[#allocation136_spill] sm:$0xff] %v8917_v25  ;;  %v8941_v28 = vld [vmem:[#allocation3 + $0xc8] sm:$0xff]   ;;  %10156 = vst [vmem:[#allocation30_spill] sm:$0xff] %v8946_v33 }
 0x415   :  { %10150 = vst [vmem:[#allocation44_spill] sm:$0xff] %v8845_v10  ;;  %10155 = vst [vmem:[#allocation42_spill] sm:$0xff] %v8941_v28  ;;  %v10161_v55 = vld [vmem:[#allocation66_spill] sm:$0xff]  ;;  %v10165_v54 = vld [vmem:[#allocation80_spill] sm:$0xff] }
 0x416   :  { %v8865_v8 = vpop.permute.xlu0 %4082  ;;  %v8969_v51 = vmul.f32 %v10161_v55, %v8678_v19  ;;  %10162 = vst [vmem:[#allocation137_spill] sm:$0xff] %v8973_v62  ;;  %v8986_v19 = vmul.f32 %v10165_v54, %v8671_v16  ;;  %v10166_v55 = vld [vmem:[#allocation81_spill] sm:$0xff]  ;;  %v8993_v29 = vld [vmem:[#allocation3 + $0x120] sm:$0xff]   ;;  %v10170_v39 = vld [vmem:[#allocation90_spill] sm:$0xff] }
 0x417   :  { %4302 = vperm.xlu0 %5697, %v3804_v37   ;;  %v8893_v37 = vld [vmem:[#allocation3 + $0xc0] sm:$0xff]   ;;  %v3833_v43 = vmul.f32 %v10166_v55, %v8642_v35  ;;  %v9002_v33 = vmul.f32 %v10170_v39, %v8714_v21  ;;  %v9006_v54 = vld [vmem:[#allocation3 + $0xe8] sm:$0xff]   ;;  %v10174_v55 = vunpack.c.h.bf16 %v8630_v45  ;;  %v10179_v28 = vld [vmem:[#allocation77_spill] sm:$0xff] }
 0x418   :  { %4232 = vperm.xlu1 %5696, %v3790_v58   ;;  %v8888_v10 = vpop.permute.xlu1 %4012  ;;  %v3818_v58 = vmul.f32 %v8404_v5, %v8667_v30  ;;  %v8920_v5 = vld [vmem:[#allocation3 + $0x70] sm:$0xff]   ;;  %v3819_v30 = vmul.f32 %v8416_v57, %v8663_v2  ;;  %v10159_v2 = vld [vmem:[#allocation76_spill] sm:$0xff]  ;;  %v8981_v57 = vld [vmem:[#allocation3 + $0x78] sm:$0xff]   ;;  %10173 = vst [vmem:[#allocation138_spill] sm:$0xff] %v9006_v54 }
 0x419   :  { %v8960_v32 = vmul.f32 %v10159_v2, %v8772_v4  ;;  %10164 = vst [vmem:[#allocation52_spill] sm:$0xff] %v8981_v57  ;;  %v10168_v2 = vld [vmem:[#allocation67_spill] sm:$0xff]  ;;  %10171 = vst [vmem:[#allocation60_spill] sm:$0xff] %v9002_v33  ;;  %v10181_v35 = vld [vmem:[#allocation25_spill] sm:$0xff] }
 0x41a   :  { %v8906_v17 = vpop.permute.xlu0 %4087  ;;  %v10186_v57 = vld [vmem:[#allocation103_spill] sm:$0xff]  ;;  %v10188_v54 = vld [vmem:[#allocation65_spill] sm:$0xff]  ;;  %v9050_v18 = vld [vmem:[#allocation3 + $0x108] sm:$0xff]  }
 0x41b   :  { %4442 = vperm.xlu0 %5697, %v3832_v48   ;;  %10160 = vst [vmem:[#allocation47_spill] sm:$0xff] %v8960_v32  ;;  %v8998_v32 = vmul.f32 %v10168_v2, %v8777_v63  ;;  %v10177_v63 = vld [vmem:[#allocation21_spill] sm:$0xff]  ;;  %v9047_v25 = vld [vmem:[#allocation3 + $0x140] sm:$0xff]   ;;  %10190 = vst [vmem:[#allocation64_spill] sm:$0xff] %v9050_v18 }
 0x41c   :  { %4372 = vperm.xlu1 %5696, %v3818_v58   ;;  %v8927_v46 = vpop.permute.xlu1 %4017  ;;  %v8962_v58 = vld [vmem:[#allocation3 + $0x100] sm:$0xff]  }
 0x41d   :  { %10154 = vst [vmem:[#allocation35_spill] sm:$0xff] %v8927_v46  ;;  %10169 = vst [vmem:[#allocation159_spill] sm:$0xff] %v8998_v32  ;;  %v10176_v46 = vunpack.c.h.bf16 %v8834_v38  ;;  %v10178_v32 = vld [vmem:[#allocation79_spill] sm:$0xff] }
 0x41e   :  { %v8952_v48 = vpop.permute.xlu0 %4052  ;;  %v9020_v53 = vmul.f32 %v10179_v28, %v10178_v32  ;;  %v10183_v32 = vunpack.c.h.bf16 %v8861_v11  ;;  %v10184_v28 = vld [vmem:[#allocation161_spill] sm:$0xff] }
 0x41f   :  { %10158 = vst [vmem:[#allocation48_spill] sm:$0xff] %v8952_v48  ;;  %4307 = vperm.xlu0 %5697, %v3805_v52   ;;  %v8978_v52 = vld [vmem:[#allocation3 + $0xb0] sm:$0xff]   ;;  %v4497_v2 = vmul.f32 %v10177_v63, %v10176_v46  ;;  %v4857_v63 = vld [vmem:[#allocation8 + $0x8] sm:$0xff] }
 0x420   :  { %4237 = vperm.xlu1 %5696, %v8828_v24   ;;  %v8976_v4 = vpop.permute.xlu1 %3982  ;;  %10163 = vst [vmem:[#allocation126_spill] sm:$0xff] %v8978_v52  ;;  %v4489_v24 = vmul.f32 %v8558_v0, %v10167_v9  ;;  %v10175_v9 = vld [vmem:[#allocation117_spill] sm:$0xff]  ;;  %10180 = vst [vmem:[#allocation75_spill] sm:$0xff] %v9020_v53  ;;  %v4505_v39 = vmul.f32 %v10184_v28, %v10183_v32  ;;  %v9036_v53 = vld [vmem:[#allocation3 + $0x98] sm:$0xff]   ;;  %v10197_v32 = vunpack.c.l.bf16 %v8630_v45  ;;  %v10202_v45 = vunpack.c.h.bf16 %v8877_v22 }
 0x421   :  { %v4481_v34 = vmul.f32 %v10175_v9, %v10174_v55  ;;  %v9029_v9 = vld [vmem:[#allocation3 + $0xd0] sm:$0xff]   ;;  %v10189_v52 = vld [vmem:[#allocation91_spill] sm:$0xff] }
 0x422   :  { %v9004_v16 = vpop.permute.xlu0 %3987  ;;  %v4640_v21 = vsel %vm2502_vm1, %v4489_v24, 0.0  ;;  %v9045_v46 = vmul.f32 %v10189_v52, %v10188_v54  ;;  %v10193_v52 = vunpack.c.h.bf16 %v8871_v60  ;;  %v10194_v24 = vld [vmem:[#allocation38_spill] sm:$0xff] }
 0x423   :  { %10172 = vst [vmem:[#allocation54_spill] sm:$0xff] %v9004_v16  ;;  %4447 = vperm.xlu0 %5697, %v3833_v43   ;;  %v10182_v16 = vld [vmem:[#allocation96_spill] sm:$0xff]  ;;  %v4856_v43 = vld [vmem:[#allocation8] sm:$0xff]  ;;  %v4639_v28 = vsel %vm2502_vm1, %v4481_v34, 0.0  ;;  %v10198_v34 = vld [vmem:[#allocation106_spill] sm:$0xff] }
 0x424   :  { %v9024_v0 = vmul.f32 %v10182_v16, %v10181_v35  ;;  %4377 = vperm.xlu1 %5696, %v3819_v30   ;;  %v9026_v33 = vpop.permute.xlu1 %4122  ;;  %v5669_v16 = vpack.c.bf16 %v4857_v63, %v4856_v43  ;;  %v10185_v35 = vld [vmem:[#allocation85_spill] sm:$0xff]  ;;  %v10191_v43 = vunpack.c.l.bf16 %v8806_v3  ;;  %v4513_v54 = vmul.f32 %v8809_v41, %v10193_v52  ;;  %v10195_v30 = vld [vmem:[#allocation110_spill] sm:$0xff]  ;;  %v4858_v41 = vld [vmem:[#allocation8 + $0x10] sm:$0xff] }
 0x425   :  { %v9041_v55 = vmul.f32 %v10186_v57, %v10185_v35  ;;  %v10192_v63 = vld [vmem:[#allocation33_spill] sm:$0xff]  ;;  %v4642_v35 = vsel %vm2502_vm1, %v4497_v2, 0.0  ;;  %v4480_v18 = vmul.f32 %v10198_v34, %v10197_v32  ;;  %v4641_v3 = vadd.f32 %v4640_v21, %v4639_v28  ;;  %v10204_v32 = vld [vmem:[#allocation111_spill] sm:$0xff] }
 0x426   :  { %v4128_v48 = vpop.permute.xlu0 %4127  ;;  %v4488_v57 = vmul.f32 %v10192_v63, %v10191_v43  ;;  %5670 = vmatprep.subr.bf16.mxu1 %v5669_v16  ;;  %v4859_v63 = vld [vmem:[#allocation8 + $0x18] sm:$0xff]  ;;  %v10201_v52 = vld [vmem:[#allocation37_spill] sm:$0xff]  ;;  %v10205_v34 = vunpack.c.l.bf16 %v8794_v23 }
 0x427   :  { %10187 = vst [vmem:[#allocation19_spill] sm:$0xff] %v9041_v55  ;;  %4342 = vperm.xlu0 %5697, %v8901_v42   ;;  %v9064_v55 = vmul.f32 %v10195_v30, %v10194_v24  ;;  %5672 = vmatpush3.bf16.msra.mxu1 %v5669_v16  ;;  %v10200_v42 = vunpack.c.l.bf16 %v8834_v38  ;;  %v4644_v30 = vsel %vm2502_vm1, %v4505_v39, 0.0  ;;  %v4521_v24 = vmul.f32 %v8825_v13, %v10202_v45  ;;  %v10206_v16 = vld [vmem:[#allocation114_spill] sm:$0xff] }
 0x428   :  { %4272 = vperm.xlu1 %5696, %v8838_v7   ;;  %v9070_v43 = vpop.permute.xlu1 %4057  ;;  %v5673_v21 = vpack.c.bf16 %v4859_v63, %v4858_v41  ;;  %v10203_v7 = vunpack.c.h.bf16 %v8794_v23  ;;  %v4482_v2 = vmul.f32 %v10206_v16, %v10205_v34  ;;  %v3623_v38 = vunpack.c.h.bf16 %v9036_v53 }
 0x429   :  { %10196 = vst [vmem:[#allocation160_spill] sm:$0xff] %v9064_v55  ;;  %10199 = vst [vmem:[#allocation18_spill] sm:$0xff] %v9070_v43  ;;  %v4496_v62 = vmul.f32 %v10201_v52, %v10200_v42  ;;  %v4643_v55 = vadd.f32 %v4642_v35, %v4641_v3  ;;  %v4609_v39 = vsel %vm2502_vm1, %v4488_v57, 0.0  ;;  %v10207_v42 = vunpack.c.l.bf16 %v8861_v11  ;;  %v10208_v52 = vld [vmem:[#allocation61_spill] sm:$0xff]  ;;  %v10211_v3 = vld [vmem:[#allocation118_spill] sm:$0xff] }
 0x42a   :  { %v4483_v28 = vmul.f32 %v10204_v32, %v10203_v7  ;;  %v9086_v43 = vpop.permute.xlu0 %4092  ;;  %v4646_v41 = vsel %vm2502_vm1, %v4513_v54, 0.0  ;;  %v10209_v63 = vunpack.c.h.bf16 %v8893_v37  ;;  %5674 = vmatprep.subr.bf16.mxu1 %v5673_v21  ;;  %v4608_v23 = vsel %vm2502_vm1, %v4480_v18, 0.0 }
 0x42b   :  { %v4504_v13 = vmul.f32 %v10208_v52, %v10207_v42  ;;  %4277 = vperm.xlu0 %5697, %v8858_v14   ;;  %v10210_v35 = vunpack.c.h.bf16 %v8798_v1  ;;  %v4645_v57 = vadd.f32 %v4644_v30, %v4643_v55  ;;  %v3665_v54 = vunpack.c.h.bf16 %v9047_v25  ;;  %5676 = vmatpush3.bf16.msra.mxu1 %v5673_v21  ;;  %v10213_v14 = vld [vmem:[#allocation127_spill] sm:$0xff]  ;;  %v10215_v55 = vld [vmem:[#allocation112_spill] sm:$0xff] }
 0x42c   :  { %v4529_v45 = vmul.f32 %v8906_v17, %v10209_v63  ;;  %4412 = vperm.xlu1 %5696, %v8969_v51   ;;  %v9103_v11 = vpop.permute.xlu1 %4022  ;;  %v4611_v32 = vsel %vm2502_vm1, %v4496_v62, 0.0  ;;  %v10212_v17 = vunpack.c.l.bf16 %v8871_v60  ;;  %v4648_v18 = vsel %vm2502_vm1, %v4521_v24, 0.0  ;;  %v10217_v24 = vld [vmem:[#allocation32_spill] sm:$0xff] }
 0x42d   :  { %v4485_v7 = vmul.f32 %v10211_v3, %v10210_v35  ;;  %v10214_v16 = vunpack.c.h.bf16 %v8930_v27  ;;  %v9115_v30 = vmul.f32 %v10215_v55, %v8792_v44  ;;  %v4701_v51 = vsel %vm2502_vm1, %v4483_v28, 0.0  ;;  %v10225_v55 = vld [vmem:[#allocation24_spill] sm:$0xff] }
 0x42e   :  { %v4512_v34 = vmul.f32 %v10213_v14, %v10212_v17  ;;  %v4610_v52 = vadd.f32 %v4609_v39, %v4608_v23  ;;  %v4647_v63 = vadd.f32 %v4646_v41, %v4645_v57  ;;  %v9118_v21 = vpop.permute.xlu0 %4027  ;;  %v4670_v62 = vsel %vm2502_vm1, %v4482_v2, 0.0  ;;  %v10219_v39 = vld [vmem:[#allocation121_spill] sm:$0xff] }
 0x42f   :  { %v4537_v42 = vmul.f32 %v4128_v48, %v10214_v16  ;;  %v4613_v60 = vsel %vm2502_vm1, %v4504_v13, 0.0  ;;  %v10216_v35 = vunpack.c.l.bf16 %v8877_v22  ;;  %v4650_v48 = vsel %vm2502_vm1, %v4529_v45, 0.0  ;;  %4417 = vperm.xlu0 %5697, %v8986_v19   ;;  %v10220_v13 = vld [vmem:[#allocation50_spill] sm:$0xff]  ;;  %v10222_v22 = vld [vmem:[#allocation119_spill] sm:$0xff] }
 0x430   :  { %v4763_v44 = vsel %vm2502_vm1, %v4485_v7, 0.0  ;;  %v10218_v28 = vunpack.c.l.bf16 %v8798_v1  ;;  %v4612_v23 = vadd.f32 %v4611_v32, %v4610_v52  ;;  %v4649_v57 = vadd.f32 %v4648_v18, %v4647_v63  ;;  %4347 = vperm.xlu1 %5696, %v8915_v61   ;;  %v4163_v2 = vpop.permute.xlu1 %4162  ;;  %v10227_v61 = vld [vmem:[#allocation40_spill] sm:$0xff] }
 0x431   :  { %v4520_v3 = vmul.f32 %v10217_v24, %v10216_v35  ;;  %v10221_v17 = vunpack.c.h.bf16 %v10220_v13  ;;  %v4615_v16 = vsel %vm2502_vm1, %v4512_v34, 0.0  ;;  %v10223_v45 = vunpack.c.l.bf16 %v8893_v37  ;;  %v10229_v34 = vld [vmem:[#allocation122_spill] sm:$0xff] }
 0x432   :  { %v4484_v41 = vmul.f32 %v10219_v39, %v10218_v28  ;;  %v4652_v7 = vsel %vm2502_vm1, %v4537_v42, 0.0  ;;  %v10224_v1 = vunpack.c.h.bf16 %v8814_v6  ;;  %v10226_v18 = vunpack.c.l.bf16 %v8814_v6  ;;  %v4168_v24 = vpop.permute.xlu0 %4167 }
 0x433   :  { %v4487_v14 = vmul.f32 %v10222_v22, %v10221_v17  ;;  %v4528_v19 = vmul.f32 %v8865_v8, %v10223_v45  ;;  %v4614_v63 = vadd.f32 %v4613_v60, %v4612_v23  ;;  %v4651_v35 = vadd.f32 %v4650_v48, %v4649_v57  ;;  %4382 = vperm.xlu0 %5697, %v8936_v56   ;;  %v10233_v48 = vld [vmem:[#allocation120_spill] sm:$0xff] }
 0x434   :  { %v4491_v32 = vmul.f32 %v10225_v55, %v10224_v1  ;;  %v4490_v52 = vmul.f32 %v10227_v61, %v10226_v18  ;;  %v10228_v28 = vunpack.c.h.bf16 %v8821_v26  ;;  %v4617_v37 = vsel %vm2502_vm1, %v4520_v3, 0.0  ;;  %4312 = vperm.xlu1 %5696, %v8869_v49   ;;  %v9161_v3 = vpop.permute.xlu1 %4097 }
 0x435   :  { %v10230_v8 = vunpack.c.l.bf16 %v8930_v27  ;;  %v10231_v17 = vunpack.c.h.bf16 %v8962_v58  ;;  %v4732_v6 = vsel %vm2502_vm1, %v4484_v41, 0.0  ;;  %v10232_v60 = vunpack.c.l.bf16 %v10220_v13 }
 0x436   :  { %v4493_v39 = vmul.f32 %v10229_v34, %v10228_v28  ;;  %v4616_v57 = vadd.f32 %v4615_v16, %v4614_v63  ;;  %v4653_v45 = vadd.f32 %v4652_v7, %v4651_v35  ;;  %v10234_v27 = vunpack.c.l.bf16 %v8821_v26  ;;  %v4063_v49 = vpop.permute.xlu0 %4062 }
 0x437   :  { %v4536_v42 = vmul.f32 %v9026_v33, %v10230_v8  ;;  %v4545_v22 = vmul.f32 %v4168_v24, %v10231_v17  ;;  %v4486_v23 = vmul.f32 %v10233_v48, %v10232_v60  ;;  %v10235_v33 = vld [vmem:[#allocation107_spill] sm:$0xff]  ;;  %v4619_v55 = vsel %vm2502_vm1, %v4528_v19, 0.0  ;;  %4317 = vperm.xlu0 %5697, %v8884_v20   ;;  %v10244_v20 = vld [vmem:[#allocation78_spill] sm:$0xff] }
 0x438   :  { %v4492_v1 = vmul.f32 %v10235_v33, %v10234_v27  ;;  %v10236_v56 = vunpack.c.l.bf16 %v8962_v58  ;;  %v4825_v13 = vsel %vm2502_vm1, %v4487_v14, 0.0  ;;  %v4702_v16 = vsel %vm2502_vm1, %v4491_v32, 0.0  ;;  %v10238_v19 = vld [vmem:[#allocation43_spill] sm:$0xff]  ;;  %4452 = vperm.xlu1 %5696, %v9024_v0  }
 0x439   :  { %v4654_v41 = vsel %vm2502_vm1, %v4545_v22, 0.0  ;;  %v4618_v7 = vadd.f32 %v4617_v37, %v4616_v57  ;;  %v4671_v63 = vsel %vm2502_vm1, %v4490_v52, 0.0  ;;  %v4764_v26 = vsel %vm2502_vm1, %v4493_v39, 0.0  ;;  %v10240_v32 = vld [vmem:[#allocation23_spill] sm:$0xff]  ;;  %v10242_v37 = vld [vmem:[#allocation29_spill] sm:$0xff]  ;;  %v3993_v39 = vpop.permute.xlu1 %3992 }
 0x43a   :  { %v4544_v18 = vmul.f32 %v4163_v2, %v10236_v56  ;;  %v9172_v61 = vadd.f32 %v4654_v41, %v4653_v45  ;;  %v10237_v35 = vunpack.c.h.bf16 %v8830_v40  ;;  %v4621_v58 = vsel %vm2502_vm1, %v4536_v42, 0.0  ;;  %v10246_v45 = vld [vmem:[#allocation28_spill] sm:$0xff]  ;;  %v10248_v56 = vld [vmem:[#allocation125_spill] sm:$0xff] }
 0x43b   :  { %v4794_v2 = vsel %vm2502_vm1, %v4486_v23, 0.0  ;;  %v10239_v14 = vunpack.c.l.bf16 %v8830_v40  ;;  %v10241_v34 = vunpack.c.h.bf16 %v8841_v50  ;;  %v4620_v8 = vadd.f32 %v4619_v55, %v4618_v7  ;;  %v4203_v55 = vpop.permute.xlu0 %4202  ;;  %v10250_v41 = vld [vmem:[#allocation53_spill] sm:$0xff]  ;;  %4457 = vperm.xlu0 %5697, %v9045_v46  }
 0x43c   :  { %v4495_v24 = vmul.f32 %v10238_v19, %v10237_v35  ;;  %v4703_v17 = vadd.f32 %v4702_v16, %v4701_v51  ;;  %v4733_v22 = vsel %vm2502_vm1, %v4492_v1, 0.0  ;;  %v10243_v42 = vunpack.c.l.bf16 %v8841_v50  ;;  %4387 = vperm.xlu1 %5696, %v8950_v36   ;;  %v10256_v36 = vld [vmem:[#allocation34_spill] sm:$0xff] }
 0x43d   :  { %v4494_v28 = vmul.f32 %v10240_v32, %v10239_v14  ;;  %v4499_v52 = vmul.f32 %v10242_v37, %v10241_v34  ;;  %v4623_v48 = vsel %vm2502_vm1, %v4544_v18, 0.0  ;;  %v4672_v40 = vadd.f32 %v4671_v63, %v4670_v62 }
 0x43e   :  { %v4498_v60 = vmul.f32 %v10244_v20, %v10243_v42  ;;  %v4765_v23 = vadd.f32 %v4764_v26, %v4763_v44  ;;  %v10245_v57 = vunpack.c.h.bf16 %v8849_v15  ;;  %v4622_v33 = vadd.f32 %v4621_v58, %v4620_v8 }
 0x43f   :  { %v4826_v0 = vsel %vm2502_vm1, %v4495_v24, 0.0  ;;  %v10247_v51 = vunpack.c.l.bf16 %v8849_v15  ;;  %v10249_v50 = vunpack.c.l.bf16 %v8853_v47  ;;  %v10251_v18 = vunpack.c.l.bf16 %v8993_v29  ;;  %v4133_v15 = vpop.permute.xlu1 %4132  ;;  %v10253_v24 = vld [vmem:[#allocation135_spill] sm:$0xff]  ;;  %v4068_v8 = vpop.permute.xlu0 %4067 }
 0x440   :  { %v4501_v27 = vmul.f32 %v10246_v45, %v10245_v57  ;;  %v4734_v44 = vadd.f32 %v4733_v22, %v4732_v6  ;;  %v4795_v7 = vsel %vm2502_vm1, %v4494_v28, 0.0  ;;  %v4704_v63 = vsel %vm2502_vm1, %v4499_v52, 0.0 }
 0x441   :  { %v4500_v1 = vmul.f32 %v10248_v56, %v10247_v51  ;;  %v4502_v16 = vmul.f32 %v10250_v41, %v10249_v50  ;;  %v4552_v62 = vmul.f32 %v4203_v55, %v10251_v18  ;;  %v4624_v26 = vadd.f32 %v4623_v48, %v4622_v33  ;;  %v10259_v48 = vld [vmem:[#allocation137_spill] sm:$0xff]  ;;  %v10261_v33 = vld [vmem:[#allocation44_spill] sm:$0xff] }
 0x442   :  { %v4673_v35 = vsel %vm2502_vm1, %v4498_v60, 0.0  ;;  %v10252_v19 = vunpack.c.l.bf16 %v8874_v12  ;;  %v10254_v14 = vunpack.c.l.bf16 %v8920_v5  ;;  %v9218_v6 = vadd.f32 %v4826_v0, %v4825_v13  ;;  %4422 = vperm.xlu0 %5697, %v10259_v48   ;;  %v10262_v0 = vld [vmem:[#allocation31_spill] sm:$0xff]  ;;  %v10265_v50 = vld [vmem:[#allocation48_spill] sm:$0xff] }
 0x443   :  { %v4625_v46 = vsel %vm2502_vm1, %v4552_v62, 0.0  ;;  %v4766_v28 = vsel %vm2502_vm1, %v4501_v27, 0.0  ;;  %v10255_v34 = vunpack.c.h.bf16 %v8853_v47  ;;  %v4735_v22 = vsel %vm2502_vm1, %v4500_v1, 0.0  ;;  %4352 = vperm.xlu1 %5696, %v10262_v0   ;;  %v3998_v51 = vpop.permute.xlu1 %3997  ;;  %v10263_v1 = vld [vmem:[#allocation136_spill] sm:$0xff] }
 0x444   :  { %v4506_v58 = vmul.f32 %v10253_v24, %v10252_v19  ;;  %v4508_v32 = vmul.f32 %v8976_v4, %v10254_v14  ;;  %v9224_v52 = vadd.f32 %v4625_v46, %v4624_v26  ;;  %v4797_v42 = vsel %vm2502_vm1, %v4502_v16, 0.0  ;;  %v10266_v16 = vld [vmem:[#allocation126_spill] sm:$0xff] }
 0x445   :  { %v4503_v37 = vmul.f32 %v10256_v36, %v10255_v34  ;;  %v10257_v20 = vunpack.c.l.bf16 %v8896_v59  ;;  %v10258_v13 = vunpack.c.l.bf16 %v8954_v31  ;;  %v4796_v47 = vadd.f32 %v4795_v7, %v4794_v2  ;;  %v4208_v7 = vpop.permute.xlu0 %4207  ;;  %v10274_v36 = vld [vmem:[#allocation123_spill] sm:$0xff] }
 0x446   :  { %v4705_v57 = vadd.f32 %v4704_v63, %v4703_v17  ;;  %v4674_v45 = vadd.f32 %v4673_v35, %v4672_v40  ;;  %v10260_v27 = vunpack.c.h.bf16 %v8874_v12  ;;  %v4675_v56 = vsel %vm2502_vm1, %v4506_v58, 0.0  ;;  %v10268_v35 = vld [vmem:[#allocation52_spill] sm:$0xff] }
 0x447   :  { %v4514_v4 = vmul.f32 %v8888_v10, %v10257_v20  ;;  %v4516_v60 = vmul.f32 %v9103_v11, %v10258_v13  ;;  %v10264_v10 = vunpack.c.l.bf16 %v10263_v1  ;;  %v4737_v11 = vsel %vm2502_vm1, %v4508_v32, 0.0  ;;  %v10271_v32 = vld [vmem:[#allocation60_spill] sm:$0xff]  ;;  %4357 = vperm.xlu1 %5696, %v10274_v36  }
 0x448   :  { %v4507_v55 = vmul.f32 %v10261_v33, %v10260_v27  ;;  %v10267_v18 = vunpack.c.l.bf16 %v10266_v16  ;;  %v4767_v17 = vadd.f32 %v4766_v28, %v4765_v23  ;;  %v4736_v40 = vadd.f32 %v4735_v22, %v4734_v44  ;;  %4427 = vperm.xlu0 %5697, %v10271_v32   ;;  %v10273_v28 = vld [vmem:[#allocation54_spill] sm:$0xff]  ;;  %v10291_v36 = vld [vmem:[#allocation160_spill] sm:$0xff] }
 0x449   :  { %v4522_v41 = vmul.f32 %v10265_v50, %v10264_v10  ;;  %v9247_v12 = vsel %vm2502_vm1, %v4503_v37, 0.0  ;;  %v4798_v62 = vadd.f32 %v4797_v42, %v4796_v47  ;;  %v4677_v63 = vsel %vm2502_vm1, %v4514_v4, 0.0  ;;  %v4138_v37 = vpop.permute.xlu1 %4137  ;;  %v10275_v42 = vld [vmem:[#allocation42_spill] sm:$0xff]  ;;  %v10281_v50 = vld [vmem:[#allocation19_spill] sm:$0xff] }
 0x44a   :  { %v4524_v2 = vmul.f32 %v4063_v49, %v10267_v18  ;;  %v4739_v26 = vsel %vm2502_vm1, %v4516_v60, 0.0  ;;  %v10269_v19 = vunpack.c.l.bf16 %v10268_v35  ;;  %v10270_v58 = vunpack.c.h.bf16 %v8993_v29 }
 0x44b   :  { %v4676_v49 = vadd.f32 %v4675_v56, %v4674_v45  ;;  %v4706_v23 = vsel %vm2502_vm1, %v4507_v55, 0.0  ;;  %v4738_v44 = vadd.f32 %v4737_v11, %v4736_v40  ;;  %v10272_v46 = vunpack.c.h.bf16 %v8920_v5  ;;  %v4103_v45 = vpop.permute.xlu0 %4102  ;;  %v10278_v55 = vld [vmem:[#allocation138_spill] sm:$0xff] }
 0x44c   :  { %v4510_v24 = vmul.f32 %v3993_v39, %v10269_v19  ;;  %v4553_v14 = vmul.f32 %v4208_v7, %v10270_v58  ;;  %v4679_v22 = vsel %vm2502_vm1, %v4522_v41, 0.0  ;;  %v10276_v39 = vunpack.c.l.bf16 %v10275_v42  ;;  %4462 = vperm.xlu0 %5697, %v10281_v50  }
 0x44d   :  { %v4509_v34 = vmul.f32 %v10273_v28, %v10272_v46  ;;  %v4741_v20 = vsel %vm2502_vm1, %v4524_v2, 0.0  ;;  %v4678_v13 = vadd.f32 %v4677_v63, %v4676_v49  ;;  %v4740_v60 = vadd.f32 %v4739_v26, %v4738_v44  ;;  %v10284_v2 = vld [vmem:[#allocation30_spill] sm:$0xff] }
 0x44e   :  { %v4530_v29 = vmul.f32 %v9086_v43, %v10276_v39  ;;  %v4656_v4 = vsel %vm2502_vm1, %v4553_v14, 0.0  ;;  %v10277_v48 = vunpack.c.h.bf16 %v8954_v31  ;;  %v4707_v27 = vadd.f32 %v4706_v23, %v4705_v57  ;;  %v10283_v31 = vld [vmem:[#allocation35_spill] sm:$0xff]  ;;  %4392 = vperm.xlu1 %5696, %v10284_v2   ;;  %v4033_v57 = vpop.permute.xlu1 %4032 }
 0x44f   :  { %v9271_v47 = vadd.f32 %v4656_v4, %v9172_v61  ;;  %v4799_v33 = vsel %vm2502_vm1, %v4510_v24, 0.0  ;;  %v10279_v0 = vunpack.c.l.bf16 %v10278_v55  ;;  %v10280_v56 = vunpack.c.l.bf16 %v9029_v9  ;;  %v10288_v24 = vld [vmem:[#allocation18_spill] sm:$0xff]  ;;  %v4243_v23 = vpop.permute.xlu0 %4242 }
 0x450   :  { %v4517_v5 = vmul.f32 %v9118_v21, %v10277_v48  ;;  %v10282_v41 = vunpack.c.h.bf16 %v8896_v59  ;;  %v4680_v21 = vadd.f32 %v4679_v22, %v4678_v13  ;;  %v4768_v61 = vsel %vm2502_vm1, %v4509_v34, 0.0  ;;  %4467 = vperm.xlu0 %5697, %v10291_v36  }
 0x451   :  { %v4538_v43 = vmul.f32 %v4133_v15, %v10279_v0  ;;  %v4532_v10 = vmul.f32 %v4103_v45, %v10280_v56  ;;  %v4742_v18 = vadd.f32 %v4741_v20, %v4740_v60  ;;  %v4681_v40 = vsel %vm2502_vm1, %v4530_v29, 0.0  ;;  %v10292_v29 = vld [vmem:[#allocation47_spill] sm:$0xff]  ;;  %v10294_v60 = vld [vmem:[#allocation64_spill] sm:$0xff] }
 0x452   :  { %v4515_v11 = vmul.f32 %v10283_v31, %v10282_v41  ;;  %v10285_v15 = vunpack.c.h.bf16 %v10266_v16  ;;  %v10286_v26 = vunpack.c.l.bf16 %v9036_v53  ;;  %v10287_v59 = vunpack.c.h.bf16 %v10263_v1  ;;  %4397 = vperm.xlu1 %5696, %v10292_v29   ;;  %v4173_v20 = vpop.permute.xlu1 %4172  ;;  %v10298_v31 = vld [vmem:[#allocation75_spill] sm:$0xff]  ;;  %v6377_v53 = vld [vmem:[#allocation3 + $0xf0] sm:$0xff]  }
 0x453   :  { %v4743_v63 = vsel %vm2502_vm1, %v4532_v10, 0.0  ;;  %v4770_v14 = vsel %vm2502_vm1, %v4517_v5, 0.0  ;;  %v4800_v32 = vadd.f32 %v4799_v33, %v4798_v62  ;;  %v4683_v44 = vsel %vm2502_vm1, %v4538_v43, 0.0  ;;  %v4108_v43 = vpop.permute.xlu0 %4107 }
 0x454   :  { %v4525_v7 = vmul.f32 %v4068_v8, %v10285_v15  ;;  %v4518_v19 = vmul.f32 %v4033_v57, %v10286_v26  ;;  %v4523_v58 = vmul.f32 %v10288_v24, %v10287_v59  ;;  %v9294_v49 = vadd.f32 %v4743_v63, %v4742_v18  ;;  %4437 = vperm.xlu0 %5697, %v10298_v31   ;;  %v10299_v18 = vld [vmem:[#allocation159_spill] sm:$0xff]  ;;  %v10301_v15 = vld [vmem:[#allocation97_spill] sm:$0xff] }
 0x455   :  { %v10289_v16 = vunpack.c.h.bf16 %v10268_v35  ;;  %v10290_v28 = vunpack.c.l.bf16 %v9047_v25  ;;  %v4708_v1 = vsel %vm2502_vm1, %v4515_v11, 0.0  ;;  %v4769_v22 = vadd.f32 %v4768_v61, %v4767_v17 }
 0x456   :  { %v4801_v46 = vsel %vm2502_vm1, %v4518_v19, 0.0  ;;  %v4682_v39 = vadd.f32 %v4681_v40, %v4680_v21  ;;  %v10293_v4 = vunpack.c.h.bf16 %v10275_v42  ;;  %v10295_v48 = vunpack.c.l.bf16 %v10294_v60  ;;  %4432 = vperm.xlu1 %5696, %v10299_v18   ;;  %v4038_v2 = vpop.permute.xlu1 %4037  ;;  %v10300_v40 = vld [vmem:[#allocation101_spill] sm:$0xff] }
 0x457   :  { %v4511_v8 = vmul.f32 %v3998_v51, %v10289_v16  ;;  %v4560_v34 = vmul.f32 %v4243_v23, %v10290_v28  ;;  %v4802_v62 = vadd.f32 %v4801_v46, %v4800_v32  ;;  %v4772_v51 = vsel %vm2502_vm1, %v4525_v7, 0.0 }
 0x458   :  { %v4531_v35 = vmul.f32 %v9161_v3, %v10293_v4  ;;  %v4546_v5 = vmul.f32 %v4173_v20, %v10295_v48  ;;  %v4710_v45 = vsel %vm2502_vm1, %v4523_v58, 0.0  ;;  %v4771_v33 = vadd.f32 %v4770_v14, %v4769_v22  ;;  %4477 = vperm.xlu0 %5697, %v9115_v30   ;;  %v6379_v22 = vld [vmem:[#allocation3 + $0x128] sm:$0xff]  }
 0x459   :  { %v4627_v13 = vsel %vm2502_vm1, %v4560_v34, 0.0  ;;  %v4684_v17 = vadd.f32 %v4683_v44, %v4682_v39  ;;  %v4830_v56 = vsel %vm2502_vm1, %v4511_v8, 0.0  ;;  %v10296_v42 = vunpack.c.h.bf16 %v10278_v55  ;;  %v6378_v44 = vld [vmem:[#allocation3 + $0xb8] sm:$0xff]  }
 0x45a   :  { %v9314_v0 = vadd.f32 %v4627_v13, %v9224_v52  ;;  %v4685_v10 = vsel %vm2502_vm1, %v4546_v5, 0.0  ;;  %v10297_v50 = vunpack.c.h.bf16 %v9029_v9  ;;  %v4829_v11 = vadd.f32 %v9247_v12, %v9218_v6  ;;  %v4178_v14 = vpop.permute.xlu1 %4177 }
 0x45b   :  { %v4539_v3 = vmul.f32 %v4138_v37, %v10296_v42  ;;  %v4709_v21 = vadd.f32 %v4708_v1, %v4707_v27  ;;  %v4773_v61 = vadd.f32 %v4772_v51, %v4771_v33  ;;  %v4686_v52 = vadd.f32 %v4685_v10, %v4684_v17  ;;  %v4248_v27 = vpop.permute.xlu0 %4247 }
 0x45c   :  { %v4533_v41 = vmul.f32 %v4108_v43, %v10297_v50  ;;  %v4712_v57 = vsel %vm2502_vm1, %v4531_v35, 0.0  ;;  %v4519_v55 = vmul.f32 %v4038_v2, %v3623_v38  ;;  %v3651_v9 = vunpack.c.h.bf16 %v10294_v60  ;;  %v6380_v50 = vld [vmem:[#allocation3 + $0x110] sm:$0xff]  }
 0x45d   :  { %v3838_v7 = vmul.f32 %v10301_v15, %v10300_v40  ;;  %v4711_v63 = vadd.f32 %v4710_v45, %v4709_v21  ;;  %v4831_v6 = vadd.f32 %v4830_v56, %v4829_v11  ;;  %v4714_v26 = vsel %vm2502_vm1, %v4539_v3, 0.0  ;;  %v6381_v21 = vld [vmem:[#allocation3 + $0xd8] sm:$0xff]   ;;  %v9357_v40 = vld [vmem:[#allocation3 + $0x148] sm:$0xff]  }
 0x45e   :  { %v4774_v37 = vsel %vm2502_vm1, %v4533_v41, 0.0  ;;  %v4832_v19 = vsel %vm2502_vm1, %v4519_v55, 0.0  ;;  %v4561_v59 = vmul.f32 %v4248_v27, %v3665_v54  ;;  %v3644_v38 = vunpack.c.l.bf16 %v6377_v53  ;;  %v4073_v34 = vpop.permute.xlu1 %4072 }
 0x45f   :  { %v4775_v12 = vadd.f32 %v4774_v37, %v4773_v61  ;;  %v4713_v24 = vadd.f32 %v4712_v57, %v4711_v63  ;;  %v4833_v58 = vadd.f32 %v4832_v19, %v4831_v6  ;;  %4472 = vperm.xlu1 %5696, %v3838_v7   ;;  %v4547_v23 = vmul.f32 %v4178_v14, %v3651_v9  ;;  %v4143_v28 = vpop.permute.xlu0 %4142 }
 0x460   :  { %v4658_v32 = vsel %vm2502_vm1, %v4561_v59, 0.0  ;;  %v3630_v16 = vunpack.c.l.bf16 %v6378_v44  ;;  %v4540_v54 = vmul.f32 %v4143_v28, %v3644_v38  ;;  %v3658_v39 = vunpack.c.l.bf16 %v6379_v22  ;;  %v6383_v28 = vld [vmem:[#allocation3 + $0x130] sm:$0xff]  }
 0x461   :  { %v4715_v8 = vadd.f32 %v4714_v26, %v4713_v24  ;;  %v9340_v46 = vadd.f32 %v4658_v32, %v9271_v47  ;;  %v4716_v25 = vsel %vm2502_vm1, %v4547_v23, 0.0  ;;  %v3645_v35 = vunpack.c.h.bf16 %v6377_v53 }
 0x462   :  { %v4745_v36 = vsel %vm2502_vm1, %v4540_v54, 0.0  ;;  %v4526_v1 = vmul.f32 %v4073_v34, %v3630_v16  ;;  %v4213_v51 = vpop.permute.xlu1 %4212  ;;  %v3631_v60 = vunpack.c.h.bf16 %v6378_v44  ;;  %v3659_v42 = vunpack.c.h.bf16 %v6379_v22  ;;  %v6384_v34 = vld [vmem:[#allocation3 + $0xf8] sm:$0xff]  }
 0x463   :  { %v4717_v30 = vadd.f32 %v4716_v25, %v4715_v8  ;;  %v4746_v29 = vadd.f32 %v4745_v36, %v9294_v49  ;;  %v9345_v20 = vpop.permute.xlu0 %4282  ;;  %v4554_v13 = vmul.f32 %v4213_v51, %v3658_v39  ;;  %v3638_v61 = vunpack.c.l.bf16 %v6381_v21 }
 0x464   :  { %v4803_v4 = vsel %vm2502_vm1, %v4526_v1, 0.0  ;;  %v3666_v15 = vunpack.c.l.bf16 %v9357_v40  ;;  %v3639_v59 = vunpack.c.h.bf16 %v6381_v21  ;;  %v3660_v25 = vunpack.c.l.bf16 %v6383_v28  ;;  %v6385_v21 = vld [vmem:[#allocation3 + $0x160] sm:$0xff]  }
 0x465   :  { %v4804_v47 = vadd.f32 %v4803_v4, %v4802_v62  ;;  %v4687_v5 = vsel %vm2502_vm1, %v4554_v13, 0.0  ;;  %v3652_v62 = vunpack.c.l.bf16 %v6380_v50  ;;  %v3646_v36 = vunpack.c.l.bf16 %v6384_v34 }
 0x466   :  { %v4688_v33 = vadd.f32 %v4687_v5, %v4686_v52  ;;  %v4078_v17 = vpop.permute.xlu1 %4077  ;;  %v3661_v13 = vunpack.c.h.bf16 %v6383_v28  ;;  %v3647_v5 = vunpack.c.h.bf16 %v6384_v34  ;;  %v6389_v28 = vld [vmem:[#allocation3 + $0x1e0] sm:$0xff]  }
 0x467   :  { %v4148_v48 = vpop.permute.xlu0 %4147  ;;  %v4527_v56 = vmul.f32 %v4078_v17, %v3631_v60 }
 0x468   :  { %v4541_v45 = vmul.f32 %v4148_v48, %v3645_v35 }
 0x469   :  { %v4834_v10 = vsel %vm2502_vm1, %v4527_v56, 0.0 }
 0x46a   :  { %v4776_v43 = vsel %vm2502_vm1, %v4541_v45, 0.0  ;;  %v4835_v41 = vadd.f32 %v4834_v10, %v4833_v58  ;;  %v4218_v31 = vpop.permute.xlu1 %4217 }
 0x46b   :  { %v4777_v49 = vadd.f32 %v4776_v43, %v4775_v12  ;;  %v9350_v3 = vpop.permute.xlu0 %4287  ;;  %v4555_v11 = vmul.f32 %v4218_v31, %v3659_v42  ;;  %v3653_v12 = vunpack.c.h.bf16 %v6380_v50 }
 0x46d   :  { %v4718_v52 = vsel %vm2502_vm1, %v4555_v11, 0.0 }
 0x46e   :  { %v9354_v57 = vadd.f32 %v4718_v52, %v4717_v30  ;;  %v4113_v37 = vpop.permute.xlu1 %4112  ;;  %v6386_v52 = vld [vmem:[#allocation3 + $0x180] sm:$0xff]  }
 0x46f   :  { %v4183_v18 = vpop.permute.xlu0 %4182  ;;  %v4534_v9 = vmul.f32 %v4113_v37, %v3638_v61  ;;  %v3672_v61 = vunpack.c.l.bf16 %v6385_v21 }
 0x470   :  { %v4548_v2 = vmul.f32 %v4183_v18, %v3652_v62 }
 0x471   :  { %v4805_v6 = vsel %vm2502_vm1, %v4534_v9, 0.0  ;;  %v6387_v9 = vld [vmem:[#allocation3 + $0x1a0] sm:$0xff]  }
 0x472   :  { %v4747_v55 = vsel %vm2502_vm1, %v4548_v2, 0.0  ;;  %v4806_v27 = vadd.f32 %v4805_v6, %v4804_v47  ;;  %v4253_v26 = vpop.permute.xlu1 %4252  ;;  %v3680_v2 = vunpack.c.l.bf16 %v6386_v52 }
 0x473   :  { %v4748_v7 = vadd.f32 %v4747_v55, %v4746_v29  ;;  %v4323_v63 = vpop.permute.xlu0 %4322  ;;  %v4562_v19 = vmul.f32 %v4253_v26, %v3666_v15  ;;  %v4568_v55 = vmul.f32 %v9345_v20, %v3672_v61  ;;  %v3688_v15 = vunpack.c.l.bf16 %v6387_v9 }
 0x474   :  { %v4576_v6 = vmul.f32 %v4323_v63, %v3680_v2 }
 0x475   :  { %v4689_v38 = vsel %vm2502_vm1, %v4562_v19, 0.0  ;;  %v4629_v19 = vsel %vm2502_vm1, %v4568_v55, 0.0 }
 0x476   :  { %v9362_v58 = vadd.f32 %v4689_v38, %v4688_v33  ;;  %v4118_v14 = vpop.permute.xlu1 %4117  ;;  %v4630_v20 = vadd.f32 %v4629_v19, %v9314_v0 }
 0x477   :  { %v4188_v53 = vpop.permute.xlu0 %4187  ;;  %v4535_v23 = vmul.f32 %v4118_v14, %v3639_v59  ;;  %v3673_v59 = vunpack.c.h.bf16 %v6385_v21  ;;  %v3681_v14 = vunpack.c.h.bf16 %v6386_v52 }
 0x478   :  { %v4549_v24 = vmul.f32 %v4188_v53, %v3653_v12  ;;  %v6388_v12 = vld [vmem:[#allocation3 + $0x1c0] sm:$0xff]  }
 0x479   :  { %v4836_v8 = vsel %vm2502_vm1, %v4535_v23, 0.0 }
 0x47a   :  { %v4778_v32 = vsel %vm2502_vm1, %v4549_v24, 0.0  ;;  %v4837_v54 = vadd.f32 %v4836_v8, %v4835_v41  ;;  %v9368_v30 = vpop.permute.xlu1 %4257  ;;  %v4631_v24 = vsel %vm2502_vm1, %v4576_v6, 0.0  ;;  %v3689_v8 = vunpack.c.h.bf16 %v6387_v9 }
 0x47b   :  { %v4779_v44 = vadd.f32 %v4778_v32, %v4777_v49  ;;  %v9365_v16 = vpop.permute.xlu0 %4327 }
 0x47e   :  { %v4153_v39 = vpop.permute.xlu1 %4152 }
 0x47f   :  { %v4223_v1 = vpop.permute.xlu0 %4222  ;;  %v4542_v4 = vmul.f32 %v4153_v39, %v3646_v36  ;;  %v4577_v36 = vmul.f32 %v9365_v16, %v3681_v14 }
 0x480   :  { %v4556_v22 = vmul.f32 %v4223_v1, %v3660_v25  ;;  %v3704_v25 = vunpack.c.l.bf16 %v6389_v28 }
 0x481   :  { %v4807_v51 = vsel %vm2502_vm1, %v4542_v4, 0.0 }
 0x482   :  { %v4749_v29 = vsel %vm2502_vm1, %v4556_v22, 0.0  ;;  %v9374_v60 = vadd.f32 %v4807_v51, %v4806_v27  ;;  %v9376_v48 = vpop.permute.xlu1 %4292  ;;  %v3696_v27 = vunpack.c.l.bf16 %v6388_v12  ;;  %v3697_v22 = vunpack.c.h.bf16 %v6388_v12 }
 0x483   :  { %v9371_v35 = vadd.f32 %v4749_v29, %v4748_v7  ;;  %v4363_v47 = vpop.permute.xlu0 %4362  ;;  %v3667_v12 = vunpack.c.h.bf16 %v9357_v40 }
 0x484   :  { %v4584_v53 = vmul.f32 %v4363_v47, %v3688_v15 }
 0x486   :  { %v4158_v17 = vpop.permute.xlu1 %4157  ;;  %v4633_v63 = vsel %vm2502_vm1, %v4584_v53, 0.0  ;;  %v6391_v53 = vld [vmem:[#allocation3 + $0x188] sm:$0xff]  }
 0x487   :  { %v4228_v45 = vpop.permute.xlu0 %4227  ;;  %v4543_v56 = vmul.f32 %v4158_v17, %v3647_v5 }
 0x488   :  { %v4557_v33 = vmul.f32 %v4228_v45, %v3661_v13  ;;  %v4662_v13 = vsel %vm2502_vm1, %v4577_v36, 0.0  ;;  %v6393_v36 = vld [vmem:[#allocation3 + $0x1c8] sm:$0xff]  }
 0x489   :  { %v4838_v10 = vsel %vm2502_vm1, %v4543_v56, 0.0  ;;  %v3705_v56 = vunpack.c.h.bf16 %v6389_v28 }
 0x48a   :  { %v4780_v43 = vsel %vm2502_vm1, %v4557_v33, 0.0  ;;  %v9382_v50 = vadd.f32 %v4838_v10, %v4837_v54  ;;  %v9384_v62 = vpop.permute.xlu1 %4297  ;;  %v4632_v54 = vadd.f32 %v4631_v24, %v4630_v20  ;;  %v3682_v24 = vunpack.c.l.bf16 %v6391_v53 }
 0x48b   :  { %v9379_v42 = vadd.f32 %v4780_v43, %v4779_v44  ;;  %v4368_v49 = vpop.permute.xlu0 %4367  ;;  %v4569_v44 = vmul.f32 %v9350_v3, %v3673_v59 }
 0x48c   :  { %v4634_v39 = vadd.f32 %v4633_v63, %v4632_v54  ;;  %v4585_v4 = vmul.f32 %v4368_v49, %v3689_v8  ;;  %v6392_v63 = vld [vmem:[#allocation3 + $0x1a8] sm:$0xff]  }
 0x48d   :  { %v4660_v0 = vsel %vm2502_vm1, %v4569_v44, 0.0  ;;  %v3683_v44 = vunpack.c.h.bf16 %v6391_v53  ;;  %v3690_v8 = vunpack.c.l.bf16 %v6392_v63  ;;  %v3691_v54 = vunpack.c.h.bf16 %v6392_v63 }
 0x48e   :  { %v9388_v31 = vpop.permute.xlu1 %4192  ;;  %v4661_v33 = vadd.f32 %v4660_v0, %v9340_v46  ;;  %v4664_v43 = vsel %vm2502_vm1, %v4585_v4, 0.0 }
 0x48f   :  { %v9386_v41 = vpop.permute.xlu0 %4262 }
 0x490   :  { %v4663_v10 = vadd.f32 %v4662_v13, %v4661_v33 }
 0x492   :  { %v9390_v18 = vpop.permute.xlu1 %4332  ;;  %v4665_v21 = vadd.f32 %v4664_v43, %v4663_v10 }
 0x493   :  { %v4403_v11 = vpop.permute.xlu0 %4402  ;;  %v4578_v40 = vmul.f32 %v9390_v18, %v3682_v24 }
 0x494   :  { %v4592_v32 = vmul.f32 %v4403_v11, %v3696_v27  ;;  %v6390_v27 = vld [vmem:[#allocation3 + $0x168] sm:$0xff]  }
 0x495   :  { %v3675_v59 = vunpack.c.h.bf16 %v6390_v27  ;;  %v4693_v43 = vsel %vm2502_vm1, %v4578_v40, 0.0 }
 0x496   :  { %v9395_v7 = vpop.permute.xlu1 %4197  ;;  %v4635_v1 = vsel %vm2502_vm1, %v4592_v32, 0.0  ;;  %v4563_v32 = vmul.f32 %v9368_v30, %v3667_v12  ;;  %v6398_v12 = vld [vmem:[#allocation3 + $0x1e8] sm:$0xff]  }
 0x497   :  { %v9392_v37 = vpop.permute.xlu0 %4267  ;;  %v4636_v3 = vadd.f32 %v4635_v1, %v4634_v39  ;;  %v3698_v1 = vunpack.c.l.bf16 %v6393_v36 }
 0x498   :  { %v4720_v30 = vsel %vm2502_vm1, %v4563_v32, 0.0 }
 0x49a   :  { %v9398_v38 = vpop.permute.xlu1 %4337 }
 0x49b   :  { %v4408_v26 = vpop.permute.xlu0 %4407  ;;  %v4579_v4 = vmul.f32 %v9398_v38, %v3683_v44  ;;  %v3707_v44 = vunpack.c.h.bf16 %v6398_v12 }
 0x49c   :  { %v4593_v5 = vmul.f32 %v4408_v26, %v3697_v22  ;;  %v3674_v26 = vunpack.c.l.bf16 %v6390_v27  ;;  %v9434_v22 = vld [vmem:[#allocation3 + $0x150] sm:$0xff]  }
 0x49d   :  { %v3668_v39 = vunpack.c.l.bf16 %v9434_v22 }
 0x49e   :  { %v9406_v34 = vpop.permute.xlu1 %4232  ;;  %v4666_v49 = vsel %vm2502_vm1, %v4593_v5, 0.0  ;;  %v4570_v20 = vmul.f32 %v9376_v48, %v3674_v26  ;;  %v9447_v5 = vld [vmem:[#allocation3 + $0x170] sm:$0xff]  }
 0x49f   :  { %v9402_v23 = vpop.permute.xlu0 %4302  ;;  %v4667_v2 = vadd.f32 %v4666_v49, %v4665_v21  ;;  %v9456_v49 = vld [vmem:[#allocation3 + $0x138] sm:$0xff]  }
 0x4a0   :  { %v4691_v48 = vsel %vm2502_vm1, %v4570_v20, 0.0  ;;  %v3662_v21 = vunpack.c.l.bf16 %v9456_v49 }
 0x4a1   :  { %v4692_v10 = vadd.f32 %v4691_v48, %v9362_v58  ;;  %v6399_v58 = vld [vmem:[#allocation3 + $0x190] sm:$0xff]  }
 0x4a2   :  { %v4373_v51 = vpop.permute.xlu1 %4372 }
 0x4a3   :  { %v4443_v29 = vpop.permute.xlu0 %4442  ;;  %v4694_v26 = vadd.f32 %v4693_v43, %v4692_v10 }
 0x4a4   :  { %v4600_v47 = vmul.f32 %v4443_v29, %v3704_v25  ;;  %v4571_v25 = vmul.f32 %v9384_v62, %v3675_v59  ;;  %v3699_v29 = vunpack.c.h.bf16 %v6393_v36  ;;  %v9442_v62 = vld [vmem:[#allocation3 + $0x118] sm:$0xff]   ;;  %v3684_v59 = vunpack.c.l.bf16 %v6399_v58 }
 0x4a5   :  { %v3654_v18 = vunpack.c.l.bf16 %v9442_v62  ;;  %v3655_v13 = vunpack.c.h.bf16 %v9442_v62 }
 0x4a6   :  { %v4637_v45 = vsel %vm2502_vm1, %v4600_v47, 0.0  ;;  %v9417_v11 = vpop.permute.xlu1 %4237  ;;  %v4586_v47 = vmul.f32 %v4373_v51, %v3690_v8 }
 0x4a7   :  { %v4638_v17 = vadd.f32 %v4637_v45, %v4636_v3  ;;  %v9414_v16 = vpop.permute.xlu0 %4307  ;;  %v3669_v3 = vunpack.c.h.bf16 %v9434_v22  ;;  %v3676_v45 = vunpack.c.l.bf16 %v9447_v5 }
 0x4a9   :  { %5641 = vmatprep.mubr.msk.f32.mxu1 %vm2502_vm1, %v4638_v17  ;;  %v4722_v17 = vsel %vm2502_vm1, %v4571_v25, 0.0  ;;  %v3685_v25 = vunpack.c.h.bf16 %v6399_v58  ;;  %v4572_v43 = vmul.f32 %v9402_v23, %v3676_v45  ;;  %v4550_v45 = vmul.f32 %v9388_v31, %v3654_v18  ;;  %v6405_v31 = vld [vmem:[#allocation3 + $0x1f0] sm:$0xff]   ;;  %v9499_v18 = vld [vmem:[#allocation3 + $0x1b8] sm:$0xff]  }
 0x4aa   :  { %v4378_v55 = vpop.permute.xlu1 %4377  ;;  %v4551_v58 = vmul.f32 %v9395_v7, %v3655_v13  ;;  %v3708_v7 = vunpack.c.l.bf16 %v6405_v31  ;;  %v3694_v13 = vunpack.c.l.bf16 %v9499_v18 }
 0x4ab   :  { %v4448_v61 = vpop.permute.xlu0 %4447  ;;  %v4587_v38 = vmul.f32 %v4378_v55, %v3691_v54  ;;  %v3706_v55 = vunpack.c.l.bf16 %v6398_v12  ;;  %v4564_v54 = vmul.f32 %v9386_v41, %v3668_v39 }
 0x4ac   :  { %v4601_v52 = vmul.f32 %v4448_v61, %v3705_v56  ;;  %v4721_v56 = vadd.f32 %v4720_v30, %v9354_v57  ;;  %v3677_v61 = vunpack.c.h.bf16 %v9447_v5  ;;  %v3663_v57 = vunpack.c.h.bf16 %v9456_v49 }
 0x4ad   :  { %v4726_v24 = vsel %vm2502_vm1, %v4587_v38, 0.0 }
 0x4ae   :  { %v4668_v46 = vsel %vm2502_vm1, %v4601_v52, 0.0  ;;  %v9424_v6 = vpop.permute.xlu1 %4272  ;;  %v4723_v27 = vadd.f32 %v4722_v17, %v4721_v56 }
 0x4af   :  { %v4669_v9 = vadd.f32 %v4668_v46, %v4667_v2  ;;  %v9422_v15 = vpop.permute.xlu0 %4342  ;;  %v4724_v2 = vsel %vm2502_vm1, %v4579_v4, 0.0  ;;  %v4695_v46 = vsel %vm2502_vm1, %v4586_v47, 0.0  ;;  %v9475_v4 = vld [vmem:[#allocation3 + $0x178] sm:$0xff]  }
 0x4b0   :  { %v4725_v63 = vadd.f32 %v4724_v2, %v4723_v27  ;;  %v4696_v8 = vadd.f32 %v4695_v46, %v4694_v26  ;;  %v3678_v47 = vunpack.c.l.bf16 %v9475_v4  ;;  %v3679_v5 = vunpack.c.h.bf16 %v9475_v4  ;;  %v6403_v2 = vld [vmem:[#allocation3 + $0x1d0] sm:$0xff]  }
 0x4b1   :  { %5642 = vmatmul.mubr.msk.f32.vlgmr.msra.gmra.mrb[64].mxu1 %vm2502_vm1, %v4669_v9  ;;  %v3700_v46 = vunpack.c.l.bf16 %v6403_v2  ;;  %v4565_v27 = vmul.f32 %v9392_v37, %v3669_v3  ;;  %v4580_v26 = vmul.f32 %v9422_v15, %v3684_v59  ;;  %v3709_v59 = vunpack.c.h.bf16 %v6405_v31 }
 0x4b2   :  { %v4413_v14 = vpop.permute.xlu1 %4412  ;;  %v4727_v30 = vadd.f32 %v4726_v24, %v4725_v63  ;;  %v4753_v63 = vsel %vm2502_vm1, %v4572_v43, 0.0 }
 0x4b3   :  { %v9428_v19 = vpop.permute.xlu0 %4277  ;;  %v4594_v51 = vmul.f32 %v4413_v14, %v3698_v1  ;;  %v9468_v14 = vld [vmem:[#allocation3 + $0x158] sm:$0xff]   ;;  %v6401_v1 = vld [vmem:[#allocation3 + $0x1b0] sm:$0xff]  }
 0x4b4   :  { %v3670_v32 = vunpack.c.l.bf16 %v9468_v14  ;;  %v3692_v22 = vunpack.c.l.bf16 %v6401_v1  ;;  %v3693_v41 = vunpack.c.h.bf16 %v6401_v1 }
 0x4b5   :  { %v4697_v20 = vsel %vm2502_vm1, %v4594_v51, 0.0 }
 0x4b6   :  { %v9437_v0 = vpop.permute.xlu1 %4347  ;;  %v4698_v48 = vadd.f32 %v4697_v20, %v4696_v8  ;;  %v4573_v8 = vmul.f32 %v9414_v16, %v3677_v61  ;;  %v4755_v16 = vsel %vm2502_vm1, %v4580_v26, 0.0 }
 0x4b7   :  { %v4418_v28 = vpop.permute.xlu0 %4417 }
 0x4b8   :  { %v4595_v9 = vmul.f32 %v4418_v28, %v3699_v29  ;;  %v3671_v28 = vunpack.c.h.bf16 %v9468_v14 }
 0x4ba   :  { %v9460_v52 = vpop.permute.xlu1 %4312  ;;  %v4728_v36 = vsel %vm2502_vm1, %v4595_v9, 0.0  ;;  %v9481_v9 = vld [vmem:[#allocation3 + $0x198] sm:$0xff]  }
 0x4bb   :  { %v9450_v33 = vpop.permute.xlu0 %4382  ;;  %v4729_v39 = vadd.f32 %v4728_v36, %v4727_v30  ;;  %v3686_v12 = vunpack.c.l.bf16 %v9481_v9  ;;  %v3687_v15 = vunpack.c.h.bf16 %v9481_v9  ;;  %v4559_v30 = vmul.f32 %v9417_v11, %v3663_v57 }
 0x4bc   :  { %v4588_v37 = vmul.f32 %v9450_v33, %v3692_v22  ;;  %v4581_v33 = vmul.f32 %v9437_v0, %v3685_v25  ;;  %v3695_v22 = vunpack.c.h.bf16 %v9499_v18  ;;  %v4558_v25 = vmul.f32 %v9406_v34, %v3662_v21 }
 0x4bd   :  { %v4842_v21 = vsel %vm2502_vm1, %v4559_v30, 0.0  ;;  %v4574_v14 = vmul.f32 %v9460_v52, %v3678_v47 }
 0x4be   :  { %v4453_v40 = vpop.permute.xlu1 %4452 }
 0x4bf   :  { %v9465_v53 = vpop.permute.xlu0 %4317  ;;  %v4602_v29 = vmul.f32 %v4453_v40, %v3706_v55  ;;  %v4751_v55 = vsel %vm2502_vm1, %v4564_v54, 0.0  ;;  %v4782_v40 = vsel %vm2502_vm1, %v4565_v27, 0.0  ;;  %v4809_v54 = vsel %vm2502_vm1, %v4550_v45, 0.0 }
 0x4c0   :  { %v4752_v3 = vadd.f32 %v4751_v55, %v9371_v35  ;;  %v4840_v35 = vsel %vm2502_vm1, %v4551_v58, 0.0  ;;  %v4783_v0 = vadd.f32 %v4782_v40, %v9379_v42  ;;  %v4811_v55 = vsel %vm2502_vm1, %v4558_v25, 0.0 }
 0x4c1   :  { %v4699_v38 = vsel %vm2502_vm1, %v4602_v29, 0.0  ;;  %v4784_v29 = vsel %vm2502_vm1, %v4573_v8, 0.0  ;;  %v4841_v42 = vadd.f32 %v4840_v35, %v9382_v50  ;;  %v4815_v31 = vsel %vm2502_vm1, %v4574_v14, 0.0 }
 0x4c2   :  { %v4700_v56 = vadd.f32 %v4699_v38, %v4698_v48  ;;  %v4388_v10 = vpop.permute.xlu1 %4387  ;;  %v4754_v36 = vadd.f32 %v4753_v63, %v4752_v3  ;;  %v4757_v48 = vsel %vm2502_vm1, %v4588_v37, 0.0  ;;  %v4785_v49 = vadd.f32 %v4784_v29, %v4783_v0 }
 0x4c3   :  { %v4458_v17 = vpop.permute.xlu0 %4457  ;;  %v4843_v45 = vadd.f32 %v4842_v21, %v4841_v42 }
 0x4c4   :  { %v4603_v51 = vmul.f32 %v4458_v17, %v3707_v44  ;;  %5644 = vmatprep.mubr.msk.f32.mxu1 %vm2502_vm1, %v4700_v56  ;;  %v3701_v44 = vunpack.c.h.bf16 %v6403_v2  ;;  %v4589_v17 = vmul.f32 %v4388_v10, %v3693_v41  ;;  %v4756_v43 = vadd.f32 %v4755_v16, %v4754_v36 }
 0x4c5   :  { %v4567_v56 = vmul.f32 %v9428_v19, %v3671_v28  ;;  %v4786_v2 = vsel %vm2502_vm1, %v4581_v33, 0.0  ;;  %v4810_v41 = vadd.f32 %v4809_v54, %v9374_v60  ;;  %v4575_v60 = vmul.f32 %v9465_v53, %v3679_v5 }
 0x4c6   :  { %v4730_v23 = vsel %vm2502_vm1, %v4603_v51, 0.0  ;;  %v4353_v62 = vpop.permute.xlu1 %4352  ;;  %v6407_v51 = vld [vmem:[#allocation3 + $0x1d8] sm:$0xff]   ;;  %v4758_v10 = vadd.f32 %v4757_v48, %v4756_v43  ;;  %v4788_v19 = vsel %vm2502_vm1, %v4589_v17, 0.0  ;;  %v4787_v27 = vadd.f32 %v4786_v2, %v4785_v49 }
 0x4c7   :  { %v4731_v24 = vadd.f32 %v4730_v23, %v4729_v39  ;;  %v4423_v20 = vpop.permute.xlu0 %4422  ;;  %v3703_v39 = vunpack.c.h.bf16 %v6407_v51  ;;  %v4844_v23 = vsel %vm2502_vm1, %v4567_v56, 0.0  ;;  %v4582_v53 = vmul.f32 %v4353_v62, %v3686_v12 }
 0x4c8   :  { %v4596_v61 = vmul.f32 %v4423_v20, %v3700_v46  ;;  %v4566_v46 = vmul.f32 %v9424_v6, %v3670_v32  ;;  %v4789_v58 = vadd.f32 %v4788_v19, %v4787_v27  ;;  %v3702_v8 = vunpack.c.l.bf16 %v6407_v51 }
 0x4c9   :  { %5645 = vmatmul.mubr.msk.f32.gmra.mrb[66].mxu1 %vm2502_vm1, %v4731_v24  ;;  %v4812_v37 = vadd.f32 %v4811_v55, %v4810_v41  ;;  %v4845_v4 = vadd.f32 %v4844_v23, %v4843_v45  ;;  %v4846_v52 = vsel %vm2502_vm1, %v4575_v60, 0.0  ;;  %v4817_v16 = vsel %vm2502_vm1, %v4582_v53, 0.0  ;;  %v5372_v60 = vld [vmem:[%s9609_s9] ss:$0 sm:$0xff] }
 0x4ca   :  { %v4358_v38 = vpop.permute.xlu1 %4357  ;;  %v4759_v11 = vsel %vm2502_vm1, %v4596_v61, 0.0  ;;  %v4813_v63 = vsel %vm2502_vm1, %v4566_v46, 0.0  ;;  %v6408_v61 = vld [vmem:[#allocation3 + $0x1f8] sm:$0xff]  }
 0x4cb   :  { %v4428_v1 = vpop.permute.xlu0 %4427  ;;  %v4760_v50 = vadd.f32 %v4759_v11, %v4758_v10  ;;  %v4583_v24 = vmul.f32 %v4358_v38, %v3687_v15  ;;  %v4814_v40 = vadd.f32 %v4813_v63, %v4812_v37  ;;  %v3711_v54 = vunpack.c.h.bf16 %v6408_v61  ;;  %v10305_v37 = vld [vmem:[#allocation95_spill] sm:$0xff] }
 0x4cc   :  { %v4597_v57 = vmul.f32 %v4428_v1, %v3701_v44  ;;  %v3710_v30 = vunpack.c.l.bf16 %v6408_v61 }
 0x4cd   :  { %v4848_v9 = vsel %vm2502_vm1, %v4583_v24, 0.0  ;;  %v4816_v35 = vadd.f32 %v4815_v31, %v4814_v40  ;;  %v10306_v31 = vld [vmem:[#allocation98_spill] sm:$0xff] }
 0x4ce   :  { %v4393_v26 = vpop.permute.xlu1 %4392  ;;  %v4790_v6 = vsel %vm2502_vm1, %v4597_v57, 0.0 }
 0x4cf   :  { %v4463_v34 = vpop.permute.xlu0 %4462  ;;  %v4791_v47 = vadd.f32 %v4790_v6, %v4789_v58  ;;  %v4590_v15 = vmul.f32 %v4393_v26, %v3694_v13  ;;  %v4818_v48 = vadd.f32 %v4817_v16, %v4816_v35  ;;  %v10303_v58 = vld [vmem:[#allocation93_spill] sm:$0xff] }
 0x4d0   :  { %v4604_v28 = vmul.f32 %v4463_v34, %v3708_v7  ;;  %v10309_v16 = vld [vmem:[#allocation105_spill] sm:$0xff] }
 0x4d2   :  { %v4761_v32 = vsel %vm2502_vm1, %v4604_v28, 0.0  ;;  %v4398_v3 = vpop.permute.xlu1 %4397 }
 0x4d3   :  { %v4762_v20 = vadd.f32 %v4761_v32, %v4760_v50  ;;  %v4468_v44 = vpop.permute.xlu0 %4467  ;;  %v4591_v18 = vmul.f32 %v4398_v3, %v3695_v22  ;;  %v4819_v22 = vsel %vm2502_vm1, %v4590_v15, 0.0  ;;  %v10302_v32 = vld [vmem:[#allocation92_spill] sm:$0xff] }
 0x4d4   :  { %v4605_v5 = vmul.f32 %v4468_v44, %v3709_v59  ;;  %v4847_v59 = vadd.f32 %v4846_v52, %v4845_v4  ;;  %v4820_v51 = vadd.f32 %v4819_v22, %v4818_v48 }
 0x4d5   :  { %5647 = vmatprep.mubr.msk.f32.mxu1 %vm2502_vm1, %v4762_v20  ;;  %v4850_v36 = vsel %vm2502_vm1, %v4591_v18, 0.0 }
 0x4d6   :  { %v4792_v7 = vsel %vm2502_vm1, %v4605_v5, 0.0  ;;  %v4433_v1 = vpop.permute.xlu1 %4432  ;;  %v4849_v13 = vadd.f32 %v4848_v9, %v4847_v59  ;;  %v10304_v5 = vld [vmem:[#allocation94_spill] sm:$0xff] }
 0x4d7   :  { %v4793_v12 = vadd.f32 %v4792_v7, %v4791_v47  ;;  %v4438_v62 = vpop.permute.xlu0 %4437  ;;  %v4598_v29 = vmul.f32 %v4433_v1, %v3702_v8  ;;  %v10307_v7 = vld [vmem:[#allocation100_spill] sm:$0xff] }
 0x4d8   :  { %v4599_v33 = vmul.f32 %v4438_v62, %v3703_v39  ;;  %v4851_v25 = vadd.f32 %v4850_v36, %v4849_v13  ;;  %v10308_v62 = vld [vmem:[#allocation102_spill] sm:$0xff] }
 0x4d9   :  { %5648 = vmatmul.mubr.msk.f32.gmra.mrb[68].mxu1 %vm2502_vm1, %v4793_v12  ;;  %v4821_v43 = vsel %vm2502_vm1, %v4598_v29, 0.0 }
 0x4da   :  { %v4852_v17 = vsel %vm2502_vm1, %v4599_v33, 0.0  ;;  %v4822_v57 = vadd.f32 %v4821_v43, %v4820_v51 }
 0x4db   :  { %v4478_v0 = vpop.permute.xlu0 %4477  ;;  %v4853_v56 = vadd.f32 %v4852_v17, %v4851_v25 }
 0x4dc   :  { %v4607_v38 = vmul.f32 %v4478_v0, %v3711_v54 }
 0x4de   :  { %v4473_v39 = vpop.permute.xlu1 %4472  ;;  %v4854_v2 = vsel %vm2502_vm1, %v4607_v38, 0.0 }
 0x4df   :  { %v4606_v11 = vmul.f32 %v4473_v39, %v3710_v30  ;;  %v4855_v41 = vadd.f32 %v4854_v2, %v4853_v56 }
 0x4e1   :  { %v4823_v42 = vsel %vm2502_vm1, %v4606_v11, 0.0 }
 0x4e2   :  { %v4824_v49 = vadd.f32 %v4823_v42, %v4822_v57 }
 0x4e4   :  { %5650 = vmatprep.mubr.msk.f32.mxu1 %vm2502_vm1, %v4824_v49 }
 0x4e5   :  { %5651 = vmatmul.mubr.msk.f32.gmra.mrb[70].mxu1 %vm2502_vm1, %v4855_v41 }
 0x584   :  { %v5643_v10 = vpop.f32.mrb[64].mxu1 }
 0x585   :  { %4999 = vrot.lane.b32.xlu0 %v5643_v10, %s6512_s7  ;;  %v4950_v34 = vpop.f32.mrb[65].mxu1 }
 0x586   :  { %4997 = vrot.lane.b32.xlu1 %v4950_v34, %s6512_s7 }
 0x59c   :  { %v5646_v21 = vpop.f32.mrb[66].mxu1 }
 0x59d   :  { %5003 = vrot.lane.b32.xlu0 %v5646_v21, %s6512_s7  ;;  %v4960_v46 = vpop.f32.mrb[67].mxu1 }
 0x59e   :  { %5001 = vrot.lane.b32.xlu1 %v4960_v46, %s6512_s7 }
 0x5ac   :  { %v5649_v19 = vpop.f32.mrb[68].mxu1 }
 0x5ad   :  { %5007 = vrot.lane.b32.xlu0 %v5649_v19, %s6512_s7  ;;  %v4970_v28 = vpop.f32.mrb[69].mxu1 }
 0x5ae   :  { %5005 = vrot.lane.b32.xlu1 %v4970_v28, %s6512_s7 }
 0x5b8   :  { %v5652_v55 = vpop.f32.mrb[70].mxu1 }
 0x5b9   :  { %5011 = vrot.lane.b32.xlu0 %v5652_v55, %s6512_s7  ;;  %v4980_v27 = vpop.f32.mrb[71].mxu1 }
 0x5ba   :  { %5009 = vrot.lane.b32.xlu1 %v4980_v27, %s6512_s7 }
 0x5be   :  { %5035 = vrot.lane.b32.xlu1 %v5372_v60, %s6512_s7 }
 0x5f7   :  { %v5000_v14 = vpop.permute.xlu0 %4999 }
 0x5f8   :  { %v4998_v50 = vpop.permute.xlu1 %4997  ;;  %v5022_v45 = vadd.f32 %v10302_v32, %v5000_v14 }
 0x5f9   :  { %v5021_v24 = vadd.f32 %v4998_v50, %v10303_v58 }
 0x60f   :  { %v5004_v20 = vpop.permute.xlu0 %5003 }
 0x610   :  { %v5002_v26 = vpop.permute.xlu1 %5001  ;;  %v5024_v8 = vadd.f32 %v10304_v5, %v5004_v20 }
 0x611   :  { %v5023_v4 = vadd.f32 %v5002_v26, %v10305_v37 }
 0x61f   :  { %v5008_v52 = vpop.permute.xlu0 %5007 }
 0x620   :  { %v5006_v23 = vpop.permute.xlu1 %5005  ;;  %v5026_v15 = vadd.f32 %v10306_v31, %v5008_v52 }
 0x621   :  { %v5025_v18 = vadd.f32 %v5006_v23, %v10307_v7 }
 0x62b   :  { %v5012_v40 = vpop.permute.xlu0 %5011 }
 0x62c   :  { %v5010_v6 = vpop.permute.xlu1 %5009  ;;  %v5028_v59 = vadd.f32 %v10308_v62, %v5012_v40 }
 0x62d   :  { %v5027_v33 = vadd.f32 %v5010_v6, %v10309_v16 }
 0x630   :  { %v5036_v44 = vpop.permute.xlu1 %5035 }
 0x631   :  { %v5039_v63 = vadd.f32 %v5036_v44, %v5022_v45  ;;  %v5038_v53 = vadd.f32 %v5036_v44, %v5021_v24  ;;  %v5041_v47 = vadd.f32 %v5036_v44, %v5024_v8  ;;  %v5040_v3 = vadd.f32 %v5036_v44, %v5023_v4 }
 0x632   :  { %v5043_v9 = vadd.f32 %v5036_v44, %v5026_v15  ;;  %v5042_v12 = vadd.f32 %v5036_v44, %v5025_v18  ;;  %v5045_v61 = vadd.f32 %v5036_v44, %v5028_v59  ;;  %v5044_v54 = vadd.f32 %v5036_v44, %v5027_v33 }
 0x633   :  { %5056 = vrot.lane.b32.xlu1 %v5039_v63, %s6513_s25  ;;  %5054 = vrot.lane.b32.xlu0 %v5038_v53, %s6513_s25 }
 0x637   :  { %5060 = vrot.lane.b32.xlu1 %v5041_v47, %s6513_s25  ;;  %5058 = vrot.lane.b32.xlu0 %v5040_v3, %s6513_s25 }
 0x63b   :  { %5064 = vrot.lane.b32.xlu1 %v5043_v9, %s6513_s25  ;;  %5062 = vrot.lane.b32.xlu0 %v5042_v12, %s6513_s25 }
 0x63f   :  { %5068 = vrot.lane.b32.xlu1 %v5045_v61, %s6513_s25  ;;  %5066 = vrot.lane.b32.xlu0 %v5044_v54, %s6513_s25 }
 0x6a5   :  { %v5057_v35 = vpop.permute.xlu1 %5056  ;;  %v5055_v36 = vpop.permute.xlu0 %5054 }
 0x6a6   :  { %5079 = vst.msk [vmem:[%s9610_s10 + $0x8] sm:$0xff] %vm2502_vm1, %v5057_v35  ;;  %5078 = vst.msk [vmem:[%s9610_s10] sm:$0xff] %vm2502_vm1, %v5055_v36 }
 0x6a9   :  { %v5061_v1 = vpop.permute.xlu1 %5060  ;;  %v5059_v13 = vpop.permute.xlu0 %5058 }
 0x6aa   :  { %5081 = vst.msk [vmem:[%s9610_s10 + $0x18] sm:$0xff] %vm2502_vm1, %v5061_v1  ;;  %5080 = vst.msk [vmem:[%s9610_s10 + $0x10] sm:$0xff] %vm2502_vm1, %v5059_v13 }
 0x6ad   :  { %v5065_v22 = vpop.permute.xlu1 %5064  ;;  %v5063_v29 = vpop.permute.xlu0 %5062 }
 0x6ae   :  { %5083 = vst.msk [vmem:[%s9610_s10 + $0x28] sm:$0xff] %vm2502_vm1, %v5065_v22  ;;  %5082 = vst.msk [vmem:[%s9610_s10 + $0x20] sm:$0xff] %vm2502_vm1, %v5063_v29 }
 0x6b1   :  { %v5069_v30 = vpop.permute.xlu1 %5068  ;;  %v5067_v48 = vpop.permute.xlu0 %5066 }
 0x6b2   :  { %5085 = vst.msk [vmem:[%s9610_s10 + $0x38] sm:$0xff] %vm2502_vm1, %v5069_v30  ;;  %5084 = vst.msk [vmem:[%s9610_s10 + $0x30] sm:$0xff] %vm2502_vm1, %v5067_v48 }
 0x6b3   :  { %5090 = vsyncpa [#allocation4], 1 }
 0x6b4   :  { %5091 = vsyncpa [#allocation6], 1 }
 0x6b5   :  { %5092 = vsyncpa [#allocation9], 1 }

</bundles_post_ra>
